<compile_context>
chip_gen: v6e
topology: v6e:2x2x1
jax: 0.10.0
libtpu: 0.0.40
codegen_flags: <defaults>
</compile_context>

<pallas_src>
import functools
import numpy as np
import jax
import jax.numpy as jnp
from jax.experimental import pallas as pl
from jax.experimental.pallas import tpu as pltpu

LROWS = 8      # sublane tile rows used by the per-step LSTM math
LANE = 128


def _round_up(n, m):
    return (n + m - 1) // m * m


# ---------------------------------------------------------------------------
# Glue: lower Conv2d / ConvTranspose2d (k=5, stride=1, pad=0) to dense GEMMs
# ---------------------------------------------------------------------------
def conv_matrix(w, hin, win):
    """w: (Cout, Cin, K, K). Returns M with out_flat = x_flat @ M (valid conv)."""
    cout, cin, k, _ = w.shape
    ho, wo = hin - k + 1, win - k + 1
    m = np.zeros((cin * hin * win, cout * ho * wo), dtype=np.float32)
    for co in range(cout):
        for oy in range(ho):
            for ox in range(wo):
                oidx = (co * ho + oy) * wo + ox
                for ci in range(cin):
                    for dy in range(k):
                        for dx in range(k):
                            iidx = (ci * hin + oy + dy) * win + (ox + dx)
                            m[iidx, oidx] = w[co, ci, dy, dx]
    return m


def convT_matrix(w, hin, win):
    """w: (Cin, Cout, K, K) (PyTorch ConvTranspose2d layout), stride=1, pad=0."""
    cin, cout, k, _ = w.shape
    ho, wo = hin + k - 1, win + k - 1
    m = np.zeros((cin * hin * win, cout * ho * wo), dtype=np.float32)
    for ci in range(cin):
        for iy in range(hin):
            for ix in range(win):
                iidx = (ci * hin + iy) * win + ix
                for co in range(cout):
                    for dy in range(k):
                        for dx in range(k):
                            oidx = (co * ho + iy + dy) * wo + (ix + dx)
                            m[iidx, oidx] += w[ci, co, dy, dx]
    return m


# ---------------------------------------------------------------------------
# Deterministic parameter initialization (shapes from RSSM.__init__)
# ---------------------------------------------------------------------------
def init_params(key, size, bottleneck):
    S, bn = size, bottleneck
    hs = (S - 12) * (S - 12) * 8  # hidden_size
    keys = iter(jax.random.split(key, 24))

    def u(shape, fan_in):
        b = 1.0 / np.sqrt(fan_in)
        return np.asarray(jax.random.uniform(next(keys), shape, jnp.float32, -b, b))

    raw = dict(
        w1=u((2, 1, 5, 5), 25),   bc1=u((2,), 25),
        w2=u((4, 2, 5, 5), 50),   bc2=u((4,), 50),
        w3=u((8, 4, 5, 5), 100),  bc3=u((8,), 100),
        wl1=u((bn, hs), hs),      bl1=u((bn,), hs),
        w_ih=u((4 * bn, bn), bn), b_ih=u((4 * bn,), bn),
        w_hh=u((4 * bn, bn), bn), b_hh=u((4 * bn,), bn),
        wl2=u((hs, bn), bn),      bl2=u((hs,), bn),
        w4=u((8, 4, 5, 5), 200),  bc4=u((4,), 200),
        w5=u((4, 2, 5, 5), 100),  bc5=u((2,), 100),
        w6=u((2, 1, 5, 5), 50),   bc6=u((1,), 50),
        h0=np.asarray(jax.random.normal(next(keys), (1, bn), jnp.float32)),
        c0=np.asarray(jax.random.normal(next(keys), (1, bn), jnp.float32)),
    )
    return raw


# ---------------------------------------------------------------------------
# Pack parameters into lane-padded bf16 GEMM operands + one f32 bias slab
# ---------------------------------------------------------------------------
def pack_params(raw, size, bottleneck):
    S, bn = size, bottleneck
    S1, S2, S3, S4 = S, S - 4, S - 8, S - 12
    D1 = 1 * S1 * S1            # 256
    D2 = 2 * S2 * S2            # 288
    D3 = 4 * S3 * S3            # 256
    D4 = 8 * S4 * S4            # 128 == hidden_size
    D2p = _round_up(D2, LANE)   # 384 (lane-dense padding)

    def pad_cols(m, n):
        return np.pad(m, ((0, 0), (0, n - m.shape[1])))

    def pad_rows(m, n):
        return np.pad(m, ((0, n - m.shape[0]), (0, 0)))

    m1 = pad_cols(conv_matrix(raw["w1"], S1, S1), D2p)        # (D1, D2p)
    m2 = pad_rows(conv_matrix(raw["w2"], S2, S2), D2p)        # (D2p, D3)
    m3 = conv_matrix(raw["w3"], S3, S3)                       # (D3, D4)
    wl1 = raw["wl1"].T                                        # (D4, bn)
    wl2 = raw["wl2"].T                                        # (bn, D4)
    m4 = convT_matrix(raw["w4"], S4, S4)                      # (D4, D3)
    m5 = pad_cols(convT_matrix(raw["w5"], S3, S3), D2p)       # (D3, D2p)
    m6 = pad_rows(convT_matrix(raw["w6"], S2, S2), D2p)       # (D2p, D1)

    # LSTM gate weights: W^T with each gate (i|f|g|o) in its own 128-lane slot.
    # sigmoid(x) = 0.5*tanh(x/2)+0.5 -- the 1/2 is folded into the i/f/o slots
    # (exact: 0.5 is a power of two, bf16(0.5*w) == 0.5*bf16(w)).
    gate_scale = (0.5, 0.5, 1.0, 0.5)

    def pack_gate_mat(w):                                     # w: (4*bn, bn)
        out = np.zeros((bn, 4 * LANE), np.float32)
        for k in range(4):
            out[:, k * LANE:k * LANE + bn] = (
                gate_scale[k] * w[k * bn:(k + 1) * bn, :].T)
        return out

    wih = pack_gate_mat(raw["w_ih"])                          # (bn, 512)
    whh = pack_gate_mat(raw["w_hh"])                          # (bn, 512)
    bsum = raw["b_ih"] + raw["b_hh"]
    bg = np.zeros((4 * LANE,), np.float32)
    for k in range(4):
        bg[k * LANE:k * LANE + bn] = gate_scale[k] * bsum[k * bn:(k + 1) * bn]

    v1 = np.pad(np.repeat(raw["bc1"], S2 * S2), (0, D2p - D2))
    v2 = np.repeat(raw["bc2"], S3 * S3)
    v3 = np.repeat(raw["bc3"], S4 * S4)
    bl1 = raw["bl1"]
    bl2 = raw["bl2"]
    v4 = np.repeat(raw["bc4"], S3 * S3)
    v5 = np.pad(np.repeat(raw["bc5"], S2 * S2), (0, D2p - D2))
    v6 = np.repeat(raw["bc6"], S1 * S1)

    # one packed (1, Nb) f32 bias slab; every slot starts on a 128-lane boundary
    pieces = [v1, v2, v3, bl1, bg, bl2, v4, v5, v6]
    slots, chunks, off = [], [], 0
    for p in pieces:
        w = int(p.shape[0])
        slot = _round_up(w, LANE)
        slots.append((off, w))
        chunks.append(np.pad(p, (0, slot - w)))
        off += slot
    bias_slab = np.concatenate(chunks)[None, :].astype(np.float32)

    hc0 = np.concatenate([raw["h0"], raw["c0"]], axis=0).astype(np.float32)  # (2, bn)

    mats = (m1, m2, m3, wl1, wih, whh, wl2, m4, m5, m6)
    mats = tuple(jnp.asarray(m, jnp.bfloat16) for m in mats)
    ops = mats + (jnp.asarray(bias_slab, jnp.float32), jnp.asarray(hc0, jnp.float32))
    return ops, tuple(slots), (D1, D2p, D3, D4)


# ---------------------------------------------------------------------------
# Pallas kernel: one pallas_call, grid=(1,).  Batched encoder on compacted rows
# -> unrolled LSTM recurrence with vreg-resident h/c -> batched decoder.
# ---------------------------------------------------------------------------
def rssm_kernel(use_ref, x_ref,
                m1_ref, m2_ref, m3_ref, wl1_ref, wih_ref, whh_ref,
                wl2_ref, m4_ref, m5_ref, m6_ref, psc_ref, pga_ref,
                b_ref, hc_ref, out_ref, *, T, bn, bias_slots):
    f32 = jnp.float32
    bf16 = jnp.bfloat16
    relu = lambda v: jnp.maximum(v, 0.0)

    def mm(a, w_ref):
        return jnp.dot(a.astype(bf16), w_ref[...], preferred_element_type=f32)

    (v1, v2, v3, bl1, bg, bl2, v4, v5, v6) = [
        b_ref[:, o:o + w] for (o, w) in bias_slots]

    # ---- encoder: conv1/2/3 + lin1, batched over the compacted T*B rows ----
    e = relu(mm(x_ref[...], m1_ref) + v1)        # (TBc, 384)
    e = relu(mm(e, m2_ref) + v2)                 # (TBc, 256)
    e = relu(mm(e, m3_ref) + v3)                 # (TBc, 128)
    enc_c = relu(mm(e, wl1_ref) + bl1)           # (TBc, bn) f32

    # scatter compacted rows into 8-row-aligned per-step tiles via a tiny
    # permutation GEMM (MXU idle here; keeps the serial path free of relayouts)
    enc8 = jnp.dot(psc_ref[...], enc_c.astype(bf16),
                   preferred_element_type=f32)   # (T*8, bn)

    # ---- LSTM recurrence: only serial part; h/c carried in vregs ----
    h = jnp.broadcast_to(hc_ref[0:1, :], (LROWS, bn))
    c = jnp.broadcast_to(hc_ref[1:2, :], (LROWS, bn))
    G = LANE  # per-gate 128-lane slot in the padded gate layout
    hs = []
    # TODO(synk): static full unroll is right for small T; switch to lax.fori_loop
    # with a bounded unroll if T grows into the hundreds.
    for t in range(T):
        e_t = enc8[t * LROWS:(t + 1) * LROWS, :]
        use_t = jnp.broadcast_to(use_ref[t], (LROWS, bn)) != 0
        frame = jnp.where(use_t, e_t, h)                         # single vsel
        g = (jnp.dot(frame.astype(bf16), wih_ref[...], preferred_element_type=f32)
             + jnp.dot(h.astype(bf16), whh_ref[...], preferred_element_type=f32)
             + bg)                                               # (8, 4*128)
        # sigmoid(x) = 0.5*tanh(x/2)+0.5 ; the 1/2 is pre-folded into wih/whh/bg
        ig = 0.5 * jnp.tanh(g[:, 0 * G:0 * G + bn]) + 0.5
        fg = 0.5 * jnp.tanh(g[:, 1 * G:1 * G + bn]) + 0.5
        gg = jnp.tanh(g[:, 2 * G:2 * G + bn])
        og = 0.5 * jnp.tanh(g[:, 3 * G:3 * G + bn]) + 0.5
        c = fg * c + ig * gg
        h = og * jnp.tanh(c)
        hs.append(h)

    # gather the first B rows of every step back to the compacted layout (GEMM)
    hseq8 = jnp.concatenate(hs, axis=0)                          # (T*8, bn)
    hseq_c = jnp.dot(pga_ref[...], hseq8.astype(bf16),
                     preferred_element_type=f32)                 # (TBc, bn)

    # ---- decoder: lin2 + conv4T/5T/6T, batched over compacted rows ----
    d = relu(mm(hseq_c, wl2_ref) + bl2)          # (TBc, 128)
    d = relu(mm(d, m4_ref) + v4)                 # (TBc, 256)
    d = relu(mm(d, m5_ref) + v5)                 # (TBc, 384)
    out_ref[...] = relu(mm(d, m6_ref) + v6)      # (TBc, 256)


# ---------------------------------------------------------------------------
# Wrapper
# ---------------------------------------------------------------------------
def rssm_forward(x, packed, epsilon, key, bottleneck):
    ops, bias_slots, dims = packed
    D1 = dims[0]
    B, T, C, H, W = x.shape
    D = C * H * W
    assert D == D1 and B <= LROWS
    TB = T * B
    TBc = _round_up(TB, 16)                      # one bf16 sublane tile of rows

    # compacted (time-major) row layout feeding all batched GEMMs
    x_tb = jnp.transpose(x, (1, 0, 2, 3, 4)).reshape(TB, D).astype(jnp.float32)
    x_c = jnp.zeros((TBc, D), jnp.float32).at[:TB].set(x_tb).astype(jnp.bfloat16)

    # permutation matrices: compacted rows <-> 8-row-aligned per-step tiles
    psc = np.zeros((T * LROWS, TBc), np.float32)
    pga = np.zeros((TBc, T * LROWS), np.float32)
    for t in range(T):
        for b in range(B):
            psc[t * LROWS + b, t * B + b] = 1.0
            pga[t * B + b, t * LROWS + b] = 1.0
    psc = jnp.asarray(psc, jnp.bfloat16)
    pga = jnp.asarray(pga, jnp.bfloat16)

    # TODO(synk): the per-timestep host-side random.random() draw of the PyTorch
    # module has no in-kernel equivalent; it is replaced by a precomputed
    # jax.random.uniform(key, (T,)) vector fed to the kernel via scalar prefetch.
    u = jax.random.uniform(key, (T,))
    use_enc = (epsilon < u).astype(jnp.int32)

    mats = ops[:10]
    bias_slab, hc0 = ops[10], ops[11]
    operands = (x_c,) + mats + (psc, pga, bias_slab, hc0)

    idx0 = lambda i, s: (0, 0)
    in_specs = [pl.BlockSpec(o.shape, idx0) for o in operands]

    kernel = functools.partial(rssm_kernel, T=T, bn=bottleneck,
                               bias_slots=bias_slots)

    out = pl.pallas_call(
        kernel,
        out_shape=jax.ShapeDtypeStruct((TBc, D), jnp.float32),
        grid_spec=pltpu.PrefetchScalarGridSpec(
            num_scalar_prefetch=1,
            grid=(1,),
            in_specs=in_specs,
            out_specs=pl.BlockSpec((TBc, D), idx0)),
        compiler_params=pltpu.CompilerParams(
            dimension_semantics=("arbitrary",)),
    )(use_enc, *operands)

    out = out[:TB].reshape(T, B, C, H, W)
    return jnp.transpose(out, (1, 0, 2, 3, 4)), use_enc


# ---------------------------------------------------------------------------
# Pure-JAX reference (same packed bf16 weights) for correctness check
# ---------------------------------------------------------------------------
def rssm_reference(x, packed, use_enc, bottleneck):
    ops, bias_slots, dims = packed
    (m1, m2, m3, wl1, wih, whh, wl2, m4, m5, m6, b_slab, hc0) = ops
    bn = bottleneck
    B, T, C, H, W = x.shape
    D = C * H * W
    G = LANE
    relu = lambda v: jnp.maximum(v, 0.0)
    mm = lambda a, w: jnp.dot(a.astype(jnp.bfloat16), w,
                              preferred_element_type=jnp.float32)
    (v1, v2, v3, bl1, bg, bl2, v4, v5, v6) = [
        b_slab[:, o:o + w] for (o, w) in bias_slots]

    xt = jnp.transpose(x, (1, 0, 2, 3, 4)).reshape(T * B, D).astype(jnp.float32)
    e = relu(mm(xt, m1) + v1)
    e = relu(mm(e, m2) + v2)
    e = relu(mm(e, m3) + v3)
    enc = relu(mm(e, wl1) + bl1).reshape(T, B, bn)

    h = jnp.broadcast_to(hc0[0:1, :], (B, bn))
    c = jnp.broadcast_to(hc0[1:2, :], (B, bn))
    hs = []
    for t in range(T):
        frame = jnp.where(use_enc[t] != 0, enc[t], h)
        g = mm(frame, wih) + mm(h, whh) + bg
        ig = 0.5 * jnp.tanh(g[:, 0 * G:0 * G + bn]) + 0.5
        fg = 0.5 * jnp.tanh(g[:, 1 * G:1 * G + bn]) + 0.5
        gg = jnp.tanh(g[:, 2 * G:2 * G + bn])
        og = 0.5 * jnp.tanh(g[:, 3 * G:3 * G + bn]) + 0.5
        c = fg * c + ig * gg
        h = og * jnp.tanh(c)
        hs.append(h)
    hseq = jnp.concatenate(hs, axis=0)            # (T*B, bn), time-major
    d = relu(mm(hseq, wl2) + bl2)
    d = relu(mm(d, m4) + v4)
    d = relu(mm(d, m5) + v5)
    d = relu(mm(d, m6) + v6)
    out = d.reshape(T, B, C, H, W)
    return jnp.transpose(out, (1, 0, 2, 3, 4))


if __name__ == "__main__":
    SIZE = 16        # width == height
    BOTTLENECK = 32
    BATCH = 2
    SEQ = 6
    EPSILON = 0.5

    key = jax.random.PRNGKey(0)
    k_par, k_x, k_eps = jax.random.split(key, 3)

    raw = init_params(k_par, SIZE, BOTTLENECK)
    packed = pack_params(raw, SIZE, BOTTLENECK)
    x = jax.random.uniform(k_x, (BATCH, SEQ, 1, SIZE, SIZE), jnp.float32)

    out, use_enc = rssm_forward(x, packed, EPSILON, k_eps, BOTTLENECK)
    out = jax.block_until_ready(out)

    assert out.shape == (BATCH, SEQ, 1, SIZE, SIZE)
    ref = rssm_reference(x, packed, use_enc, BOTTLENECK)
    err = float(jnp.max(jnp.abs(out - ref)))
    assert jnp.allclose(out, ref, atol=2e-3, rtol=2e-3), err
    print("KERNEL_OK")
</pallas_src>

<mosaic_0001>
module attributes {stable_mosaic.version = 11 : i64} {
  func.func @rssm_kernel(%arg0: i32, %arg1: memref<6xi32, #tpu.memory_space<smem>>, %arg2: memref<16x256xbf16, #tpu.memory_space<vmem>>, %arg3: memref<256x384xbf16, #tpu.memory_space<vmem>>, %arg4: memref<384x256xbf16, #tpu.memory_space<vmem>>, %arg5: memref<256x128xbf16, #tpu.memory_space<vmem>>, %arg6: memref<128x32xbf16, #tpu.memory_space<vmem>>, %arg7: memref<32x512xbf16, #tpu.memory_space<vmem>>, %arg8: memref<32x512xbf16, #tpu.memory_space<vmem>>, %arg9: memref<32x128xbf16, #tpu.memory_space<vmem>>, %arg10: memref<128x256xbf16, #tpu.memory_space<vmem>>, %arg11: memref<256x384xbf16, #tpu.memory_space<vmem>>, %arg12: memref<384x256xbf16, #tpu.memory_space<vmem>>, %arg13: memref<48x16xbf16, #tpu.memory_space<vmem>>, %arg14: memref<16x48xbf16, #tpu.memory_space<vmem>>, %arg15: memref<1x2432xf32, #tpu.memory_space<vmem>>, %arg16: memref<2x32xf32, #tpu.memory_space<vmem>>, %arg17: memref<16x256xf32, #tpu.memory_space<vmem>>) attributes {dimension_semantics = [#tpu.dimension_semantics<arbitrary>], iteration_bounds = array<i64: 1>, scalar_prefetch = 1 : i64, scratch_operands = 0 : i64, tpu.core_type = #tpu.core_type<tc>, window_params = [{pipeline_mode = #tpu.pipeline_mode<synchronous>, transform_indices = @transform_0, window_bounds = array<i64: 16, 256>}, {pipeline_mode = #tpu.pipeline_mode<synchronous>, transform_indices = @transform_1, window_bounds = array<i64: 256, 384>}, {pipeline_mode = #tpu.pipeline_mode<synchronous>, transform_indices = @transform_2, window_bounds = array<i64: 384, 256>}, {pipeline_mode = #tpu.pipeline_mode<synchronous>, transform_indices = @transform_3, window_bounds = array<i64: 256, 128>}, {pipeline_mode = #tpu.pipeline_mode<synchronous>, transform_indices = @transform_4, window_bounds = array<i64: 128, 32>}, {pipeline_mode = #tpu.pipeline_mode<synchronous>, transform_indices = @transform_5, window_bounds = array<i64: 32, 512>}, {pipeline_mode = #tpu.pipeline_mode<synchronous>, transform_indices = @transform_6, window_bounds = array<i64: 32, 512>}, {pipeline_mode = #tpu.pipeline_mode<synchronous>, transform_indices = @transform_7, window_bounds = array<i64: 32, 128>}, {pipeline_mode = #tpu.pipeline_mode<synchronous>, transform_indices = @transform_8, window_bounds = array<i64: 128, 256>}, {pipeline_mode = #tpu.pipeline_mode<synchronous>, transform_indices = @transform_9, window_bounds = array<i64: 256, 384>}, {pipeline_mode = #tpu.pipeline_mode<synchronous>, transform_indices = @transform_10, window_bounds = array<i64: 384, 256>}, {pipeline_mode = #tpu.pipeline_mode<synchronous>, transform_indices = @transform_11, window_bounds = array<i64: 48, 16>}, {pipeline_mode = #tpu.pipeline_mode<synchronous>, transform_indices = @transform_12, window_bounds = array<i64: 16, 48>}, {pipeline_mode = #tpu.pipeline_mode<synchronous>, transform_indices = @transform_13, window_bounds = array<i64: 1, 2432>}, {pipeline_mode = #tpu.pipeline_mode<synchronous>, transform_indices = @transform_14, window_bounds = array<i64: 2, 32>}, {pipeline_mode = #tpu.pipeline_mode<synchronous>, transform_indices = @transform_15, window_bounds = array<i64: 16, 256>}]} {
    %c0 = arith.constant 0 : index
    %c0_0 = arith.constant 0 : index
    %0 = vector.load %arg15[%c0, %c0_0] : memref<1x2432xf32, #tpu.memory_space<vmem>>, vector<1x384xf32>
    %c0_1 = arith.constant 0 : index
    %c384 = arith.constant 384 : index
    %1 = vector.load %arg15[%c0_1, %c384] : memref<1x2432xf32, #tpu.memory_space<vmem>>, vector<1x256xf32>
    %c0_2 = arith.constant 0 : index
    %c640 = arith.constant 640 : index
    %2 = vector.load %arg15[%c0_2, %c640] : memref<1x2432xf32, #tpu.memory_space<vmem>>, vector<1x128xf32>
    %c0_3 = arith.constant 0 : index
    %c768 = arith.constant 768 : index
    %3 = vector.load %arg15[%c0_3, %c768] : memref<1x2432xf32, #tpu.memory_space<vmem>>, vector<1x32xf32>
    %c0_4 = arith.constant 0 : index
    %c896 = arith.constant 896 : index
    %4 = vector.load %arg15[%c0_4, %c896] : memref<1x2432xf32, #tpu.memory_space<vmem>>, vector<1x512xf32>
    %c0_5 = arith.constant 0 : index
    %c1408 = arith.constant 1408 : index
    %5 = vector.load %arg15[%c0_5, %c1408] : memref<1x2432xf32, #tpu.memory_space<vmem>>, vector<1x128xf32>
    %c0_6 = arith.constant 0 : index
    %c1536 = arith.constant 1536 : index
    %6 = vector.load %arg15[%c0_6, %c1536] : memref<1x2432xf32, #tpu.memory_space<vmem>>, vector<1x256xf32>
    %c0_7 = arith.constant 0 : index
    %c1792 = arith.constant 1792 : index
    %7 = vector.load %arg15[%c0_7, %c1792] : memref<1x2432xf32, #tpu.memory_space<vmem>>, vector<1x384xf32>
    %c0_8 = arith.constant 0 : index
    %c2176 = arith.constant 2176 : index
    %8 = vector.load %arg15[%c0_8, %c2176] : memref<1x2432xf32, #tpu.memory_space<vmem>>, vector<1x256xf32>
    %c0_9 = arith.constant 0 : index
    %c0_10 = arith.constant 0 : index
    %9 = vector.load %arg2[%c0_9, %c0_10] : memref<16x256xbf16, #tpu.memory_space<vmem>>, vector<16x256xbf16>
    %c0_11 = arith.constant 0 : index
    %c0_12 = arith.constant 0 : index
    %10 = vector.load %arg3[%c0_11, %c0_12] : memref<256x384xbf16, #tpu.memory_space<vmem>>, vector<256x384xbf16>
    %cst = arith.constant dense<0.000000e+00> : vector<16x384xf32>
    %11 = tpu.matmul %9, %10, %cst {dimension_numbers = #tpu.dot_dimension_numbers<[1], [0], [0], [1], [0, 0, 1, 1], [], []>} : vector<16x256xbf16>, vector<256x384xbf16>, vector<16x384xf32> -> vector<16x384xf32>
    %12 = vector.broadcast %0 : vector<1x384xf32> to vector<16x384xf32>
    %13 = arith.addf %11, %12 : vector<16x384xf32>
    %cst_13 = arith.constant 0.000000e+00 : f32
    %14 = vector.broadcast %cst_13 : f32 to vector<16x384xf32>
    %15 = arith.maximumf %13, %14 : vector<16x384xf32>
    %16 = arith.truncf %15 : vector<16x384xf32> to vector<16x384xbf16>
    %c0_14 = arith.constant 0 : index
    %c0_15 = arith.constant 0 : index
    %17 = vector.load %arg4[%c0_14, %c0_15] : memref<384x256xbf16, #tpu.memory_space<vmem>>, vector<384x256xbf16>
    %cst_16 = arith.constant dense<0.000000e+00> : vector<16x256xf32>
    %18 = tpu.matmul %16, %17, %cst_16 {dimension_numbers = #tpu.dot_dimension_numbers<[1], [0], [0], [1], [0, 0, 1, 1], [], []>} : vector<16x384xbf16>, vector<384x256xbf16>, vector<16x256xf32> -> vector<16x256xf32>
    %19 = vector.broadcast %1 : vector<1x256xf32> to vector<16x256xf32>
    %20 = arith.addf %18, %19 : vector<16x256xf32>
    %cst_17 = arith.constant 0.000000e+00 : f32
    %21 = vector.broadcast %cst_17 : f32 to vector<16x256xf32>
    %22 = arith.maximumf %20, %21 : vector<16x256xf32>
    %23 = arith.truncf %22 : vector<16x256xf32> to vector<16x256xbf16>
    %c0_18 = arith.constant 0 : index
    %c0_19 = arith.constant 0 : index
    %24 = vector.load %arg5[%c0_18, %c0_19] : memref<256x128xbf16, #tpu.memory_space<vmem>>, vector<256x128xbf16>
    %cst_20 = arith.constant dense<0.000000e+00> : vector<16x128xf32>
    %25 = tpu.matmul %23, %24, %cst_20 {dimension_numbers = #tpu.dot_dimension_numbers<[1], [0], [0], [1], [0, 0, 1, 1], [], []>} : vector<16x256xbf16>, vector<256x128xbf16>, vector<16x128xf32> -> vector<16x128xf32>
    %26 = vector.broadcast %2 : vector<1x128xf32> to vector<16x128xf32>
    %27 = arith.addf %25, %26 : vector<16x128xf32>
    %cst_21 = arith.constant 0.000000e+00 : f32
    %28 = vector.broadcast %cst_21 : f32 to vector<16x128xf32>
    %29 = arith.maximumf %27, %28 : vector<16x128xf32>
    %30 = arith.truncf %29 : vector<16x128xf32> to vector<16x128xbf16>
    %c0_22 = arith.constant 0 : index
    %c0_23 = arith.constant 0 : index
    %31 = vector.load %arg6[%c0_22, %c0_23] : memref<128x32xbf16, #tpu.memory_space<vmem>>, vector<128x32xbf16>
    %cst_24 = arith.constant dense<0.000000e+00> : vector<16x32xf32>
    %32 = tpu.matmul %30, %31, %cst_24 {dimension_numbers = #tpu.dot_dimension_numbers<[1], [0], [0], [1], [0, 0, 1, 1], [], []>} : vector<16x128xbf16>, vector<128x32xbf16>, vector<16x32xf32> -> vector<16x32xf32>
    %33 = vector.broadcast %3 : vector<1x32xf32> to vector<16x32xf32>
    %34 = arith.addf %32, %33 : vector<16x32xf32>
    %cst_25 = arith.constant 0.000000e+00 : f32
    %35 = vector.broadcast %cst_25 : f32 to vector<16x32xf32>
    %36 = arith.maximumf %34, %35 : vector<16x32xf32>
    %c0_26 = arith.constant 0 : index
    %c0_27 = arith.constant 0 : index
    %37 = vector.load %arg13[%c0_26, %c0_27] : memref<48x16xbf16, #tpu.memory_space<vmem>>, vector<48x16xbf16>
    %38 = arith.truncf %36 : vector<16x32xf32> to vector<16x32xbf16>
    %cst_28 = arith.constant dense<0.000000e+00> : vector<48x32xf32>
    %39 = tpu.matmul %37, %38, %cst_28 {dimension_numbers = #tpu.dot_dimension_numbers<[1], [0], [0], [1], [0, 0, 1, 1], [], []>} : vector<48x16xbf16>, vector<16x32xbf16>, vector<48x32xf32> -> vector<48x32xf32>
    %c0_29 = arith.constant 0 : index
    %c0_30 = arith.constant 0 : index
    %40 = vector.load %arg16[%c0_29, %c0_30] : memref<2x32xf32, #tpu.memory_space<vmem>>, vector<1x32xf32>
    %41 = vector.shape_cast %40 : vector<1x32xf32> to vector<1x32xf32>
    %42 = vector.broadcast %41 : vector<1x32xf32> to vector<8x32xf32>
    %c1 = arith.constant 1 : index
    %c0_31 = arith.constant 0 : index
    %43 = vector.load %arg16[%c1, %c0_31] : memref<2x32xf32, #tpu.memory_space<vmem>>, vector<1x32xf32>
    %44 = vector.shape_cast %43 : vector<1x32xf32> to vector<1x32xf32>
    %45 = vector.broadcast %44 : vector<1x32xf32> to vector<8x32xf32>
    %46 = vector.extract_strided_slice %39 {offsets = [0, 0], sizes = [8, 32], strides = [1, 1]} : vector<48x32xf32> to vector<8x32xf32>
    %c0_32 = arith.constant 0 : index
    %47 = memref.load %arg1[%c0_32] : memref<6xi32, #tpu.memory_space<smem>>
    %48 = vector.broadcast %47 : i32 to vector<8x32xi32>
    %c0_i32 = arith.constant 0 : i32
    %49 = vector.broadcast %c0_i32 : i32 to vector<8x32xi32>
    %50 = arith.cmpi ne, %48, %49 : vector<8x32xi32>
    %51 = arith.select %50, %46, %42 : vector<8x32xi1>, vector<8x32xf32>
    %52 = arith.truncf %51 : vector<8x32xf32> to vector<8x32xbf16>
    %c0_33 = arith.constant 0 : index
    %c0_34 = arith.constant 0 : index
    %53 = vector.load %arg7[%c0_33, %c0_34] : memref<32x512xbf16, #tpu.memory_space<vmem>>, vector<32x512xbf16>
    %cst_35 = arith.constant dense<0.000000e+00> : vector<8x512xf32>
    %54 = tpu.matmul %52, %53, %cst_35 {dimension_numbers = #tpu.dot_dimension_numbers<[1], [0], [0], [1], [0, 0, 1, 1], [], []>} : vector<8x32xbf16>, vector<32x512xbf16>, vector<8x512xf32> -> vector<8x512xf32>
    %55 = arith.truncf %42 : vector<8x32xf32> to vector<8x32xbf16>
    %c0_36 = arith.constant 0 : index
    %c0_37 = arith.constant 0 : index
    %56 = vector.load %arg8[%c0_36, %c0_37] : memref<32x512xbf16, #tpu.memory_space<vmem>>, vector<32x512xbf16>
    %cst_38 = arith.constant dense<0.000000e+00> : vector<8x512xf32>
    %57 = tpu.matmul %55, %56, %cst_38 {dimension_numbers = #tpu.dot_dimension_numbers<[1], [0], [0], [1], [0, 0, 1, 1], [], []>} : vector<8x32xbf16>, vector<32x512xbf16>, vector<8x512xf32> -> vector<8x512xf32>
    %58 = arith.addf %54, %57 : vector<8x512xf32>
    %59 = vector.broadcast %4 : vector<1x512xf32> to vector<8x512xf32>
    %60 = arith.addf %58, %59 : vector<8x512xf32>
    %61 = vector.extract_strided_slice %60 {offsets = [0, 0], sizes = [8, 32], strides = [1, 1]} : vector<8x512xf32> to vector<8x32xf32>
    %62 = math.tanh %61 : vector<8x32xf32>
    %cst_39 = arith.constant 5.000000e-01 : f32
    %63 = vector.broadcast %cst_39 : f32 to vector<8x32xf32>
    %64 = arith.mulf %63, %62 : vector<8x32xf32>
    %cst_40 = arith.constant 5.000000e-01 : f32
    %65 = vector.broadcast %cst_40 : f32 to vector<8x32xf32>
    %66 = arith.addf %64, %65 : vector<8x32xf32>
    %67 = vector.extract_strided_slice %60 {offsets = [0, 128], sizes = [8, 32], strides = [1, 1]} : vector<8x512xf32> to vector<8x32xf32>
    %68 = math.tanh %67 : vector<8x32xf32>
    %cst_41 = arith.constant 5.000000e-01 : f32
    %69 = vector.broadcast %cst_41 : f32 to vector<8x32xf32>
    %70 = arith.mulf %69, %68 : vector<8x32xf32>
    %cst_42 = arith.constant 5.000000e-01 : f32
    %71 = vector.broadcast %cst_42 : f32 to vector<8x32xf32>
    %72 = arith.addf %70, %71 : vector<8x32xf32>
    %73 = vector.extract_strided_slice %60 {offsets = [0, 256], sizes = [8, 32], strides = [1, 1]} : vector<8x512xf32> to vector<8x32xf32>
    %74 = math.tanh %73 : vector<8x32xf32>
    %75 = vector.extract_strided_slice %60 {offsets = [0, 384], sizes = [8, 32], strides = [1, 1]} : vector<8x512xf32> to vector<8x32xf32>
    %76 = math.tanh %75 : vector<8x32xf32>
    %cst_43 = arith.constant 5.000000e-01 : f32
    %77 = vector.broadcast %cst_43 : f32 to vector<8x32xf32>
    %78 = arith.mulf %77, %76 : vector<8x32xf32>
    %cst_44 = arith.constant 5.000000e-01 : f32
    %79 = vector.broadcast %cst_44 : f32 to vector<8x32xf32>
    %80 = arith.addf %78, %79 : vector<8x32xf32>
    %81 = arith.mulf %72, %45 : vector<8x32xf32>
    %82 = arith.mulf %66, %74 : vector<8x32xf32>
    %83 = arith.addf %81, %82 : vector<8x32xf32>
    %84 = math.tanh %83 : vector<8x32xf32>
    %85 = arith.mulf %80, %84 : vector<8x32xf32>
    %86 = vector.extract_strided_slice %39 {offsets = [8, 0], sizes = [8, 32], strides = [1, 1]} : vector<48x32xf32> to vector<8x32xf32>
    %c1_45 = arith.constant 1 : index
    %87 = memref.load %arg1[%c1_45] : memref<6xi32, #tpu.memory_space<smem>>
    %88 = vector.broadcast %87 : i32 to vector<8x32xi32>
    %c0_i32_46 = arith.constant 0 : i32
    %89 = vector.broadcast %c0_i32_46 : i32 to vector<8x32xi32>
    %90 = arith.cmpi ne, %88, %89 : vector<8x32xi32>
    %91 = arith.select %90, %86, %85 : vector<8x32xi1>, vector<8x32xf32>
    %92 = arith.truncf %91 : vector<8x32xf32> to vector<8x32xbf16>
    %c0_47 = arith.constant 0 : index
    %c0_48 = arith.constant 0 : index
    %93 = vector.load %arg7[%c0_47, %c0_48] : memref<32x512xbf16, #tpu.memory_space<vmem>>, vector<32x512xbf16>
    %cst_49 = arith.constant dense<0.000000e+00> : vector<8x512xf32>
    %94 = tpu.matmul %92, %93, %cst_49 {dimension_numbers = #tpu.dot_dimension_numbers<[1], [0], [0], [1], [0, 0, 1, 1], [], []>} : vector<8x32xbf16>, vector<32x512xbf16>, vector<8x512xf32> -> vector<8x512xf32>
    %95 = arith.truncf %85 : vector<8x32xf32> to vector<8x32xbf16>
    %c0_50 = arith.constant 0 : index
    %c0_51 = arith.constant 0 : index
    %96 = vector.load %arg8[%c0_50, %c0_51] : memref<32x512xbf16, #tpu.memory_space<vmem>>, vector<32x512xbf16>
    %cst_52 = arith.constant dense<0.000000e+00> : vector<8x512xf32>
    %97 = tpu.matmul %95, %96, %cst_52 {dimension_numbers = #tpu.dot_dimension_numbers<[1], [0], [0], [1], [0, 0, 1, 1], [], []>} : vector<8x32xbf16>, vector<32x512xbf16>, vector<8x512xf32> -> vector<8x512xf32>
    %98 = arith.addf %94, %97 : vector<8x512xf32>
    %99 = vector.broadcast %4 : vector<1x512xf32> to vector<8x512xf32>
    %100 = arith.addf %98, %99 : vector<8x512xf32>
    %101 = vector.extract_strided_slice %100 {offsets = [0, 0], sizes = [8, 32], strides = [1, 1]} : vector<8x512xf32> to vector<8x32xf32>
    %102 = math.tanh %101 : vector<8x32xf32>
    %cst_53 = arith.constant 5.000000e-01 : f32
    %103 = vector.broadcast %cst_53 : f32 to vector<8x32xf32>
    %104 = arith.mulf %103, %102 : vector<8x32xf32>
    %cst_54 = arith.constant 5.000000e-01 : f32
    %105 = vector.broadcast %cst_54 : f32 to vector<8x32xf32>
    %106 = arith.addf %104, %105 : vector<8x32xf32>
    %107 = vector.extract_strided_slice %100 {offsets = [0, 128], sizes = [8, 32], strides = [1, 1]} : vector<8x512xf32> to vector<8x32xf32>
    %108 = math.tanh %107 : vector<8x32xf32>
    %cst_55 = arith.constant 5.000000e-01 : f32
    %109 = vector.broadcast %cst_55 : f32 to vector<8x32xf32>
    %110 = arith.mulf %109, %108 : vector<8x32xf32>
    %cst_56 = arith.constant 5.000000e-01 : f32
    %111 = vector.broadcast %cst_56 : f32 to vector<8x32xf32>
    %112 = arith.addf %110, %111 : vector<8x32xf32>
    %113 = vector.extract_strided_slice %100 {offsets = [0, 256], sizes = [8, 32], strides = [1, 1]} : vector<8x512xf32> to vector<8x32xf32>
    %114 = math.tanh %113 : vector<8x32xf32>
    %115 = vector.extract_strided_slice %100 {offsets = [0, 384], sizes = [8, 32], strides = [1, 1]} : vector<8x512xf32> to vector<8x32xf32>
    %116 = math.tanh %115 : vector<8x32xf32>
    %cst_57 = arith.constant 5.000000e-01 : f32
    %117 = vector.broadcast %cst_57 : f32 to vector<8x32xf32>
    %118 = arith.mulf %117, %116 : vector<8x32xf32>
    %cst_58 = arith.constant 5.000000e-01 : f32
    %119 = vector.broadcast %cst_58 : f32 to vector<8x32xf32>
    %120 = arith.addf %118, %119 : vector<8x32xf32>
    %121 = arith.mulf %112, %83 : vector<8x32xf32>
    %122 = arith.mulf %106, %114 : vector<8x32xf32>
    %123 = arith.addf %121, %122 : vector<8x32xf32>
    %124 = math.tanh %123 : vector<8x32xf32>
    %125 = arith.mulf %120, %124 : vector<8x32xf32>
    %126 = vector.extract_strided_slice %39 {offsets = [16, 0], sizes = [8, 32], strides = [1, 1]} : vector<48x32xf32> to vector<8x32xf32>
    %c2 = arith.constant 2 : index
    %127 = memref.load %arg1[%c2] : memref<6xi32, #tpu.memory_space<smem>>
    %128 = vector.broadcast %127 : i32 to vector<8x32xi32>
    %c0_i32_59 = arith.constant 0 : i32
    %129 = vector.broadcast %c0_i32_59 : i32 to vector<8x32xi32>
    %130 = arith.cmpi ne, %128, %129 : vector<8x32xi32>
    %131 = arith.select %130, %126, %125 : vector<8x32xi1>, vector<8x32xf32>
    %132 = arith.truncf %131 : vector<8x32xf32> to vector<8x32xbf16>
    %c0_60 = arith.constant 0 : index
    %c0_61 = arith.constant 0 : index
    %133 = vector.load %arg7[%c0_60, %c0_61] : memref<32x512xbf16, #tpu.memory_space<vmem>>, vector<32x512xbf16>
    %cst_62 = arith.constant dense<0.000000e+00> : vector<8x512xf32>
    %134 = tpu.matmul %132, %133, %cst_62 {dimension_numbers = #tpu.dot_dimension_numbers<[1], [0], [0], [1], [0, 0, 1, 1], [], []>} : vector<8x32xbf16>, vector<32x512xbf16>, vector<8x512xf32> -> vector<8x512xf32>
    %135 = arith.truncf %125 : vector<8x32xf32> to vector<8x32xbf16>
    %c0_63 = arith.constant 0 : index
    %c0_64 = arith.constant 0 : index
    %136 = vector.load %arg8[%c0_63, %c0_64] : memref<32x512xbf16, #tpu.memory_space<vmem>>, vector<32x512xbf16>
    %cst_65 = arith.constant dense<0.000000e+00> : vector<8x512xf32>
    %137 = tpu.matmul %135, %136, %cst_65 {dimension_numbers = #tpu.dot_dimension_numbers<[1], [0], [0], [1], [0, 0, 1, 1], [], []>} : vector<8x32xbf16>, vector<32x512xbf16>, vector<8x512xf32> -> vector<8x512xf32>
    %138 = arith.addf %134, %137 : vector<8x512xf32>
    %139 = vector.broadcast %4 : vector<1x512xf32> to vector<8x512xf32>
    %140 = arith.addf %138, %139 : vector<8x512xf32>
    %141 = vector.extract_strided_slice %140 {offsets = [0, 0], sizes = [8, 32], strides = [1, 1]} : vector<8x512xf32> to vector<8x32xf32>
    %142 = math.tanh %141 : vector<8x32xf32>
    %cst_66 = arith.constant 5.000000e-01 : f32
    %143 = vector.broadcast %cst_66 : f32 to vector<8x32xf32>
    %144 = arith.mulf %143, %142 : vector<8x32xf32>
    %cst_67 = arith.constant 5.000000e-01 : f32
    %145 = vector.broadcast %cst_67 : f32 to vector<8x32xf32>
    %146 = arith.addf %144, %145 : vector<8x32xf32>
    %147 = vector.extract_strided_slice %140 {offsets = [0, 128], sizes = [8, 32], strides = [1, 1]} : vector<8x512xf32> to vector<8x32xf32>
    %148 = math.tanh %147 : vector<8x32xf32>
    %cst_68 = arith.constant 5.000000e-01 : f32
    %149 = vector.broadcast %cst_68 : f32 to vector<8x32xf32>
    %150 = arith.mulf %149, %148 : vector<8x32xf32>
    %cst_69 = arith.constant 5.000000e-01 : f32
    %151 = vector.broadcast %cst_69 : f32 to vector<8x32xf32>
    %152 = arith.addf %150, %151 : vector<8x32xf32>
    %153 = vector.extract_strided_slice %140 {offsets = [0, 256], sizes = [8, 32], strides = [1, 1]} : vector<8x512xf32> to vector<8x32xf32>
    %154 = math.tanh %153 : vector<8x32xf32>
    %155 = vector.extract_strided_slice %140 {offsets = [0, 384], sizes = [8, 32], strides = [1, 1]} : vector<8x512xf32> to vector<8x32xf32>
    %156 = math.tanh %155 : vector<8x32xf32>
    %cst_70 = arith.constant 5.000000e-01 : f32
    %157 = vector.broadcast %cst_70 : f32 to vector<8x32xf32>
    %158 = arith.mulf %157, %156 : vector<8x32xf32>
    %cst_71 = arith.constant 5.000000e-01 : f32
    %159 = vector.broadcast %cst_71 : f32 to vector<8x32xf32>
    %160 = arith.addf %158, %159 : vector<8x32xf32>
    %161 = arith.mulf %152, %123 : vector<8x32xf32>
    %162 = arith.mulf %146, %154 : vector<8x32xf32>
    %163 = arith.addf %161, %162 : vector<8x32xf32>
    %164 = math.tanh %163 : vector<8x32xf32>
    %165 = arith.mulf %160, %164 : vector<8x32xf32>
    %166 = vector.extract_strided_slice %39 {offsets = [24, 0], sizes = [8, 32], strides = [1, 1]} : vector<48x32xf32> to vector<8x32xf32>
    %c3 = arith.constant 3 : index
    %167 = memref.load %arg1[%c3] : memref<6xi32, #tpu.memory_space<smem>>
    %168 = vector.broadcast %167 : i32 to vector<8x32xi32>
    %c0_i32_72 = arith.constant 0 : i32
    %169 = vector.broadcast %c0_i32_72 : i32 to vector<8x32xi32>
    %170 = arith.cmpi ne, %168, %169 : vector<8x32xi32>
    %171 = arith.select %170, %166, %165 : vector<8x32xi1>, vector<8x32xf32>
    %172 = arith.truncf %171 : vector<8x32xf32> to vector<8x32xbf16>
    %c0_73 = arith.constant 0 : index
    %c0_74 = arith.constant 0 : index
    %173 = vector.load %arg7[%c0_73, %c0_74] : memref<32x512xbf16, #tpu.memory_space<vmem>>, vector<32x512xbf16>
    %cst_75 = arith.constant dense<0.000000e+00> : vector<8x512xf32>
    %174 = tpu.matmul %172, %173, %cst_75 {dimension_numbers = #tpu.dot_dimension_numbers<[1], [0], [0], [1], [0, 0, 1, 1], [], []>} : vector<8x32xbf16>, vector<32x512xbf16>, vector<8x512xf32> -> vector<8x512xf32>
    %175 = arith.truncf %165 : vector<8x32xf32> to vector<8x32xbf16>
    %c0_76 = arith.constant 0 : index
    %c0_77 = arith.constant 0 : index
    %176 = vector.load %arg8[%c0_76, %c0_77] : memref<32x512xbf16, #tpu.memory_space<vmem>>, vector<32x512xbf16>
    %cst_78 = arith.constant dense<0.000000e+00> : vector<8x512xf32>
    %177 = tpu.matmul %175, %176, %cst_78 {dimension_numbers = #tpu.dot_dimension_numbers<[1], [0], [0], [1], [0, 0, 1, 1], [], []>} : vector<8x32xbf16>, vector<32x512xbf16>, vector<8x512xf32> -> vector<8x512xf32>
    %178 = arith.addf %174, %177 : vector<8x512xf32>
    %179 = vector.broadcast %4 : vector<1x512xf32> to vector<8x512xf32>
    %180 = arith.addf %178, %179 : vector<8x512xf32>
    %181 = vector.extract_strided_slice %180 {offsets = [0, 0], sizes = [8, 32], strides = [1, 1]} : vector<8x512xf32> to vector<8x32xf32>
    %182 = math.tanh %181 : vector<8x32xf32>
    %cst_79 = arith.constant 5.000000e-01 : f32
    %183 = vector.broadcast %cst_79 : f32 to vector<8x32xf32>
    %184 = arith.mulf %183, %182 : vector<8x32xf32>
    %cst_80 = arith.constant 5.000000e-01 : f32
    %185 = vector.broadcast %cst_80 : f32 to vector<8x32xf32>
    %186 = arith.addf %184, %185 : vector<8x32xf32>
    %187 = vector.extract_strided_slice %180 {offsets = [0, 128], sizes = [8, 32], strides = [1, 1]} : vector<8x512xf32> to vector<8x32xf32>
    %188 = math.tanh %187 : vector<8x32xf32>
    %cst_81 = arith.constant 5.000000e-01 : f32
    %189 = vector.broadcast %cst_81 : f32 to vector<8x32xf32>
    %190 = arith.mulf %189, %188 : vector<8x32xf32>
    %cst_82 = arith.constant 5.000000e-01 : f32
    %191 = vector.broadcast %cst_82 : f32 to vector<8x32xf32>
    %192 = arith.addf %190, %191 : vector<8x32xf32>
    %193 = vector.extract_strided_slice %180 {offsets = [0, 256], sizes = [8, 32], strides = [1, 1]} : vector<8x512xf32> to vector<8x32xf32>
    %194 = math.tanh %193 : vector<8x32xf32>
    %195 = vector.extract_strided_slice %180 {offsets = [0, 384], sizes = [8, 32], strides = [1, 1]} : vector<8x512xf32> to vector<8x32xf32>
    %196 = math.tanh %195 : vector<8x32xf32>
    %cst_83 = arith.constant 5.000000e-01 : f32
    %197 = vector.broadcast %cst_83 : f32 to vector<8x32xf32>
    %198 = arith.mulf %197, %196 : vector<8x32xf32>
    %cst_84 = arith.constant 5.000000e-01 : f32
    %199 = vector.broadcast %cst_84 : f32 to vector<8x32xf32>
    %200 = arith.addf %198, %199 : vector<8x32xf32>
    %201 = arith.mulf %192, %163 : vector<8x32xf32>
    %202 = arith.mulf %186, %194 : vector<8x32xf32>
    %203 = arith.addf %201, %202 : vector<8x32xf32>
    %204 = math.tanh %203 : vector<8x32xf32>
    %205 = arith.mulf %200, %204 : vector<8x32xf32>
    %206 = vector.extract_strided_slice %39 {offsets = [32, 0], sizes = [8, 32], strides = [1, 1]} : vector<48x32xf32> to vector<8x32xf32>
    %c4 = arith.constant 4 : index
    %207 = memref.load %arg1[%c4] : memref<6xi32, #tpu.memory_space<smem>>
    %208 = vector.broadcast %207 : i32 to vector<8x32xi32>
    %c0_i32_85 = arith.constant 0 : i32
    %209 = vector.broadcast %c0_i32_85 : i32 to vector<8x32xi32>
    %210 = arith.cmpi ne, %208, %209 : vector<8x32xi32>
    %211 = arith.select %210, %206, %205 : vector<8x32xi1>, vector<8x32xf32>
    %212 = arith.truncf %211 : vector<8x32xf32> to vector<8x32xbf16>
    %c0_86 = arith.constant 0 : index
    %c0_87 = arith.constant 0 : index
    %213 = vector.load %arg7[%c0_86, %c0_87] : memref<32x512xbf16, #tpu.memory_space<vmem>>, vector<32x512xbf16>
    %cst_88 = arith.constant dense<0.000000e+00> : vector<8x512xf32>
    %214 = tpu.matmul %212, %213, %cst_88 {dimension_numbers = #tpu.dot_dimension_numbers<[1], [0], [0], [1], [0, 0, 1, 1], [], []>} : vector<8x32xbf16>, vector<32x512xbf16>, vector<8x512xf32> -> vector<8x512xf32>
    %215 = arith.truncf %205 : vector<8x32xf32> to vector<8x32xbf16>
    %c0_89 = arith.constant 0 : index
    %c0_90 = arith.constant 0 : index
    %216 = vector.load %arg8[%c0_89, %c0_90] : memref<32x512xbf16, #tpu.memory_space<vmem>>, vector<32x512xbf16>
    %cst_91 = arith.constant dense<0.000000e+00> : vector<8x512xf32>
    %217 = tpu.matmul %215, %216, %cst_91 {dimension_numbers = #tpu.dot_dimension_numbers<[1], [0], [0], [1], [0, 0, 1, 1], [], []>} : vector<8x32xbf16>, vector<32x512xbf16>, vector<8x512xf32> -> vector<8x512xf32>
    %218 = arith.addf %214, %217 : vector<8x512xf32>
    %219 = vector.broadcast %4 : vector<1x512xf32> to vector<8x512xf32>
    %220 = arith.addf %218, %219 : vector<8x512xf32>
    %221 = vector.extract_strided_slice %220 {offsets = [0, 0], sizes = [8, 32], strides = [1, 1]} : vector<8x512xf32> to vector<8x32xf32>
    %222 = math.tanh %221 : vector<8x32xf32>
    %cst_92 = arith.constant 5.000000e-01 : f32
    %223 = vector.broadcast %cst_92 : f32 to vector<8x32xf32>
    %224 = arith.mulf %223, %222 : vector<8x32xf32>
    %cst_93 = arith.constant 5.000000e-01 : f32
    %225 = vector.broadcast %cst_93 : f32 to vector<8x32xf32>
    %226 = arith.addf %224, %225 : vector<8x32xf32>
    %227 = vector.extract_strided_slice %220 {offsets = [0, 128], sizes = [8, 32], strides = [1, 1]} : vector<8x512xf32> to vector<8x32xf32>
    %228 = math.tanh %227 : vector<8x32xf32>
    %cst_94 = arith.constant 5.000000e-01 : f32
    %229 = vector.broadcast %cst_94 : f32 to vector<8x32xf32>
    %230 = arith.mulf %229, %228 : vector<8x32xf32>
    %cst_95 = arith.constant 5.000000e-01 : f32
    %231 = vector.broadcast %cst_95 : f32 to vector<8x32xf32>
    %232 = arith.addf %230, %231 : vector<8x32xf32>
    %233 = vector.extract_strided_slice %220 {offsets = [0, 256], sizes = [8, 32], strides = [1, 1]} : vector<8x512xf32> to vector<8x32xf32>
    %234 = math.tanh %233 : vector<8x32xf32>
    %235 = vector.extract_strided_slice %220 {offsets = [0, 384], sizes = [8, 32], strides = [1, 1]} : vector<8x512xf32> to vector<8x32xf32>
    %236 = math.tanh %235 : vector<8x32xf32>
    %cst_96 = arith.constant 5.000000e-01 : f32
    %237 = vector.broadcast %cst_96 : f32 to vector<8x32xf32>
    %238 = arith.mulf %237, %236 : vector<8x32xf32>
    %cst_97 = arith.constant 5.000000e-01 : f32
    %239 = vector.broadcast %cst_97 : f32 to vector<8x32xf32>
    %240 = arith.addf %238, %239 : vector<8x32xf32>
    %241 = arith.mulf %232, %203 : vector<8x32xf32>
    %242 = arith.mulf %226, %234 : vector<8x32xf32>
    %243 = arith.addf %241, %242 : vector<8x32xf32>
    %244 = math.tanh %243 : vector<8x32xf32>
    %245 = arith.mulf %240, %244 : vector<8x32xf32>
    %246 = vector.extract_strided_slice %39 {offsets = [40, 0], sizes = [8, 32], strides = [1, 1]} : vector<48x32xf32> to vector<8x32xf32>
    %c5 = arith.constant 5 : index
    %247 = memref.load %arg1[%c5] : memref<6xi32, #tpu.memory_space<smem>>
    %248 = vector.broadcast %247 : i32 to vector<8x32xi32>
    %c0_i32_98 = arith.constant 0 : i32
    %249 = vector.broadcast %c0_i32_98 : i32 to vector<8x32xi32>
    %250 = arith.cmpi ne, %248, %249 : vector<8x32xi32>
    %251 = arith.select %250, %246, %245 : vector<8x32xi1>, vector<8x32xf32>
    %252 = arith.truncf %251 : vector<8x32xf32> to vector<8x32xbf16>
    %c0_99 = arith.constant 0 : index
    %c0_100 = arith.constant 0 : index
    %253 = vector.load %arg7[%c0_99, %c0_100] : memref<32x512xbf16, #tpu.memory_space<vmem>>, vector<32x512xbf16>
    %cst_101 = arith.constant dense<0.000000e+00> : vector<8x512xf32>
    %254 = tpu.matmul %252, %253, %cst_101 {dimension_numbers = #tpu.dot_dimension_numbers<[1], [0], [0], [1], [0, 0, 1, 1], [], []>} : vector<8x32xbf16>, vector<32x512xbf16>, vector<8x512xf32> -> vector<8x512xf32>
    %255 = arith.truncf %245 : vector<8x32xf32> to vector<8x32xbf16>
    %c0_102 = arith.constant 0 : index
    %c0_103 = arith.constant 0 : index
    %256 = vector.load %arg8[%c0_102, %c0_103] : memref<32x512xbf16, #tpu.memory_space<vmem>>, vector<32x512xbf16>
    %cst_104 = arith.constant dense<0.000000e+00> : vector<8x512xf32>
    %257 = tpu.matmul %255, %256, %cst_104 {dimension_numbers = #tpu.dot_dimension_numbers<[1], [0], [0], [1], [0, 0, 1, 1], [], []>} : vector<8x32xbf16>, vector<32x512xbf16>, vector<8x512xf32> -> vector<8x512xf32>
    %258 = arith.addf %254, %257 : vector<8x512xf32>
    %259 = vector.broadcast %4 : vector<1x512xf32> to vector<8x512xf32>
    %260 = arith.addf %258, %259 : vector<8x512xf32>
    %261 = vector.extract_strided_slice %260 {offsets = [0, 0], sizes = [8, 32], strides = [1, 1]} : vector<8x512xf32> to vector<8x32xf32>
    %262 = math.tanh %261 : vector<8x32xf32>
    %cst_105 = arith.constant 5.000000e-01 : f32
    %263 = vector.broadcast %cst_105 : f32 to vector<8x32xf32>
    %264 = arith.mulf %263, %262 : vector<8x32xf32>
    %cst_106 = arith.constant 5.000000e-01 : f32
    %265 = vector.broadcast %cst_106 : f32 to vector<8x32xf32>
    %266 = arith.addf %264, %265 : vector<8x32xf32>
    %267 = vector.extract_strided_slice %260 {offsets = [0, 128], sizes = [8, 32], strides = [1, 1]} : vector<8x512xf32> to vector<8x32xf32>
    %268 = math.tanh %267 : vector<8x32xf32>
    %cst_107 = arith.constant 5.000000e-01 : f32
    %269 = vector.broadcast %cst_107 : f32 to vector<8x32xf32>
    %270 = arith.mulf %269, %268 : vector<8x32xf32>
    %cst_108 = arith.constant 5.000000e-01 : f32
    %271 = vector.broadcast %cst_108 : f32 to vector<8x32xf32>
    %272 = arith.addf %270, %271 : vector<8x32xf32>
    %273 = vector.extract_strided_slice %260 {offsets = [0, 256], sizes = [8, 32], strides = [1, 1]} : vector<8x512xf32> to vector<8x32xf32>
    %274 = math.tanh %273 : vector<8x32xf32>
    %275 = vector.extract_strided_slice %260 {offsets = [0, 384], sizes = [8, 32], strides = [1, 1]} : vector<8x512xf32> to vector<8x32xf32>
    %276 = math.tanh %275 : vector<8x32xf32>
    %cst_109 = arith.constant 5.000000e-01 : f32
    %277 = vector.broadcast %cst_109 : f32 to vector<8x32xf32>
    %278 = arith.mulf %277, %276 : vector<8x32xf32>
    %cst_110 = arith.constant 5.000000e-01 : f32
    %279 = vector.broadcast %cst_110 : f32 to vector<8x32xf32>
    %280 = arith.addf %278, %279 : vector<8x32xf32>
    %281 = arith.mulf %272, %243 : vector<8x32xf32>
    %282 = arith.mulf %266, %274 : vector<8x32xf32>
    %283 = arith.addf %281, %282 : vector<8x32xf32>
    %284 = math.tanh %283 : vector<8x32xf32>
    %285 = arith.mulf %280, %284 : vector<8x32xf32>
    %286 = tpu.concatenate %85, %125, %165, %205, %245, %285 in 0 : vector<8x32xf32>, vector<8x32xf32>, vector<8x32xf32>, vector<8x32xf32>, vector<8x32xf32>, vector<8x32xf32> -> vector<48x32xf32>
    %c0_111 = arith.constant 0 : index
    %c0_112 = arith.constant 0 : index
    %287 = vector.load %arg14[%c0_111, %c0_112] : memref<16x48xbf16, #tpu.memory_space<vmem>>, vector<16x48xbf16>
    %288 = arith.truncf %286 : vector<48x32xf32> to vector<48x32xbf16>
    %cst_113 = arith.constant dense<0.000000e+00> : vector<16x32xf32>
    %289 = tpu.matmul %287, %288, %cst_113 {dimension_numbers = #tpu.dot_dimension_numbers<[1], [0], [0], [1], [0, 0, 1, 1], [], []>} : vector<16x48xbf16>, vector<48x32xbf16>, vector<16x32xf32> -> vector<16x32xf32>
    %290 = arith.truncf %289 : vector<16x32xf32> to vector<16x32xbf16>
    %c0_114 = arith.constant 0 : index
    %c0_115 = arith.constant 0 : index
    %291 = vector.load %arg9[%c0_114, %c0_115] : memref<32x128xbf16, #tpu.memory_space<vmem>>, vector<32x128xbf16>
    %cst_116 = arith.constant dense<0.000000e+00> : vector<16x128xf32>
    %292 = tpu.matmul %290, %291, %cst_116 {dimension_numbers = #tpu.dot_dimension_numbers<[1], [0], [0], [1], [0, 0, 1, 1], [], []>} : vector<16x32xbf16>, vector<32x128xbf16>, vector<16x128xf32> -> vector<16x128xf32>
    %293 = vector.broadcast %5 : vector<1x128xf32> to vector<16x128xf32>
    %294 = arith.addf %292, %293 : vector<16x128xf32>
    %cst_117 = arith.constant 0.000000e+00 : f32
    %295 = vector.broadcast %cst_117 : f32 to vector<16x128xf32>
    %296 = arith.maximumf %294, %295 : vector<16x128xf32>
    %297 = arith.truncf %296 : vector<16x128xf32> to vector<16x128xbf16>
    %c0_118 = arith.constant 0 : index
    %c0_119 = arith.constant 0 : index
    %298 = vector.load %arg10[%c0_118, %c0_119] : memref<128x256xbf16, #tpu.memory_space<vmem>>, vector<128x256xbf16>
    %cst_120 = arith.constant dense<0.000000e+00> : vector<16x256xf32>
    %299 = tpu.matmul %297, %298, %cst_120 {dimension_numbers = #tpu.dot_dimension_numbers<[1], [0], [0], [1], [0, 0, 1, 1], [], []>} : vector<16x128xbf16>, vector<128x256xbf16>, vector<16x256xf32> -> vector<16x256xf32>
    %300 = vector.broadcast %6 : vector<1x256xf32> to vector<16x256xf32>
    %301 = arith.addf %299, %300 : vector<16x256xf32>
    %cst_121 = arith.constant 0.000000e+00 : f32
    %302 = vector.broadcast %cst_121 : f32 to vector<16x256xf32>
    %303 = arith.maximumf %301, %302 : vector<16x256xf32>
    %304 = arith.truncf %303 : vector<16x256xf32> to vector<16x256xbf16>
    %c0_122 = arith.constant 0 : index
    %c0_123 = arith.constant 0 : index
    %305 = vector.load %arg11[%c0_122, %c0_123] : memref<256x384xbf16, #tpu.memory_space<vmem>>, vector<256x384xbf16>
    %cst_124 = arith.constant dense<0.000000e+00> : vector<16x384xf32>
    %306 = tpu.matmul %304, %305, %cst_124 {dimension_numbers = #tpu.dot_dimension_numbers<[1], [0], [0], [1], [0, 0, 1, 1], [], []>} : vector<16x256xbf16>, vector<256x384xbf16>, vector<16x384xf32> -> vector<16x384xf32>
    %307 = vector.broadcast %7 : vector<1x384xf32> to vector<16x384xf32>
    %308 = arith.addf %306, %307 : vector<16x384xf32>
    %cst_125 = arith.constant 0.000000e+00 : f32
    %309 = vector.broadcast %cst_125 : f32 to vector<16x384xf32>
    %310 = arith.maximumf %308, %309 : vector<16x384xf32>
    %311 = arith.truncf %310 : vector<16x384xf32> to vector<16x384xbf16>
    %c0_126 = arith.constant 0 : index
    %c0_127 = arith.constant 0 : index
    %312 = vector.load %arg12[%c0_126, %c0_127] : memref<384x256xbf16, #tpu.memory_space<vmem>>, vector<384x256xbf16>
    %cst_128 = arith.constant dense<0.000000e+00> : vector<16x256xf32>
    %313 = tpu.matmul %311, %312, %cst_128 {dimension_numbers = #tpu.dot_dimension_numbers<[1], [0], [0], [1], [0, 0, 1, 1], [], []>} : vector<16x384xbf16>, vector<384x256xbf16>, vector<16x256xf32> -> vector<16x256xf32>
    %314 = vector.broadcast %8 : vector<1x256xf32> to vector<16x256xf32>
    %315 = arith.addf %313, %314 : vector<16x256xf32>
    %cst_129 = arith.constant 0.000000e+00 : f32
    %316 = vector.broadcast %cst_129 : f32 to vector<16x256xf32>
    %317 = arith.maximumf %315, %316 : vector<16x256xf32>
    %c0_130 = arith.constant 0 : index
    %c0_131 = arith.constant 0 : index
    %318 = vector.load %arg17[%c0_130, %c0_131] : memref<16x256xf32, #tpu.memory_space<vmem>>, vector<16x256xf32>
    tpu.vector_store %arg17[%c0_130, %c0_131], %317 {strides = array<i32>} : memref<16x256xf32, #tpu.memory_space<vmem>>, vector<16x256xf32>,
    return
  }
  func.func @transform_0(%arg0: i32, %arg1: memref<6xi32, #tpu.memory_space<smem>>) -> (i32, i32) {
    %c0_i32 = arith.constant 0 : i32
    %c0_i32_0 = arith.constant 0 : i32
    %c0_i32_1 = arith.constant 0 : i32
    return %c0_i32, %c0_i32_0 : i32, i32
  }
  func.func @transform_1(%arg0: i32, %arg1: memref<6xi32, #tpu.memory_space<smem>>) -> (i32, i32) {
    %c0_i32 = arith.constant 0 : i32
    %c0_i32_0 = arith.constant 0 : i32
    %c0_i32_1 = arith.constant 0 : i32
    return %c0_i32, %c0_i32_0 : i32, i32
  }
  func.func @transform_2(%arg0: i32, %arg1: memref<6xi32, #tpu.memory_space<smem>>) -> (i32, i32) {
    %c0_i32 = arith.constant 0 : i32
    %c0_i32_0 = arith.constant 0 : i32
    %c0_i32_1 = arith.constant 0 : i32
    return %c0_i32, %c0_i32_0 : i32, i32
  }
  func.func @transform_3(%arg0: i32, %arg1: memref<6xi32, #tpu.memory_space<smem>>) -> (i32, i32) {
    %c0_i32 = arith.constant 0 : i32
    %c0_i32_0 = arith.constant 0 : i32
    %c0_i32_1 = arith.constant 0 : i32
    return %c0_i32, %c0_i32_0 : i32, i32
  }
  func.func @transform_4(%arg0: i32, %arg1: memref<6xi32, #tpu.memory_space<smem>>) -> (i32, i32) {
    %c0_i32 = arith.constant 0 : i32
    %c0_i32_0 = arith.constant 0 : i32
    %c0_i32_1 = arith.constant 0 : i32
    return %c0_i32, %c0_i32_0 : i32, i32
  }
  func.func @transform_5(%arg0: i32, %arg1: memref<6xi32, #tpu.memory_space<smem>>) -> (i32, i32) {
    %c0_i32 = arith.constant 0 : i32
    %c0_i32_0 = arith.constant 0 : i32
    %c0_i32_1 = arith.constant 0 : i32
    return %c0_i32, %c0_i32_0 : i32, i32
  }
  func.func @transform_6(%arg0: i32, %arg1: memref<6xi32, #tpu.memory_space<smem>>) -> (i32, i32) {
    %c0_i32 = arith.constant 0 : i32
    %c0_i32_0 = arith.constant 0 : i32
    %c0_i32_1 = arith.constant 0 : i32
    return %c0_i32, %c0_i32_0 : i32, i32
  }
  func.func @transform_7(%arg0: i32, %arg1: memref<6xi32, #tpu.memory_space<smem>>) -> (i32, i32) {
    %c0_i32 = arith.constant 0 : i32
    %c0_i32_0 = arith.constant 0 : i32
    %c0_i32_1 = arith.constant 0 : i32
    return %c0_i32, %c0_i32_0 : i32, i32
  }
  func.func @transform_8(%arg0: i32, %arg1: memref<6xi32, #tpu.memory_space<smem>>) -> (i32, i32) {
    %c0_i32 = arith.constant 0 : i32
    %c0_i32_0 = arith.constant 0 : i32
    %c0_i32_1 = arith.constant 0 : i32
    return %c0_i32, %c0_i32_0 : i32, i32
  }
  func.func @transform_9(%arg0: i32, %arg1: memref<6xi32, #tpu.memory_space<smem>>) -> (i32, i32) {
    %c0_i32 = arith.constant 0 : i32
    %c0_i32_0 = arith.constant 0 : i32
    %c0_i32_1 = arith.constant 0 : i32
    return %c0_i32, %c0_i32_0 : i32, i32
  }
  func.func @transform_10(%arg0: i32, %arg1: memref<6xi32, #tpu.memory_space<smem>>) -> (i32, i32) {
    %c0_i32 = arith.constant 0 : i32
    %c0_i32_0 = arith.constant 0 : i32
    %c0_i32_1 = arith.constant 0 : i32
    return %c0_i32, %c0_i32_0 : i32, i32
  }
  func.func @transform_11(%arg0: i32, %arg1: memref<6xi32, #tpu.memory_space<smem>>) -> (i32, i32) {
    %c0_i32 = arith.constant 0 : i32
    %c0_i32_0 = arith.constant 0 : i32
    %c0_i32_1 = arith.constant 0 : i32
    return %c0_i32, %c0_i32_0 : i32, i32
  }
  func.func @transform_12(%arg0: i32, %arg1: memref<6xi32, #tpu.memory_space<smem>>) -> (i32, i32) {
    %c0_i32 = arith.constant 0 : i32
    %c0_i32_0 = arith.constant 0 : i32
    %c0_i32_1 = arith.constant 0 : i32
    return %c0_i32, %c0_i32_0 : i32, i32
  }
  func.func @transform_13(%arg0: i32, %arg1: memref<6xi32, #tpu.memory_space<smem>>) -> (i32, i32) {
    %c0_i32 = arith.constant 0 : i32
    %c0_i32_0 = arith.constant 0 : i32
    %c0_i32_1 = arith.constant 0 : i32
    return %c0_i32, %c0_i32_0 : i32, i32
  }
  func.func @transform_14(%arg0: i32, %arg1: memref<6xi32, #tpu.memory_space<smem>>) -> (i32, i32) {
    %c0_i32 = arith.constant 0 : i32
    %c0_i32_0 = arith.constant 0 : i32
    %c0_i32_1 = arith.constant 0 : i32
    return %c0_i32, %c0_i32_0 : i32, i32
  }
  func.func @transform_15(%arg0: i32, %arg1: memref<6xi32, #tpu.memory_space<smem>>) -> (i32, i32) {
    %c0_i32 = arith.constant 0 : i32
    %c0_i32_0 = arith.constant 0 : i32
    %c0_i32_1 = arith.constant 0 : i32
    return %c0_i32, %c0_i32_0 : i32, i32
  }
}

</mosaic_0001>

<bundles_post_ra>
// kernel: tpu_custom_call.1
= control target key start
LH: loop header
LB: loop body
LE: loop exit
PB: predicated region body
PF: predicated region fallthrough
CT: control target
= control target key end

     0   :  { %s4982_s21 = smov [#allocation3]   ;;  %s5585_s0 = inlined_call_operand.hbm [shape: s32[6], index: 0, kind: input, shape index: {}]   ;;  %s5586_s1 = inlined_call_operand.hbm [shape: bf16[16,256], index: 1, kind: input, shape index: {}]   ;;  %s5587_s2 = inlined_call_operand.hbm [shape: bf16[256,384], index: 2, kind: input, shape index: {}]   ;;  %s5588_s3 = inlined_call_operand.hbm [shape: bf16[384,256], index: 3, kind: input, shape index: {}]   ;;  %s5589_s4 = inlined_call_operand.hbm [shape: bf16[256,128], index: 4, kind: input, shape index: {}]   ;;  %s5590_s5 = inlined_call_operand.vmem [shape: bf16[128,32], index: 5, kind: input, shape index: {}]   ;;  %s5591_s6 = inlined_call_operand.hbm [shape: bf16[32,512], index: 6, kind: input, shape index: {}]   ;;  %s5592_s7 = inlined_call_operand.hbm [shape: bf16[32,512], index: 7, kind: input, shape index: {}]   ;;  %s5593_s8 = inlined_call_operand.hbm [shape: bf16[32,128], index: 8, kind: input, shape index: {}]   ;;  %s5594_s9 = inlined_call_operand.vmem [shape: bf16[128,256], index: 9, kind: input, shape index: {}]   ;;  %s5595_s10 = inlined_call_operand.hbm [shape: bf16[256,384], index: 10, kind: input, shape index: {}]   ;;  %s5596_s11 = inlined_call_operand.hbm [shape: bf16[384,256], index: 11, kind: input, shape index: {}]   ;;  %s5597_s12 = inlined_call_operand.vmem [shape: bf16[48,16], index: 12, kind: input, shape index: {}]   ;;  %s5598_s13 = inlined_call_operand.hbm [shape: bf16[16,48], index: 13, kind: input, shape index: {}]   ;;  %s5599_s14 = inlined_call_operand.hbm [shape: f32[1,2432], index: 14, kind: input, shape index: {}]   ;;  %s5600_s15 = inlined_call_operand.vmem [shape: f32[2,32], index: 15, kind: input, shape index: {}]   ;;  %s5601_s16 = inlined_call_operand.hbm [shape: f32[16,256], index: 16, kind: output, shape index: {}]  }
   0x1   :  { %5603 = sst [smem:[#allocation31_spill]] %s5585_s0 }
   0x2   :  { %5604 = sst [smem:[#allocation32_spill]] %s5594_s9 }
   0x3   :  { %s5605_s9 = sld [smem:[#allocation31_spill]] }
   0x9   :  { %22 = dma.hbm_to_smem %s5605_s9, 16, %s4982_s21, [#allocation2] }
   0xa   :  { %4966 = dma.done.wait [#allocation2], 16 }
   0xb   :  { %4967 = vsyncadd [#allocation2], 4294967280 }
   0xc   :  { %24 = sfence }
   0xd   :  { %25 = vsyncpa [#allocation5], 0 }
   0xe   :  { %26 = vsyncpa [#allocation8], 0 }
   0xf   :  { %27 = vsyncpa [#allocation11], 0 }
  0x10   :  { %28 = vsyncpa [#allocation14], 0 }
  0x11   :  { %29 = vsyncpa [#allocation17], 0 }
  0x12   :  { %30 = vsyncpa [#allocation20], 0 }
  0x13   :  { %31 = vsyncpa [#allocation6], 0  ;;  %s4983_s24 = smov [#allocation7]  }
  0x14   :  { %s49_s25 = sshll.u32 %s4983_s24, 4  ;;  %s50_s25 = int_to_ptr.vmem [resolvable:$true] %s49_s25 }
  0x15   :  { %s4734_s26 = scalar_lea.vmem %s50_s25, 6144  ;;  %p4739_p1 = scmp.lt.s32.totalorder %s50_s25, %s50_s25 }
  0x16   :  { %p4735_p0 = scmp.ne.s32.totalorder %s50_s25, %s4734_s26  ;;  %p4740_p2 = scmp.lt.s32.totalorder %s4734_s26, %s4734_s26 }
  0x18   :  { %p4741_p3 = por %p4740_p2, %p4739_p1 }
  0x1a   :  { %p4742_p4 = pnand %p4741_p3, %p4735_p0 }
  0x1c   :  { %4745 = shalt.err (!%p4742_p4)
}
  0x1d   :  { %s4984_s9 = smov 192   ;;  %s4985_s27 = smov 12  }
  0x1e   :  { %55 = dma.hbm_to_vmem [thread:$0]  %s5587_s2, 6144, %s50_s25, [#allocation8], %s4984_s9, %s4984_s9, %s4985_s27  }
  0x1f   :  { %s4986_s30 = smov [#allocation10]  }
  0x20   :  { %s73_s0 = sshll.u32 %s4986_s30, 4  ;;  %s74_s0 = int_to_ptr.vmem [resolvable:$true] %s73_s0 }
  0x21   :  { %s4754_s17 = scalar_lea.vmem %s74_s0, 2048  ;;  %p4759_p6 = scmp.lt.s32.totalorder %s74_s0, %s74_s0 }
  0x22   :  { %p4755_p5 = scmp.ne.s32.totalorder %s74_s0, %s4754_s17  ;;  %p4760_p7 = scmp.lt.s32.totalorder %s4754_s17, %s4754_s17 }
  0x24   :  { %p4761_p8 = por %p4760_p7, %p4759_p6 }
  0x26   :  { %p4762_p9 = pnand %p4761_p8, %p4755_p5 }
  0x28   :  { %4765 = shalt.err (!%p4762_p9)
}
  0x29   :  { %s4987_s18 = smov 64   ;;  %s4988_s19 = smov 4  }
  0x2a   :  { %79 = dma.hbm_to_vmem [thread:$0]  %s5589_s4, 2048, %s74_s0, [#allocation11], %s4987_s18, %s4987_s18, %s4988_s19  }
  0x2b   :  { %s4989_s2 = smov [#allocation13]   ;;  %s4990_s23 = smov [#allocation16]  }
  0x2c   :  { %s99_s22 = sshll.u32 %s4989_s2, 4  ;;  %s125_s24 = sshll.u32 %s4990_s23, 4  ;;  %s100_s22 = int_to_ptr.vmem [resolvable:$true] %s99_s22  ;;  %s126_s24 = int_to_ptr.vmem [resolvable:$true] %s125_s24 }
  0x2d   :  { %s4774_s25 = scalar_lea.vmem %s100_s22, 1024  ;;  %p4779_p11 = scmp.lt.s32.totalorder %s100_s22, %s100_s22 }
  0x2e   :  { %p4775_p10 = scmp.ne.s32.totalorder %s100_s22, %s4774_s25  ;;  %p4780_p12 = scmp.lt.s32.totalorder %s4774_s25, %s4774_s25 }
  0x30   :  { %p4781_p13 = por %p4780_p12, %p4779_p11 }
  0x32   :  { %p4782_p0 = pnand %p4781_p13, %p4775_p10 }
  0x34   :  { %4785 = shalt.err (!%p4782_p0)
}
  0x35   :  { %s4991_s26 = smov 256   ;;  %s4992_s28 = smov 16  }
  0x36   :  { %105 = dma.hbm_to_vmem [thread:$0]  %s5592_s7, 1024, %s100_s22, [#allocation14], %s4991_s26, %s4991_s26, %s4992_s28  }
  0x37   :  { %s4794_s30 = scalar_lea.vmem %s126_s24, 6144  ;;  %p4799_p2 = scmp.lt.s32.totalorder %s126_s24, %s126_s24 }
  0x38   :  { %p4795_p1 = scmp.ne.s32.totalorder %s126_s24, %s4794_s30  ;;  %p4800_p3 = scmp.lt.s32.totalorder %s4794_s30, %s4794_s30 }
  0x3a   :  { %p4801_p4 = por %p4800_p3, %p4799_p2 }
  0x3c   :  { %p4802_p5 = pnand %p4801_p4, %p4795_p1 }
  0x3e   :  { %4805 = shalt.err (!%p4802_p5)
}
  0x3f   :  { %131 = dma.hbm_to_vmem [thread:$0]  %s5595_s10, 6144, %s126_s24, [#allocation17], %s4984_s9, %s4984_s9, %s4985_s27  }
  0x40   :  { %s4993_s20 = smov [#allocation19]   ;;  %s4994_s2 = smov [#allocation4]  }
  0x41   :  { %s151_s21 = sshll.u32 %s4993_s20, 4  ;;  %s37_s23 = sshll.u32 %s4994_s2, 4  ;;  %s152_s21 = int_to_ptr.vmem [resolvable:$true] %s151_s21  ;;  %s38_s23 = int_to_ptr.vmem [resolvable:$true] %s37_s23 }
  0x42   :  { %s4814_s7 = scalar_lea.vmem %s152_s21, 128  ;;  %p4819_p7 = scmp.lt.s32.totalorder %s152_s21, %s152_s21 }
  0x43   :  { %p4815_p6 = scmp.ne.s32.totalorder %s152_s21, %s4814_s7  ;;  %p4820_p8 = scmp.lt.s32.totalorder %s4814_s7, %s4814_s7 }
  0x45   :  { %p4821_p9 = por %p4820_p8, %p4819_p7 }
  0x47   :  { %p4822_p10 = pnand %p4821_p9, %p4815_p6 }
  0x49   :  { %4825 = shalt.err (!%p4822_p10)
}
  0x4a   :  { %157 = dma.hbm_to_vmem [thread:$0]  %s5598_s13, 128, %s152_s21, [#allocation20], %s4987_s18, %s4987_s18, %s4988_s19  }
  0x4b   :  { %s4834_s10 = scalar_lea.vmem %s38_s23, 256  ;;  %p4839_p12 = scmp.lt.s32.totalorder %s38_s23, %s38_s23 }
  0x4c   :  { %p4835_p11 = scmp.ne.s32.totalorder %s38_s23, %s4834_s10  ;;  %p4840_p13 = scmp.lt.s32.totalorder %s4834_s10, %s4834_s10 }
  0x4e   :  { %p4841_p0 = por %p4840_p13, %p4839_p12 }
  0x50   :  { %p4842_p1 = pnand %p4841_p0, %p4835_p11 }
  0x52   :  { %4845 = shalt.err (!%p4842_p1)
}
  0x53   :  { %s4995_s9 = smov 128   ;;  %s4996_s27 = smov 8  }
  0x54   :  { %43 = dma.hbm_to_vmem [thread:$0]  %s5586_s1, 256, %s38_s23, [#allocation5], %s4995_s9, %s4995_s9, %s4996_s27  }
  0x55   :  { %s4997_s4 = smov [#allocation9]   ;;  %s4998_s0 = smov [#allocation12]  }
  0x56   :  { %s61_s30 = sshll.u32 %s4997_s4, 4  ;;  %s87_s13 = sshll.u32 %s4998_s0, 4  ;;  %s62_s30 = int_to_ptr.vmem [resolvable:$true] %s61_s30  ;;  %s88_s13 = int_to_ptr.vmem [resolvable:$true] %s87_s13 }
  0x57   :  { %s4854_s17 = scalar_lea.vmem %s62_s30, 6144  ;;  %p4859_p3 = scmp.lt.s32.totalorder %s62_s30, %s62_s30 }
  0x58   :  { %p4855_p2 = scmp.ne.s32.totalorder %s62_s30, %s4854_s17  ;;  %p4860_p4 = scmp.lt.s32.totalorder %s4854_s17, %s4854_s17 }
  0x5a   :  { %p4861_p5 = por %p4860_p4, %p4859_p3 }
  0x5c   :  { %p4862_p6 = pnand %p4861_p5, %p4855_p2 }
  0x5e   :  { %4865 = shalt.err (!%p4862_p6)
}
  0x5f   :  { %67 = dma.hbm_to_vmem [thread:$0]  %s5588_s3, 6144, %s62_s30, [#allocation8], %s4995_s9, %s4995_s9, %s4996_s27  }
  0x60   :  { %s4874_s1 = scalar_lea.vmem %s88_s13, 1024  ;;  %p4879_p8 = scmp.lt.s32.totalorder %s88_s13, %s88_s13 }
  0x61   :  { %p4875_p7 = scmp.ne.s32.totalorder %s88_s13, %s4874_s1  ;;  %p4880_p9 = scmp.lt.s32.totalorder %s4874_s1, %s4874_s1 }
  0x63   :  { %p4881_p10 = por %p4880_p9, %p4879_p8 }
  0x65   :  { %p4882_p11 = pnand %p4881_p10, %p4875_p7 }
  0x67   :  { %4885 = shalt.err (!%p4882_p11)
}
  0x68   :  { %93 = dma.hbm_to_vmem [thread:$0]  %s5591_s6, 1024, %s88_s13, [#allocation11], %s4991_s26, %s4991_s26, %s4992_s28  }
  0x69   :  { %s4999_s7 = smov [#allocation15]   ;;  %s5000_s25 = smov [#allocation18]  }
  0x6a   :  { %s111_s22 = sshll.u32 %s4999_s7, 4  ;;  %s137_s10 = sshll.u32 %s5000_s25, 4  ;;  %s112_s22 = int_to_ptr.vmem [resolvable:$true] %s111_s22  ;;  %s138_s10 = int_to_ptr.vmem [resolvable:$true] %s137_s10 }
  0x6b   :  { %s4894_s3 = scalar_lea.vmem %s112_s22, 256  ;;  %p4899_p13 = scmp.lt.s32.totalorder %s112_s22, %s112_s22 }
  0x6c   :  { %p4895_p12 = scmp.ne.s32.totalorder %s112_s22, %s4894_s3  ;;  %p4900_p0 = scmp.lt.s32.totalorder %s4894_s3, %s4894_s3 }
  0x6e   :  { %p4901_p1 = por %p4900_p0, %p4899_p13 }
  0x70   :  { %p4902_p2 = pnand %p4901_p1, %p4895_p12 }
  0x72   :  { %4905 = shalt.err (!%p4902_p2)
}
  0x73   :  { %117 = dma.hbm_to_vmem [thread:$0]  %s5593_s8, 256, %s112_s22, [#allocation14], %s4987_s18, %s4987_s18, %s4988_s19  }
  0x74   :  { %s4914_s6 = scalar_lea.vmem %s138_s10, 6144  ;;  %p4919_p4 = scmp.lt.s32.totalorder %s138_s10, %s138_s10 }
  0x75   :  { %p4915_p3 = scmp.ne.s32.totalorder %s138_s10, %s4914_s6  ;;  %p4920_p5 = scmp.lt.s32.totalorder %s4914_s6, %s4914_s6 }
  0x77   :  { %p4921_p6 = por %p4920_p5, %p4919_p4 }
  0x79   :  { %p4922_p7 = pnand %p4921_p6, %p4915_p3 }
  0x7b   :  { %4925 = shalt.err (!%p4922_p7)
}
  0x7c   :  { %143 = dma.hbm_to_vmem [thread:$0]  %s5596_s11, 6144, %s138_s10, [#allocation17], %s4995_s9, %s4995_s9, %s4996_s27  }
  0x7d   :  { %s5001_s0 = smov [#allocation21]  }
  0x7e   :  { %s164_s13 = sshll.u32 %s5001_s0, 4  ;;  %s165_s13 = int_to_ptr.vmem [resolvable:$true] %s164_s13 }
  0x7f   :  { %s4934_s17 = scalar_lea.vmem %s165_s13, 304  ;;  %s4938_s8 = scalar_lea.vmem %s165_s13, 320 }
  0x80   :  { %p4935_p8 = scmp.ne.s32.totalorder %s165_s13, %s4934_s17  ;;  %p4939_p9 = scmp.lt.s32.totalorder %s165_s13, %s165_s13 }
  0x81   :  { %p4940_p10 = scmp.lt.s32.totalorder %s4938_s8, %s4934_s17 }
  0x83   :  { %p4941_p11 = por %p4940_p10, %p4939_p9 }
  0x85   :  { %p4942_p12 = pnand %p4941_p11, %p4935_p8 }
  0x87   :  { %4945 = shalt.err (!%p4942_p12)
}
  0x88   :  { %167 = dma.hbm_to_vmem [thread:$0]  %s5599_s14, 304, %s165_s13, [#allocation20]  }
  0x89   :  { %4968 = dma.done.wait [#allocation5], 256  }
  0x8a   :  { %4969 = vsyncadd [#allocation5], 4294967040 }
  0x8b   :  { %4970 = dma.done.wait [#allocation8], 12288  }
  0x8c   :  { %4971 = vsyncadd [#allocation8], 4294955008 }
  0x8d   :  { %4972 = dma.done.wait [#allocation11], 3072  }
  0x8e   :  { %4973 = vsyncadd [#allocation11], 4294964224 }
  0x8f   :  { %4974 = dma.done.wait [#allocation14], 1280  }
  0x90   :  { %4975 = vsyncadd [#allocation14], 4294966016 }
  0x91   :  { %4976 = dma.done.wait [#allocation17], 12288  }
  0x92   :  { %4977 = vsyncadd [#allocation17], 4294955008 }
  0x93   :  { %4978 = dma.done.wait [#allocation20], 432  }
  0x94   :  { %4979 = vsyncadd [#allocation20], 4294966864  ;;  %v4305_v0 = vld [vmem:[#allocation7 + $0xac] ss:$12 sps:$4 sm:$0xff]   ;;  %v4307_v1 = vld [vmem:[#allocation7 + $0xa8] ss:$12 sps:$4 sm:$0xff]  }
  0x95   :  { %561 = vmatprep.subr.bf16.mxu0 %v4305_v0  ;;  %v4308_v2 = vld [vmem:[#allocation7 + $0x94] ss:$12 sps:$4 sm:$0xff]   ;;  %v4310_v3 = vld [vmem:[#allocation7 + $0x90] ss:$12 sps:$4 sm:$0xff]   ;;  %v4313_v5 = vld [vmem:[#allocation7 + $0x78] ss:$12 sps:$4 sm:$0xff]  }
  0x96   :  { %562 = vmatpush1.bf16.msra.mxu0 %v4307_v1  ;;  %v4311_v4 = vld [vmem:[#allocation7 + $0x7c] ss:$12 sps:$4 sm:$0xff]   ;;  %v4314_v6 = vld [vmem:[#allocation7 + $0x64] ss:$12 sps:$4 sm:$0xff]   ;;  %v4316_v9 = vld [vmem:[#allocation7 + $0x60] ss:$12 sps:$4 sm:$0xff]  }
  0x97   :  { %563 = vmatprep.subr.bf16.mxu0 %v4308_v2  ;;  %v4323_v7 = vld [vmem:[#allocation7 + $0x170] ss:$12 sps:$4 sm:$0xff]   ;;  %v4317_v10 = vld [vmem:[#allocation7 + $0x4c] ss:$12 sps:$4 sm:$0xff]   ;;  %v4319_v13 = vld [vmem:[#allocation7 + $0x48] ss:$12 sps:$4 sm:$0xff]  }
  0x98   :  { %v4324_v8 = vld [vmem:[#allocation7 + $0xb0] ss:$12 sps:$4 sm:$0xff]   ;;  %4143 = vmatprep.subr.bf16.mxu1 %v4323_v7  ;;  %v4328_v11 = vld [vmem:[#allocation7 + $0x158] ss:$12 sps:$4 sm:$0xff]   ;;  %v4320_v14 = vld [vmem:[#allocation7 + $0x34] ss:$12 sps:$4 sm:$0xff]  }
  0x99   :  { %4144 = vmatpush3.bf16.msra.mxu1 %v4324_v8  ;;  %v4329_v12 = vld [vmem:[#allocation7 + $0x98] ss:$12 sps:$4 sm:$0xff]   ;;  %v4333_v15 = vld [vmem:[#allocation7 + $0x140] ss:$12 sps:$4 sm:$0xff]   ;;  %v4322_v17 = vld [vmem:[#allocation7 + $0x30] ss:$12 sps:$4 sm:$0xff]  }
  0x9a   :  { %564 = vmatpush1.bf16.msra.mxu0 %v4310_v3  ;;  %4145 = vmatprep.subr.bf16.mxu1 %v4328_v11  ;;  %v4334_v16 = vld [vmem:[#allocation7 + $0x80] ss:$12 sps:$4 sm:$0xff]   ;;  %v4338_v18 = vld [vmem:[#allocation7 + $0x128] ss:$12 sps:$4 sm:$0xff]   ;;  %v4327_v21 = vld [vmem:[#allocation7 + $0x18] ss:$12 sps:$4 sm:$0xff]  }
  0x9b   :  { %565 = vmatprep.subr.bf16.mxu0 %v4311_v4  ;;  %v4339_v19 = vld [vmem:[#allocation7 + $0x68] ss:$12 sps:$4 sm:$0xff]   ;;  %v4343_v22 = vld [vmem:[#allocation7 + $0x110] ss:$12 sps:$4 sm:$0xff]   ;;  %v4348_v25 = vld [vmem:[#allocation7 + $0xf8] ss:$12 sps:$4 sm:$0xff]  }
  0x9c   :  { %v4325_v20 = vld [vmem:[#allocation7 + $0x1c] ss:$12 sps:$4 sm:$0xff]   ;;  %v4330_v24 = vld [vmem:[#allocation7 + $0x4] ss:$12 sps:$4 sm:$0xff]   ;;  %v4332_v26 = vld [vmem:[#allocation7] ss:$12 sps:$4 sm:$0xff]  }
  0x9d   :  { %4146 = vmatpush3.bf16.msra.mxu1 %v4329_v12  ;;  %v4344_v23 = vld [vmem:[#allocation7 + $0x50] ss:$12 sps:$4 sm:$0xff]   ;;  %v4335_v27 = vld [vmem:[#allocation7 + $0x16c] ss:$12 sps:$4 sm:$0xff]   ;;  %v4337_v30 = vld [vmem:[#allocation7 + $0x168] ss:$12 sps:$4 sm:$0xff]  }
  0x9e   :  { %566 = vmatpush1.bf16.msra.mxu0 %v4313_v5  ;;  %4147 = vmatprep.subr.bf16.mxu1 %v4333_v15  ;;  %v4349_v28 = vld [vmem:[#allocation7 + $0x38] ss:$12 sps:$4 sm:$0xff]   ;;  %v4353_v29 = vld [vmem:[#allocation7 + $0xe0] ss:$12 sps:$4 sm:$0xff]   ;;  %v4358_v33 = vld [vmem:[#allocation7 + $0xc8] ss:$12 sps:$4 sm:$0xff]  }
  0x9f   :  { %567 = vmatprep.subr.bf16.mxu0 %v4314_v6  ;;  %v4340_v31 = vld [vmem:[#allocation7 + $0x154] ss:$12 sps:$4 sm:$0xff]   ;;  %v4342_v34 = vld [vmem:[#allocation7 + $0x150] ss:$12 sps:$4 sm:$0xff]   ;;  %v4347_v38 = vld [vmem:[#allocation7 + $0x138] ss:$12 sps:$4 sm:$0xff]  }
  0xa0   :  { %v4354_v32 = vld [vmem:[#allocation7 + $0x20] ss:$12 sps:$4 sm:$0xff]   ;;  %v4359_v35 = vld [vmem:[#allocation7 + $0x8] ss:$12 sps:$4 sm:$0xff]   ;;  %v4362_v39 = vld [vmem:[#allocation4] ss:$8 sps:$4 sm:$0xff]  }
  0xa1   :  { %4148 = vmatpush3.bf16.msra.mxu1 %v4334_v16  ;;  %v4364_v36 = vld [vmem:[#allocation4 + $0x4] ss:$8 sps:$4 sm:$0xff]   ;;  %v4372_v40 = vld [vmem:[#allocation9 + $0x70] ss:$8 sps:$4 sm:$0xff]   ;;  %v4377_v43 = vld [vmem:[#allocation9 + $0x64] ss:$8 sps:$4 sm:$0xff]  }
  0xa2   :  { %568 = vmatpush1.bf16.msra.mxu0 %v4316_v9  ;;  %4149 = vmatprep.subr.bf16.mxu1 %v4338_v18  ;;  %v4345_v37 = vld [vmem:[#allocation7 + $0x13c] ss:$12 sps:$4 sm:$0xff]   ;;  %v4350_v42 = vld [vmem:[#allocation7 + $0x124] ss:$12 sps:$4 sm:$0xff]   ;;  %v4352_v44 = vld [vmem:[#allocation7 + $0x120] ss:$12 sps:$4 sm:$0xff]  }
  0xa3   :  { %569 = vmatprep.subr.bf16.mxu0 %v4317_v10  ;;  %636 = vmatprep.mubr.bf16.mxu1 %v4364_v36  ;;  %v4374_v41 = vld [vmem:[#allocation9 + $0x74] ss:$8 sps:$4 sm:$0xff]   ;;  %v4355_v45 = vld [vmem:[#allocation7 + $0x10c] ss:$12 sps:$4 sm:$0xff]   ;;  %v4375_v46 = vld [vmem:[#allocation9 + $0x60] ss:$8 sps:$4 sm:$0xff]  }
  0xa4   :  { %593 = vmatprep.mubr.bf16.mxu0 %v4364_v36  ;;  %v4380_v47 = vld [vmem:[#allocation9 + $0x54] ss:$8 sps:$4 sm:$0xff]   ;;  %v4378_v50 = vld [vmem:[#allocation9 + $0x50] ss:$8 sps:$4 sm:$0xff]   ;;  %v4383_v51 = vld [vmem:[#allocation9 + $0x44] ss:$8 sps:$4 sm:$0xff]   ;;  %v280_v36 = vlaneseq }
  0xa5   :  { %4150 = vmatpush3.bf16.msra.mxu1 %v4339_v19  ;;  %v4357_v48 = vld [vmem:[#allocation7 + $0x108] ss:$12 sps:$4 sm:$0xff]   ;;  %v4365_v52 = vld [vmem:[#allocation7 + $0xf0] ss:$12 sps:$4 sm:$0xff]   ;;  %v4368_v56 = vld [vmem:[#allocation7 + $0xd8] ss:$12 sps:$4 sm:$0xff]  }
  0xa6   :  { %570 = vmatpush1.bf16.msra.mxu0 %v4319_v13  ;;  %4151 = vmatprep.subr.bf16.mxu1 %v4343_v22  ;;  %v4360_v49 = vld [vmem:[#allocation7 + $0xf4] ss:$12 sps:$4 sm:$0xff]   ;;  %v4366_v53 = vld [vmem:[#allocation7 + $0xdc] ss:$12 sps:$4 sm:$0xff]   ;;  %v4369_v57 = vld [vmem:[#allocation7 + $0xc4] ss:$12 sps:$4 sm:$0xff]  }
  0xa7   :  { %571 = vmatprep.subr.bf16.mxu0 %v4320_v14  ;;  %v4381_v54 = vld [vmem:[#allocation9 + $0x40] ss:$8 sps:$4 sm:$0xff]   ;;  %v4386_v55 = vld [vmem:[#allocation9 + $0x34] ss:$8 sps:$4 sm:$0xff]   ;;  %v4384_v58 = vld [vmem:[#allocation9 + $0x30] ss:$8 sps:$4 sm:$0xff]  }
  0xa8   :  { %v4389_v59 = vld [vmem:[#allocation9 + $0x24] ss:$8 sps:$4 sm:$0xff]   ;;  %v4387_v61 = vld [vmem:[#allocation9 + $0x20] ss:$8 sps:$4 sm:$0xff]   ;;  %v4392_v62 = vld [vmem:[#allocation9 + $0x174] ss:$8 sps:$4 sm:$0xff]  }
  0xa9   :  { %4152 = vmatpush3.bf16.msra.mxu1 %v4344_v23  ;;  %v4371_v60 = vld [vmem:[#allocation7 + $0xc0] ss:$12 sps:$4 sm:$0xff]   ;;  %v4395_v63 = vld [vmem:[#allocation9 + $0x14] ss:$8 sps:$4 sm:$0xff]   ;;  %v4390_v0 = vld [vmem:[#allocation9 + $0x170] ss:$8 sps:$4 sm:$0xff]  }
  0xaa   :  { %572 = vmatpush1.bf16.msra.mxu0 %v4322_v17  ;;  %4153 = vmatprep.subr.bf16.mxu1 %v4348_v25  ;;  %v4393_v1 = vld [vmem:[#allocation9 + $0x10] ss:$8 sps:$4 sm:$0xff]   ;;  %v4398_v2 = vld [vmem:[#allocation9 + $0x164] ss:$8 sps:$4 sm:$0xff]   ;;  %v4396_v4 = vld [vmem:[#allocation9 + $0x160] ss:$8 sps:$4 sm:$0xff]  }
  0xab   :  { %573 = vmatprep.subr.bf16.mxu0 %v4325_v20  ;;  %v4401_v3 = vld [vmem:[#allocation9 + $0x4] ss:$8 sps:$4 sm:$0xff]   ;;  %v4399_v5 = vld [vmem:[#allocation9] ss:$8 sps:$4 sm:$0xff]   ;;  %v4404_v6 = vld [vmem:[#allocation9 + $0x154] ss:$8 sps:$4 sm:$0xff]  }
  0xac   :  { %v4407_v7 = vld [vmem:[#allocation9 + $0xf4] ss:$8 sps:$4 sm:$0xff]   ;;  %v4402_v8 = vld [vmem:[#allocation9 + $0x150] ss:$8 sps:$4 sm:$0xff]   ;;  %v4410_v10 = vld [vmem:[#allocation9 + $0x144] ss:$8 sps:$4 sm:$0xff]  }
  0xad   :  { %4154 = vmatpush3.bf16.msra.mxu1 %v4349_v28  ;;  %v4405_v9 = vld [vmem:[#allocation9 + $0xf0] ss:$8 sps:$4 sm:$0xff]   ;;  %v4413_v11 = vld [vmem:[#allocation9 + $0xe4] ss:$8 sps:$4 sm:$0xff]   ;;  %v4408_v12 = vld [vmem:[#allocation9 + $0x140] ss:$8 sps:$4 sm:$0xff]  }
  0xae   :  { %574 = vmatpush1.bf16.msra.mxu0 %v4327_v21  ;;  %4155 = vmatprep.subr.bf16.mxu1 %v4353_v29  ;;  %v4411_v13 = vld [vmem:[#allocation9 + $0xe0] ss:$8 sps:$4 sm:$0xff]   ;;  %v4416_v14 = vld [vmem:[#allocation9 + $0x134] ss:$8 sps:$4 sm:$0xff]   ;;  %v4414_v15 = vld [vmem:[#allocation9 + $0x130] ss:$8 sps:$4 sm:$0xff]  }
  0xaf   :  { %575 = vmatprep.subr.bf16.mxu0 %v4330_v24  ;;  %v4417_v16 = vld [vmem:[#allocation9 + $0xd0] ss:$8 sps:$4 sm:$0xff]   ;;  %v4419_v17 = vld [vmem:[#allocation9 + $0xd4] ss:$8 sps:$4 sm:$0xff]   ;;  %v4420_v18 = vld [vmem:[#allocation9 + $0x120] ss:$8 sps:$4 sm:$0xff]  }
  0xb0   :  { %v4422_v19 = vld [vmem:[#allocation9 + $0x124] ss:$8 sps:$4 sm:$0xff]   ;;  %v4423_v20 = vld [vmem:[#allocation9 + $0xc0] ss:$8 sps:$4 sm:$0xff]   ;;  %v4426_v22 = vld [vmem:[#allocation9 + $0x110] ss:$8 sps:$4 sm:$0xff]  }
  0xb1   :  { %4156 = vmatpush3.bf16.msra.mxu1 %v4354_v32  ;;  %v4425_v21 = vld [vmem:[#allocation9 + $0xc4] ss:$8 sps:$4 sm:$0xff]   ;;  %v4428_v23 = vld [vmem:[#allocation9 + $0x114] ss:$8 sps:$4 sm:$0xff]   ;;  %v4429_v24 = vld [vmem:[#allocation9 + $0xb0] ss:$8 sps:$4 sm:$0xff]  }
  0xb2   :  { %576 = vmatpush1.bf16.msra.mxu0 %v4332_v26  ;;  %4157 = vmatprep.subr.bf16.mxu1 %v4358_v33  ;;  %v4431_v25 = vld [vmem:[#allocation9 + $0xb4] ss:$8 sps:$4 sm:$0xff]   ;;  %v4434_v26 = vld [vmem:[#allocation9 + $0x104] ss:$8 sps:$4 sm:$0xff]   ;;  %v4435_v29 = vld [vmem:[#allocation9 + $0xa0] ss:$8 sps:$4 sm:$0xff]  }
  0xb3   :  { %577 = vmatprep.subr.bf16.mxu0 %v4335_v27  ;;  %v4432_v27 = vld [vmem:[#allocation9 + $0x100] ss:$8 sps:$4 sm:$0xff]   ;;  %v4437_v28 = vld [vmem:[#allocation9 + $0xa4] ss:$8 sps:$4 sm:$0xff]   ;;  %v4438_v32 = vld [vmem:[#allocation9 + $0x90] ss:$8 sps:$4 sm:$0xff]  }
  0xb4   :  { %v4443_v33 = vld [vmem:[#allocation9 + $0x84] ss:$8 sps:$4 sm:$0xff]   ;;  %vm5004_vm0 = vmmov 0   ;;  %vm1497_vm1 = vcmask 261120   ;;  %vm1358_vm2 = vcmask 130048   ;;  %s4000_s11 = sld [smem:[#allocation3 + $0x1]] }
  0xb5   :  { %4158 = vmatpush3.bf16.msra.mxu1 %v4359_v35  ;;  %v4444_v35 = vld [vmem:[#allocation10 + $0x78] sm:$0xff]   ;;  %s4010_s14 = sld [smem:[#allocation3 + $0x3]]  ;;  %vm2733_vm9 = vcmask 392192  }
  0xb6   :  { %578 = vmatpush2.bf16.msra.mxu0 %v4337_v30  ;;  %953 = vmatprep.subr.bf16.mxu1 %v4374_v41  ;;  %v5002_v30 = vmov 0   ;;  %s4015_s9 = sld [smem:[#allocation3 + $0x4]] }
  0xb7   :  { %579 = vmatprep.subr.bf16.mxu0 %v4340_v31  ;;  %v4440_v31 = vld [vmem:[#allocation9 + $0x94] ss:$8 sps:$4 sm:$0xff]   ;;  %s4020_s27 = sld [smem:[#allocation3 + $0x5]] }
  0xb8   :  { %637 = vmatmul.mubr.bf16.vlgmr.msra.gmra.mxu1 %v4362_v39  ;;  %s5606_s1 = sld [smem:[#allocation32_spill]] }
  0xb9   :  { %954 = vmatpush1.bf16.msra.mxu1 %v4372_v40 }
  0xba   :  { %580 = vmatpush2.bf16.msra.mxu0 %v4342_v34  ;;  %955 = vmatprep.subr.bf16.mxu1 %v4377_v43  ;;  %v4441_v34 = vld [vmem:[#allocation9 + $0x80] ss:$8 sps:$4 sm:$0xff]  }
  0xbb   :  { %581 = vmatprep.subr.bf16.mxu0 %v4345_v37  ;;  %v5158_v37 = vshrl.u32 %v280_v36, 7 }
  0xbd   :  { %956 = vmatpush1.bf16.msra.mxu1 %v4375_v46 }
  0xbe   :  { %582 = vmatpush2.bf16.msra.mxu0 %v4347_v38  ;;  %957 = vmatprep.subr.bf16.mxu1 %v4380_v47  ;;  %v5161_v38 = vsub.s32 2, %v5158_v37 }
  0xbf   :  { %583 = vmatprep.subr.bf16.mxu0 %v4350_v42 }
  0xc1   :  { %958 = vmatpush1.bf16.msra.mxu1 %v4378_v50 }
  0xc2   :  { %584 = vmatpush2.bf16.msra.mxu0 %v4352_v44  ;;  %959 = vmatprep.subr.bf16.mxu1 %v4383_v51  ;;  %v4445_v51 = vld [vmem:[#allocation10 + $0x38] sm:$0xff]  }
  0xc3   :  { %585 = vmatprep.subr.bf16.mxu0 %v4355_v45 }
  0xc5   :  { %960 = vmatpush1.bf16.msra.mxu1 %v4381_v54  ;;  %v4447_v54 = vld [vmem:[#allocation10 + $0x30] sm:$0xff]  }
  0xc6   :  { %586 = vmatpush2.bf16.msra.mxu0 %v4357_v48  ;;  %961 = vmatprep.subr.bf16.mxu1 %v4386_v55  ;;  %v5165_v55 = vsub.s32 1, %v5158_v37 }
  0xc7   :  { %587 = vmatprep.subr.bf16.mxu0 %v4360_v49 }
  0xc9   :  { %962 = vmatpush1.bf16.msra.mxu1 %v4384_v58 }
  0xca   :  { %588 = vmatpush2.bf16.msra.mxu0 %v4365_v52  ;;  %963 = vmatprep.subr.bf16.mxu1 %v4389_v59 }
  0xcb   :  { %589 = vmatprep.subr.bf16.mxu0 %v4366_v53  ;;  %v4446_v53 = vld [vmem:[#allocation10 + $0x70] sm:$0xff]  }
  0xcd   :  { %964 = vmatpush1.bf16.msra.mxu1 %v4387_v61 }
  0xce   :  { %590 = vmatpush2.bf16.msra.mxu0 %v4368_v56  ;;  %965 = vmatprep.subr.bf16.mxu1 %v4395_v63  ;;  %v5168_v56 = vsub.s32 0, %v5158_v37 }
  0xcf   :  { %591 = vmatprep.subr.bf16.mxu0 %v4369_v57 }
  0xd1   :  { %966 = vmatpush1.bf16.msra.mxu1 %v4393_v1 }
  0xd2   :  { %592 = vmatpush2.bf16.msra.mxu0 %v4371_v60  ;;  %967 = vmatprep.subr.bf16.mxu1 %v4401_v3 }
  0xd3   :  { %996 = vmatprep.subr.bf16.mxu0 %v4392_v62 }
  0xd5   :  { %594 = vmatmul.mubr.bf16.vlgmr.msra.gmra.mxu0 %v4362_v39  ;;  %968 = vmatpush1.bf16.msra.mxu1 %v4399_v5  ;;  %v204_v39 = vld [vmem:[#allocation21] sm:$0x7] }
  0xd6   :  { %997 = vmatpush1.bf16.msra.mxu0 %v4390_v0  ;;  %969 = vmatprep.subr.bf16.mxu1 %v4407_v7  ;;  %v291_v41 = vrot.slane %v204_v39, %v5161_v38  ;;  %v287_v58 = vrot.slane %v204_v39, %v5165_v55  ;;  %v283_v59 = vrot.slane %v204_v39, %v5168_v56 }
  0xd7   :  { %998 = vmatprep.subr.bf16.mxu0 %v4398_v2  ;;  %1028 = vmatprep.mubr.bf16.mxu0 %v5002_v30 }
  0xd9   :  { %970 = vmatpush2.bf16.msra.mxu1 %v4405_v9  ;;  %v4448_v9 = vld [vmem:[#allocation10 + $0x68] sm:$0xff]  }
  0xda   :  { %999 = vmatpush1.bf16.msra.mxu0 %v4396_v4  ;;  %971 = vmatprep.subr.bf16.mxu1 %v4413_v11  ;;  %v4450_v11 = vld [vmem:[#allocation10 + $0x60] sm:$0xff]  }
  0xdb   :  { %1000 = vmatprep.subr.bf16.mxu0 %v4404_v6 }
  0xdd   :  { %972 = vmatpush2.bf16.msra.mxu1 %v4411_v13  ;;  %v4452_v13 = vld [vmem:[#allocation10 + $0x58] sm:$0xff]  }
  0xde   :  { %1001 = vmatpush1.bf16.msra.mxu0 %v4402_v8  ;;  %973 = vmatprep.subr.bf16.mxu1 %v4419_v17  ;;  %v4456_v17 = vld [vmem:[#allocation10 + $0x48] sm:$0xff]  }
  0xdf   :  { %1002 = vmatprep.subr.bf16.mxu0 %v4410_v10  ;;  %v4449_v10 = vld [vmem:[#allocation10 + $0x28] sm:$0xff]  }
  0xe1   :  { %974 = vmatpush2.bf16.msra.mxu1 %v4417_v16  ;;  %v4455_v16 = vld [vmem:[#allocation10 + $0x10] sm:$0xff]  }
  0xe2   :  { %1003 = vmatpush1.bf16.msra.mxu0 %v4408_v12  ;;  %975 = vmatprep.subr.bf16.mxu1 %v4425_v21  ;;  %v4451_v12 = vld [vmem:[#allocation10 + $0x20] sm:$0xff]   ;;  %v4460_v21 = vld [vmem:[%s5590_s5 + $0x38] sm:$0xff]  }
  0xe3   :  { %1004 = vmatprep.subr.bf16.mxu0 %v4416_v14  ;;  %v4453_v14 = vld [vmem:[#allocation10 + $0x18] sm:$0xff]  }
  0xe5   :  { %976 = vmatpush2.bf16.msra.mxu1 %v4423_v20  ;;  %v4459_v20 = vld [vmem:[#allocation10] sm:$0xff]  }
  0xe6   :  { %1005 = vmatpush1.bf16.msra.mxu0 %v4414_v15  ;;  %977 = vmatprep.subr.bf16.mxu1 %v4431_v25  ;;  %v4454_v15 = vld [vmem:[#allocation10 + $0x50] sm:$0xff]  }
  0xe7   :  { %1006 = vmatprep.subr.bf16.mxu0 %v4422_v19  ;;  %v4458_v19 = vld [vmem:[#allocation10 + $0x40] sm:$0xff]   ;;  %v4463_v25 = vld [vmem:[%s5590_s5 + $0x20] sm:$0xff]  }
  0xe9   :  { %978 = vmatpush2.bf16.msra.mxu1 %v4429_v24  ;;  %v4462_v24 = vld [vmem:[%s5590_s5 + $0x28] sm:$0xff]  }
  0xea   :  { %1007 = vmatpush1.bf16.msra.mxu0 %v4420_v18  ;;  %979 = vmatprep.subr.bf16.mxu1 %v4437_v28  ;;  %v4457_v18 = vld [vmem:[#allocation10 + $0x8] sm:$0xff]  }
  0xeb   :  { %1008 = vmatprep.subr.bf16.mxu0 %v4428_v23  ;;  %v4461_v23 = vld [vmem:[%s5590_s5 + $0x30] sm:$0xff]  }
  0xed   :  { %980 = vmatpush2.bf16.msra.mxu1 %v4435_v29 }
  0xee   :  { %1009 = vmatpush1.bf16.msra.mxu0 %v4426_v22  ;;  %981 = vmatprep.subr.bf16.mxu1 %v4440_v31  ;;  %v5003_v22 = vmov 0.0  }
  0xef   :  { %1010 = vmatprep.subr.bf16.mxu0 %v4434_v26 }
  0xf1   :  { %982 = vmatpush2.bf16.msra.mxu1 %v4438_v32 }
  0xf2   :  { %1011 = vmatpush1.bf16.msra.mxu0 %v4432_v27  ;;  %983 = vmatprep.subr.bf16.mxu1 %v4443_v33  ;;  %v205_v27 = vld [vmem:[#allocation21 + $0x3] sm:$0x3] }
  0xf3   :  { %4165 = vmatprep.subr.bf16.mxu0 %v4444_v35  ;;  %v710_v28 = vrot.slane %v205_v27, %v5165_v55  ;;  %v706_v31 = vrot.slane %v205_v27, %v5168_v56 }
  0xf5   :  { %984 = vmatpush2.bf16.msra.mxu1 %v4441_v34 }
  0xf6   :  { %4229 = vmatprep.subr.bf16.mxu1 %v5003_v22 }
 0x178   :  { %v4159_v40 = vpop.f32.mrf.mxu1 }
 0x17a   :  { %v4160_v42 = vpop.f32.mrf.mxu1 }
 0x17b   :  { %v4161_v43 = vadd.f32 %v4160_v42, %v4159_v40 }
 0x17c   :  { %v4162_v44 = vpop.f32.mrf.mxu1 }
 0x17d   :  { %v639_v45 = vadd.f32 %v4161_v43, %v291_v41 }
 0x17e   :  { %v4163_v46 = vpop.f32.mrf.mxu1 }
 0x17f   :  { %v4164_v47 = vadd.f32 %v4163_v46, %v4162_v44  ;;  %v647_v48 = vmax.f32 %v639_v45, 0.0 }
 0x181   :  { %v642_v49 = vadd.f32 %v4164_v47, %v291_v41 }
 0x183   :  { %v650_v50 = vmax.f32 %v642_v49, 0.0 }
 0x185   :  { %v653_v52 = vpack.c.bf16 %v650_v50, %v647_v48 }
 0x187   :  { %1029 = vmatmul.mubr.bf16.vlgmr.msra.gmra.mxu0 %v653_v52 }
 0x188   :  { %4166 = vmatpush3.bf16.msra.mxu0 %v4445_v51 }
 0x189   :  { %4167 = vmatprep.subr.bf16.mxu0 %v4446_v53 }
 0x18c   :  { %4168 = vmatpush3.bf16.msra.mxu0 %v4447_v54  ;;  %v4464_v54 = vld [vmem:[%s5590_s5 + $0x18] sm:$0xff]  }
 0x18d   :  { %4169 = vmatprep.subr.bf16.mxu0 %v4448_v9  ;;  %v5214_v9 = vld [vmem:[#allocation13 + $0x20] ss:$16 sps:$4 sm:$0xff]  }
 0x190   :  { %4170 = vmatpush3.bf16.msra.mxu0 %v4449_v10  ;;  %v5216_v10 = vld [vmem:[#allocation13 + $0x4] ss:$16 sps:$4 sm:$0xff]  }
 0x191   :  { %4171 = vmatprep.subr.bf16.mxu0 %v4450_v11  ;;  %v5220_v11 = vld [vmem:[#allocation13] ss:$16 sps:$4 sm:$0xff]  }
 0x194   :  { %4172 = vmatpush3.bf16.msra.mxu0 %v4451_v12  ;;  %v5225_v12 = vld [vmem:[%s5600_s15] ss:$0 sm:$0xff] }
 0x195   :  { %v595_v57 = vpop.f32.mrf.mxu0  ;;  %4173 = vmatprep.subr.bf16.mxu0 %v4452_v13  ;;  %v5228_v13 = vld [vmem:[#allocation13 + $0x2c] ss:$16 sps:$4 sm:$0xff]  }
 0x196   :  { %v596_v0 = vadd.f32 %v595_v57, %v283_v59  ;;  %v4465_v57 = vld [vmem:[%s5590_s5 + $0x10] sm:$0xff]  }
 0x197   :  { %v597_v60 = vpop.f32.mrf.mxu0 }
 0x198   :  { %v598_v62 = vadd.f32 %v597_v60, %v287_v58  ;;  %v645_v6 = vmax.f32 %v596_v0, 0.0  ;;  %4174 = vmatpush3.bf16.msra.mxu0 %v4453_v14  ;;  %v1448_v14 = vpack.c.bf16 %v5225_v12, %v5225_v12 }
 0x199   :  { %v599_v61 = vpop.f32.mrf.mxu0  ;;  %4175 = vmatprep.subr.bf16.mxu0 %v4454_v15  ;;  %v5234_v15 = vld [vmem:[#allocation13 + $0x28] ss:$16 sps:$4 sm:$0xff]  }
 0x19a   :  { %v600_v63 = vadd.f32 %v599_v61, %v283_v59  ;;  %v646_v4 = vmax.f32 %v598_v62, 0.0  ;;  %v4467_v59 = vld [vmem:[%s5590_s5] sm:$0xff]  }
 0x19b   :  { %v601_v1 = vpop.f32.mrf.mxu0 }
 0x19c   :  { %v602_v2 = vadd.f32 %v601_v1, %v287_v58  ;;  %v648_v3 = vmax.f32 %v600_v63, 0.0  ;;  %4176 = vmatpush3.bf16.msra.mxu0 %v4455_v16  ;;  %v4466_v58 = vld [vmem:[%s5590_s5 + $0x8] sm:$0xff]  }
 0x19d   :  { %4177 = vmatprep.subr.bf16.mxu0 %v4456_v17  ;;  %v3946_v63 = vld [vmem:[#allocation21 + $0x5] ss:$0 sm:$0xff]  ;;  %v5240_v17 = vld [vmem:[#allocation13 + $0x8] ss:$16 sps:$4 sm:$0xff]  }
 0x19e   :  { %v649_v5 = vmax.f32 %v602_v2, 0.0  ;;  %v651_v8 = vpack.c.bf16 %v648_v3, %v645_v6  ;;  %v5236_v16 = vld [vmem:[#allocation13 + $0xc] ss:$16 sps:$4 sm:$0xff]  }
 0x1a0   :  { %v652_v7 = vpack.c.bf16 %v649_v5, %v646_v4  ;;  %4178 = vmatpush3.bf16.msra.mxu0 %v4457_v18  ;;  %v5245_v18 = vld [vmem:[#allocation12 + $0x24] ss:$16 sps:$4 sm:$0xff]  }
 0x1a1   :  { %4179 = vmatprep.subr.bf16.mxu0 %v4458_v19  ;;  %v5247_v19 = vld [vmem:[#allocation12 + $0x20] ss:$16 sps:$4 sm:$0xff]  }
 0x1a2   :  { %985 = vmatprep.mubr.bf16.mxu1 %v652_v7 }
 0x1a3   :  { %986 = vmatmul.mubr.bf16.vlgmr.msra.gmra.mxu1 %v651_v8  ;;  %v5212_v8 = vld [vmem:[#allocation13 + $0x24] ss:$16 sps:$4 sm:$0xff]  }
 0x1a4   :  { %4180 = vmatpush3.bf16.msra.mxu0 %v4459_v20  ;;  %4230 = vmatpush3.bf16.msra.mxu1 %v4460_v21  ;;  %v3963_v20 = vld [vmem:[#allocation21 + $0x6] ss:$0 sm:$0xff] }
 0x1a5   :  { %4249 = vmatprep.subr.bf16.mxu0 %v5003_v22  ;;  %4231 = vmatprep.subr.bf16.mxu1 %v5003_v22 }
 0x1a6   :  { %4245 = vmatprep.mubr.msk.bf16.mxu1 %vm5004_vm0, %v5003_v22 }
 0x1a8   :  { %4232 = vmatpush3.bf16.msra.mxu1 %v4461_v23 }
 0x1a9   :  { %4233 = vmatprep.subr.bf16.mxu1 %v5003_v22 }
 0x1ac   :  { %4234 = vmatpush3.bf16.msra.mxu1 %v4462_v24 }
 0x1ad   :  { %4235 = vmatprep.subr.bf16.mxu1 %v5003_v22 }
 0x1b0   :  { %4236 = vmatpush3.bf16.msra.mxu1 %v4463_v25 }
 0x1b1   :  { %4237 = vmatprep.subr.bf16.mxu1 %v5003_v22 }
 0x1b4   :  { %4238 = vmatpush3.bf16.msra.mxu1 %v4464_v54 }
 0x1b5   :  { %4239 = vmatprep.subr.bf16.mxu1 %v5003_v22 }
 0x1b8   :  { %4240 = vmatpush3.bf16.msra.mxu1 %v4465_v57 }
 0x1b9   :  { %4241 = vmatprep.subr.bf16.mxu1 %v5003_v22 }
 0x1bc   :  { %4242 = vmatpush3.bf16.msra.mxu1 %v4466_v58 }
 0x1bd   :  { %4243 = vmatprep.subr.bf16.mxu1 %v5003_v22 }
 0x1c0   :  { %4244 = vmatpush3.bf16.msra.mxu1 %v4467_v59 }
 0x1c1   :  { %1513 = vmatprep.subr.bf16.mxu1 %v5212_v8 }
 0x247   :  { %v1030_v26 = vpop.f32.mrf.mxu0 }
 0x249   :  { %v1032_v29 = vpop.f32.mrf.mxu0 }
 0x24b   :  { %v1034_v35 = vpop.f32.mrf.mxu0 }
 0x24d   :  { %v1036_v45 = vpop.f32.mrf.mxu0 }
 0x263   :  { %v987_v32 = vpop.f32.mrf.mxu1 }
 0x264   :  { %v988_v36 = vadd.f32 %v987_v32, %v706_v31 }
 0x265   :  { %v989_v33 = vpop.f32.mrf.mxu1 }
 0x266   :  { %v990_v34 = vadd.f32 %v989_v33, %v710_v28  ;;  %v1031_v46 = vadd.f32 %v1030_v26, %v988_v36  ;;  %v4468_v33 = vld [vmem:[%s5597_s12] sm:$0xff]   ;;  %v4485_v36 = vld [vmem:[%s5597_s12 + $0x10] sm:$0xff]  }
 0x267   :  { %v991_v39 = vpop.f32.mrf.mxu1 }
 0x268   :  { %v992_v40 = vadd.f32 %v991_v39, %v706_v31  ;;  %v1033_v42 = vadd.f32 %v1032_v29, %v990_v34  ;;  %v1039_v51 = vmax.f32 %v1031_v46, 0.0  ;;  %v5253_v31 = vld [vmem:[#allocation12 + $0x2c] ss:$16 sps:$4 sm:$0xff]   ;;  %v5258_v34 = vld [vmem:[#allocation12 + $0x28] ss:$16 sps:$4 sm:$0xff]  }
 0x269   :  { %v993_v41 = vpop.f32.mrf.mxu1  ;;  %v5273_v39 = vld [vmem:[#allocation12 + $0x4] ss:$16 sps:$4 sm:$0xff]  }
 0x26a   :  { %v1035_v43 = vadd.f32 %v1034_v35, %v992_v40  ;;  %v994_v44 = vadd.f32 %v993_v41, %v710_v28  ;;  %v1040_v49 = vmax.f32 %v1033_v42, 0.0  ;;  %v4477_v35 = vld [vmem:[%s5597_s12 + $0x8] sm:$0xff]   ;;  %v5277_v41 = vld [vmem:[#allocation12] ss:$16 sps:$4 sm:$0xff]   ;;  %s1435_s12 = sld [smem:[#allocation3]] }
 0x26b   :  { %v5275_v40 = vld [vmem:[#allocation12 + $0xc] ss:$16 sps:$4 sm:$0xff]   ;;  %v5279_v42 = vld [vmem:[#allocation12 + $0x8] ss:$16 sps:$4 sm:$0xff]  }
 0x26c   :  { %v1037_v47 = vadd.f32 %v1036_v45, %v994_v44  ;;  %v1041_v48 = vmax.f32 %v1035_v43, 0.0 }
 0x26e   :  { %v1042_v50 = vmax.f32 %v1037_v47, 0.0  ;;  %v1043_v53 = vpack.c.bf16 %v1041_v48, %v1039_v51 }
 0x270   :  { %v1044_v52 = vpack.c.bf16 %v1042_v50, %v1040_v49  ;;  %v1436_v51 = vstv %s1435_s12 }
 0x271   :  { %vm1437_vm3 = vcmp.ne.s32.totalorder %v1436_v51, 0 }
 0x272   :  { %1211 = vmatprep.mubr.bf16.mxu0 %v1044_v52 }
 0x273   :  { %1212 = vmatmul.mubr.bf16.vlgmr.msra.gmra.mxu0 %v1043_v53 }
 0x274   :  { %4251 = vmatprep.mubr.msk.bf16.mxu0 %vm5004_vm0, %v5003_v22 }
 0x333   :  { %v4181_v60 = vpop.f32.mrf.mxu0 }
 0x335   :  { %v4182_v61 = vpop.f32.mrf.mxu0 }
 0x336   :  { %v4183_v62 = vadd.f32 %v4182_v61, %v4181_v60 }
 0x337   :  { %v4184_v0 = vpop.f32.mrf.mxu0 }
 0x338   :  { %v1214_v2 = vadd.f32 %v4183_v62, %v3946_v63 }
 0x339   :  { %v4185_v1 = vpop.f32.mrf.mxu0 }
 0x33a   :  { %v4186_v3 = vadd.f32 %v4185_v1, %v4184_v0  ;;  %v1220_v5 = vmax.f32 %v1214_v2, 0.0 }
 0x33c   :  { %v1217_v4 = vadd.f32 %v4186_v3, %v3946_v63 }
 0x33e   :  { %v1221_v6 = vmax.f32 %v1217_v4, 0.0  ;;  %v208_v4 = vld [vmem:[#allocation21 + $0x7] sm:$0xf] }
 0x340   :  { %v1222_v7 = vpack.c.bf16 %v1221_v6, %v1220_v5  ;;  %v5311_v5 = vrot.slane %v208_v4, %v5168_v56 }
 0x342   :  { %4246 = vmatmul.mubr.bf16.vlgmr.msra.gmra.mxu1 %v1222_v7 }
 0x343   :  { %1533 = vmatprep.mubr.bf16.mxu1 %v5002_v30  ;;  %1514 = vmatpush1.bf16.msra.mxu1 %v5214_v9 }
 0x344   :  { %1515 = vmatprep.subr.bf16.mxu1 %v5216_v10 }
 0x347   :  { %1516 = vmatpush1.bf16.msra.mxu1 %v5220_v11 }
 0x348   :  { %1554 = vmatprep.subr.bf16.mxu1 %v5228_v13 }
 0x34a   :  { %3988 = vmatmul.mubr.msk.bf16.vlgmr.msra.gmra.mxu1 %vm1497_vm1, %v1448_v14 }
 0x34b   :  { %1555 = vmatpush1.bf16.msra.mxu1 %v5234_v15  ;;  %1574 = vmatprep.mubr.bf16.mxu1 %v5002_v30 }
 0x34c   :  { %1556 = vmatprep.subr.bf16.mxu1 %v5236_v16 }
 0x34f   :  { %1557 = vmatpush1.bf16.msra.mxu1 %v5240_v17 }
 0x350   :  { %1638 = vmatprep.subr.bf16.mxu1 %v5245_v18 }
 0x352   :  { %3989 = vmatmul.mubr.msk.bf16.vlgmr.msra.gmra.mxu1 %vm1497_vm1, %v1448_v14  ;;  %v5314_v14 = vrot.slane %v208_v4, %v5165_v55 }
 0x353   :  { %1639 = vmatpush1.bf16.msra.mxu1 %v5247_v19  ;;  %1658 = vmatprep.mubr.bf16.mxu1 %v5002_v30 }
 0x354   :  { %1640 = vmatprep.subr.bf16.mxu1 %v5273_v39 }
 0x357   :  { %1641 = vmatpush1.bf16.msra.mxu1 %v5277_v41 }
 0x358   :  { %1769 = vmatprep.subr.bf16.mxu1 %v5212_v8 }
 0x402   :  { %v1327_v21 = vpop.f32.mrf.mxu1 }
 0x403   :  { %v1328_v24 = vadd.f32 %v3963_v20, %v1327_v21 }
 0x404   :  { %v4247_v23 = vpop.f32.mrf.mxu1 }
 0x405   :  { %v1334_v28 = vmax.f32 %v1328_v24, 0.0  ;;  %v5317_v23 = vrot.slane %v208_v4, %v5161_v38 }
 0x406   :  { %v1330_v25 = vpop.f32.mrf.mxu1 }
 0x407   :  { %v1331_v26 = vadd.f32 %v3963_v20, %v1330_v25 }
 0x408   :  { %v4248_v27 = vpop.f32.mrf.mxu1 }
 0x409   :  { %v1335_v29 = vmax.f32 %v1331_v26, 0.0 }
 0x40a   :  { %v1535_v43 = vpop.f32.mrf.mxu1 }
 0x40b   :  { %v1342_v32 = vpack.c.bf16 %v1335_v29, %v1334_v28 }
 0x40c   :  { %v1537_v44 = vpop.f32.mrf.mxu1 }
 0x40d   :  { %4250 = vmatpush3.bf16.msra.mxu0 %v1342_v32 }
 0x40e   :  { %1679 = vmatprep.subr.bf16.mxu0 %v5253_v31  ;;  %v1539_v45 = vpop.f32.mrf.mxu1 }
 0x410   :  { %4252 = vmatmul.mubr.msk.bf16.vlgmr.msra.gmra.mxu0 %vm1358_vm2, %v4468_v33  ;;  %v1540_v46 = vpop.f32.mrf.mxu1 }
 0x411   :  { %4255 = vmatprep.mubr.msk.bf16.mxu0 %vm5004_vm0, %v5003_v22  ;;  %1680 = vmatpush1.bf16.msra.mxu0 %v5258_v34 }
 0x412   :  { %1681 = vmatprep.subr.bf16.mxu0 %v5275_v40  ;;  %v1576_v47 = vpop.f32.mrf.mxu1 }
 0x414   :  { %v1578_v48 = vpop.f32.mrf.mxu1 }
 0x415   :  { %1682 = vmatpush1.bf16.msra.mxu0 %v5279_v42 }
 0x416   :  { %1810 = vmatprep.subr.bf16.mxu0 %v5228_v13  ;;  %v1580_v49 = vpop.f32.mrf.mxu1 }
 0x418   :  { %4256 = vmatmul.mubr.msk.bf16.gmra.mxu0 %vm1358_vm2, %v4477_v35  ;;  %v1581_v50 = vpop.f32.mrf.mxu1 }
 0x419   :  { %4259 = vmatprep.mubr.msk.bf16.mxu0 %vm5004_vm0, %v5003_v22 }
 0x420   :  { %4260 = vmatmul.mubr.msk.bf16.gmra.mxu0 %vm1358_vm2, %v4485_v36  ;;  %v1723_v36 = vsub.s32 3, %v5158_v37 }
 0x421   :  { %1699 = vmatprep.mubr.bf16.mxu0 %v5002_v30 }
 0x422   :  { %v5323_v45 = vrot.slane %v208_v4, %v1723_v36  ;;  %v1749_v4 = vstv %s4000_s11 }
 0x423   :  { %vm1750_vm4 = vcmp.ne.s32.totalorder %v1749_v4, 0 }
 0x4d0   :  { %v1402_v52 = vpop.f32.mrf.mxu0 }
 0x4d1   :  { %v1438_v53 = vsel %vm1437_vm3, %v1402_v52, %v5225_v12  ;;  %v3979_v52 = vld [vmem:[%s5600_s15 + $0x1] ss:$0 sm:$0xff]  ;;  %s4005_s15 = sld [smem:[#allocation3 + $0x2]] }
 0x4d2   :  { %v1439_v54 = vpack.c.bf16 %v1438_v53, %v1438_v53  ;;  %v4253_v57 = vpop.f32.mrf.mxu0 }
 0x4d4   :  { %v5288_v58 = vpop.f32.mrf.mxu0  ;;  %3998 = vmatmul.mubr.msk.bf16.vlgmr.msra.gmra.mxu1 %vm1497_vm1, %v1439_v54  ;;  %3999 = vmatmul.mubr.msk.bf16.vlgmr.msra.gmra.mxu0 %vm1497_vm1, %v1439_v54 }
 0x4d5   :  { %1770 = vmatpush1.bf16.msra.mxu1 %v5214_v9  ;;  %1811 = vmatpush1.bf16.msra.mxu0 %v5234_v15 }
 0x4d6   :  { %v4254_v59 = vpop.f32.mrf.mxu0  ;;  %1771 = vmatprep.subr.bf16.mxu1 %v5216_v10  ;;  %1812 = vmatprep.subr.bf16.mxu0 %v5236_v16 }
 0x4d7   :  { %1789 = vmatprep.mubr.bf16.mxu1 %v5002_v30  ;;  %1830 = vmatprep.mubr.bf16.mxu0 %v5002_v30 }
 0x4d8   :  { %v5298_v60 = vpop.f32.mrf.mxu0 }
 0x4d9   :  { %1772 = vmatpush1.bf16.msra.mxu1 %v5220_v11  ;;  %1813 = vmatpush1.bf16.msra.mxu0 %v5240_v17 }
 0x4da   :  { %v4257_v61 = vpop.f32.mrf.mxu0  ;;  %1854 = vmatprep.subr.bf16.mxu1 %v5245_v18  ;;  %1895 = vmatprep.subr.bf16.mxu0 %v5253_v31 }
 0x4dc   :  { %v5304_v62 = vpop.f32.mrf.mxu0 }
 0x4de   :  { %v4258_v63 = vpop.f32.mrf.mxu0 }
 0x4e0   :  { %v5306_v0 = vpop.f32.mrf.mxu0 }
 0x4e2   :  { %v4261_v1 = vpop.f32.mrf.mxu0 }
 0x4e4   :  { %v5308_v2 = vpop.f32.mrf.mxu0 }
 0x4e6   :  { %v4262_v3 = vpop.f32.mrf.mxu0 }
 0x594   :  { %v1660_v6 = vpop.f32.mrf.mxu1  ;;  %v1701_v7 = vpop.f32.mrf.mxu0 }
 0x595   :  { %v1661_v12 = vadd.f32 %v1660_v6, %v1535_v43  ;;  %v1702_v25 = vadd.f32 %v1701_v7, %v1576_v47 }
 0x596   :  { %v1662_v20 = vpop.f32.mrf.mxu1  ;;  %v1703_v21 = vpop.f32.mrf.mxu0 }
 0x597   :  { %v1729_v24 = vadd.f32 %v5311_v5, %v1661_v12  ;;  %v1663_v26 = vadd.f32 %v1662_v20, %v1537_v44  ;;  %v1731_v35 = vadd.f32 %v5317_v23, %v1702_v25  ;;  %v1704_v43 = vadd.f32 %v1703_v21, %v1578_v48 }
 0x598   :  { %v1664_v27 = vpop.f32.mrf.mxu1  ;;  %v1705_v28 = vpop.f32.mrf.mxu0 }
 0x599   :  { %4658 = vtanh.f32 %v1729_v24  ;;  %v1730_v29 = vadd.f32 %v5314_v14, %v1663_v26  ;;  %v1732_v46 = vadd.f32 %v5323_v45, %v1704_v43 }
 0x59a   :  { %v1665_v32 = vpop.f32.mrf.mxu1  ;;  %v1706_v33 = vpop.f32.mrf.mxu0 }
 0x59b   :  { %4660 = vtanh.f32 %v1730_v29 }
 0x59c   :  { %4662 = vtanh.f32 %v1731_v35 }
 0x59d   :  { %4664 = vtanh.f32 %v1732_v46 }
 0x5a6   :  { %v4659_v47 = vpop.eup %4658 }
 0x5a7   :  { %v1734_v44 = vmul.f32 0.5, %v4659_v47 }
 0x5a8   :  { %v4661_v49 = vpop.eup %4660 }
 0x5a9   :  { %v1735_v50 = vadd.f32 0.5, %v1734_v44  ;;  %v1737_v51 = vmul.f32 0.5, %v4661_v49  ;;  %v4663_v54 = vpop.eup %4662 }
 0x5aa   :  { %v4665_v48 = vpop.eup %4664 }
 0x5ab   :  { %v1738_v53 = vadd.f32 0.5, %v1737_v51  ;;  %v1744_v37 = vmul.f32 %v4663_v54, %v1735_v50  ;;  %v1741_v61 = vmul.f32 0.5, %v4665_v48 }
 0x5ad   :  { %v1743_v57 = vmul.f32 %v3979_v52, %v1738_v53  ;;  %v1742_v63 = vadd.f32 0.5, %v1741_v61 }
 0x5af   :  { %v5329_v59 = vadd.f32 %v1744_v37, %v1743_v57 }
 0x5b1   :  { %4666 = vtanh.f32 %v5329_v59 }
 0x5be   :  { %v4667_v1 = vpop.eup %4666 }
 0x5bf   :  { %v5332_v3 = vmul.f32 %v4667_v1, %v1742_v63 }
 0x5c1   :  { %v1753_v6 = vpack.c.bf16 %v5332_v3, %v5332_v3  ;;  %v1751_v7 = vsel %vm1750_vm4, %v5288_v58, %v5332_v3 }
 0x5c2   :  { %v1752_v12 = vpack.c.bf16 %v1751_v7, %v1751_v7 }
 0x5c3   :  { %4001 = vmatmul.mubr.msk.bf16.vlgmr.msra.gmra.mxu1 %vm1497_vm1, %v1753_v6  ;;  %4002 = vmatmul.mubr.msk.bf16.vlgmr.msra.gmra.mxu0 %vm1497_vm1, %v1753_v6 }
 0x5c4   :  { %1855 = vmatpush1.bf16.msra.mxu1 %v5247_v19  ;;  %1896 = vmatpush1.bf16.msra.mxu0 %v5258_v34 }
 0x5c5   :  { %1856 = vmatprep.subr.bf16.mxu1 %v5273_v39  ;;  %1897 = vmatprep.subr.bf16.mxu0 %v5275_v40 }
 0x5c6   :  { %1874 = vmatprep.mubr.bf16.mxu1 %v5002_v30  ;;  %1915 = vmatprep.mubr.bf16.mxu0 %v5002_v30 }
 0x5c8   :  { %1857 = vmatpush1.bf16.msra.mxu1 %v5277_v41  ;;  %1898 = vmatpush1.bf16.msra.mxu0 %v5279_v42 }
 0x5c9   :  { %1964 = vmatprep.subr.bf16.mxu1 %v5212_v8  ;;  %2005 = vmatprep.subr.bf16.mxu0 %v5228_v13 }
 0x5cb   :  { %4003 = vmatmul.mubr.msk.bf16.vlgmr.msra.gmra.mxu1 %vm1497_vm1, %v1752_v12  ;;  %4004 = vmatmul.mubr.msk.bf16.vlgmr.msra.gmra.mxu0 %vm1497_vm1, %v1752_v12 }
 0x5cc   :  { %1965 = vmatpush1.bf16.msra.mxu1 %v5214_v9  ;;  %2006 = vmatpush1.bf16.msra.mxu0 %v5234_v15 }
 0x5cd   :  { %1966 = vmatprep.subr.bf16.mxu1 %v5216_v10  ;;  %2007 = vmatprep.subr.bf16.mxu0 %v5236_v16 }
 0x5ce   :  { %1984 = vmatprep.mubr.bf16.mxu1 %v5002_v30  ;;  %2025 = vmatprep.mubr.bf16.mxu0 %v5002_v30 }
 0x5d0   :  { %1967 = vmatpush1.bf16.msra.mxu1 %v5220_v11  ;;  %2008 = vmatpush1.bf16.msra.mxu0 %v5240_v17 }
 0x5d1   :  { %2049 = vmatprep.subr.bf16.mxu1 %v5245_v18  ;;  %2090 = vmatprep.subr.bf16.mxu0 %v5253_v31 }
 0x683   :  { %v1791_v58 = vpop.f32.mrf.mxu1  ;;  %v1832_v20 = vpop.f32.mrf.mxu0 }
 0x685   :  { %v1793_v21 = vpop.f32.mrf.mxu1  ;;  %v1834_v24 = vpop.f32.mrf.mxu0 }
 0x687   :  { %v1795_v25 = vpop.f32.mrf.mxu1  ;;  %v1836_v26 = vpop.f32.mrf.mxu0 }
 0x689   :  { %v1796_v27 = vpop.f32.mrf.mxu1  ;;  %v1837_v28 = vpop.f32.mrf.mxu0 }
 0x68a   :  { %v1944_v27 = vstv %s4005_s15 }
 0x68b   :  { %v1876_v29 = vpop.f32.mrf.mxu1  ;;  %v1917_v32 = vpop.f32.mrf.mxu0  ;;  %vm1945_vm5 = vcmp.ne.s32.totalorder %v1944_v27, 0 }
 0x68c   :  { %v1877_v33 = vadd.f32 %v1876_v29, %v1791_v58  ;;  %v1918_v46 = vadd.f32 %v1917_v32, %v1832_v20 }
 0x68d   :  { %v1878_v35 = vpop.f32.mrf.mxu1  ;;  %v1919_v36 = vpop.f32.mrf.mxu0 }
 0x68e   :  { %v1924_v43 = vadd.f32 %v1877_v33, %v5311_v5  ;;  %v1879_v47 = vadd.f32 %v1878_v35, %v1793_v21  ;;  %v1926_v53 = vadd.f32 %v1918_v46, %v5317_v23  ;;  %v1920_v54 = vadd.f32 %v1919_v36, %v1834_v24 }
 0x68f   :  { %v1880_v44 = vpop.f32.mrf.mxu1  ;;  %v1921_v49 = vpop.f32.mrf.mxu0 }
 0x690   :  { %4668 = vtanh.f32 %v1924_v43  ;;  %v1925_v50 = vadd.f32 %v1879_v47, %v5314_v14  ;;  %v1927_v57 = vadd.f32 %v1920_v54, %v5323_v45 }
 0x691   :  { %v1881_v51 = vpop.f32.mrf.mxu1  ;;  %v1922_v52 = vpop.f32.mrf.mxu0 }
 0x692   :  { %4670 = vtanh.f32 %v1925_v50 }
 0x693   :  { %4672 = vtanh.f32 %v1926_v53 }
 0x694   :  { %4674 = vtanh.f32 %v1927_v57 }
 0x69d   :  { %v4669_v37 = vpop.eup %4668 }
 0x69e   :  { %v1929_v48 = vmul.f32 0.5, %v4669_v37 }
 0x69f   :  { %v4671_v61 = vpop.eup %4670 }
 0x6a0   :  { %v1930_v63 = vadd.f32 0.5, %v1929_v48  ;;  %v1932_v1 = vmul.f32 0.5, %v4671_v61  ;;  %v4673_v6 = vpop.eup %4672 }
 0x6a1   :  { %v4675_v20 = vpop.eup %4674 }
 0x6a2   :  { %v1933_v4 = vadd.f32 0.5, %v1932_v1  ;;  %v1939_v12 = vmul.f32 %v4673_v6, %v1930_v63  ;;  %v1936_v21 = vmul.f32 0.5, %v4675_v20 }
 0x6a4   :  { %v1938_v7 = vmul.f32 %v1933_v4, %v5329_v59  ;;  %v1937_v24 = vadd.f32 0.5, %v1936_v21 }
 0x6a6   :  { %v5367_v58 = vadd.f32 %v1939_v12, %v1938_v7 }
 0x6a8   :  { %4676 = vtanh.f32 %v5367_v58 }
 0x6b5   :  { %v4677_v25 = vpop.eup %4676 }
 0x6b6   :  { %v5370_v26 = vmul.f32 %v4677_v25, %v1937_v24 }
 0x6b8   :  { %v1948_v28 = vpack.c.bf16 %v5370_v26, %v5370_v26  ;;  %v1946_v59 = vsel %vm1945_vm5, %v5298_v60, %v5370_v26 }
 0x6b9   :  { %v1947_v29 = vpack.c.bf16 %v1946_v59, %v1946_v59 }
 0x6ba   :  { %4006 = vmatmul.mubr.msk.bf16.vlgmr.msra.gmra.mxu1 %vm1497_vm1, %v1948_v28  ;;  %4007 = vmatmul.mubr.msk.bf16.vlgmr.msra.gmra.mxu0 %vm1497_vm1, %v1948_v28 }
 0x6bb   :  { %2050 = vmatpush1.bf16.msra.mxu1 %v5247_v19  ;;  %2091 = vmatpush1.bf16.msra.mxu0 %v5258_v34 }
 0x6bc   :  { %2051 = vmatprep.subr.bf16.mxu1 %v5273_v39  ;;  %2092 = vmatprep.subr.bf16.mxu0 %v5275_v40 }
 0x6bd   :  { %2069 = vmatprep.mubr.bf16.mxu1 %v5002_v30  ;;  %2110 = vmatprep.mubr.bf16.mxu0 %v5002_v30 }
 0x6bf   :  { %2052 = vmatpush1.bf16.msra.mxu1 %v5277_v41  ;;  %2093 = vmatpush1.bf16.msra.mxu0 %v5279_v42 }
 0x6c0   :  { %2159 = vmatprep.subr.bf16.mxu1 %v5212_v8  ;;  %2200 = vmatprep.subr.bf16.mxu0 %v5228_v13 }
 0x6c2   :  { %4008 = vmatmul.mubr.msk.bf16.vlgmr.msra.gmra.mxu1 %vm1497_vm1, %v1947_v29  ;;  %4009 = vmatmul.mubr.msk.bf16.vlgmr.msra.gmra.mxu0 %vm1497_vm1, %v1947_v29 }
 0x6c3   :  { %2160 = vmatpush1.bf16.msra.mxu1 %v5214_v9  ;;  %2201 = vmatpush1.bf16.msra.mxu0 %v5234_v15 }
 0x6c4   :  { %2161 = vmatprep.subr.bf16.mxu1 %v5216_v10  ;;  %2202 = vmatprep.subr.bf16.mxu0 %v5236_v16 }
 0x6c5   :  { %2179 = vmatprep.mubr.bf16.mxu1 %v5002_v30  ;;  %2220 = vmatprep.mubr.bf16.mxu0 %v5002_v30 }
 0x6c7   :  { %2162 = vmatpush1.bf16.msra.mxu1 %v5220_v11  ;;  %2203 = vmatpush1.bf16.msra.mxu0 %v5240_v17 }
 0x6c8   :  { %2244 = vmatprep.subr.bf16.mxu1 %v5245_v18  ;;  %2285 = vmatprep.subr.bf16.mxu0 %v5253_v31 }
 0x77a   :  { %v1986_v60 = vpop.f32.mrf.mxu1  ;;  %v2027_v32 = vpop.f32.mrf.mxu0 }
 0x77c   :  { %v1988_v33 = vpop.f32.mrf.mxu1  ;;  %v2029_v35 = vpop.f32.mrf.mxu0 }
 0x77e   :  { %v1990_v36 = vpop.f32.mrf.mxu1  ;;  %v2031_v43 = vpop.f32.mrf.mxu0 }
 0x780   :  { %v1991_v46 = vpop.f32.mrf.mxu1  ;;  %v2032_v47 = vpop.f32.mrf.mxu0 }
 0x781   :  { %v2139_v46 = vstv %s4010_s14 }
 0x782   :  { %v2071_v44 = vpop.f32.mrf.mxu1  ;;  %v2112_v49 = vpop.f32.mrf.mxu0  ;;  %vm2140_vm6 = vcmp.ne.s32.totalorder %v2139_v46, 0 }
 0x783   :  { %v2072_v50 = vadd.f32 %v2071_v44, %v1986_v60  ;;  %v2113_v54 = vadd.f32 %v2112_v49, %v2027_v32 }
 0x784   :  { %v2073_v51 = vpop.f32.mrf.mxu1  ;;  %v2114_v52 = vpop.f32.mrf.mxu0 }
 0x785   :  { %v2119_v53 = vadd.f32 %v2072_v50, %v5311_v5  ;;  %v2074_v57 = vadd.f32 %v2073_v51, %v1988_v33  ;;  %v2121_v4 = vadd.f32 %v2113_v54, %v5317_v23  ;;  %v2115_v6 = vadd.f32 %v2114_v52, %v2029_v35 }
 0x786   :  { %v2075_v37 = vpop.f32.mrf.mxu1  ;;  %v2116_v48 = vpop.f32.mrf.mxu0 }
 0x787   :  { %4678 = vtanh.f32 %v2119_v53  ;;  %v2120_v61 = vadd.f32 %v2074_v57, %v5314_v14  ;;  %v2122_v7 = vadd.f32 %v2115_v6, %v5323_v45 }
 0x788   :  { %v2076_v63 = vpop.f32.mrf.mxu1  ;;  %v2117_v1 = vpop.f32.mrf.mxu0 }
 0x789   :  { %4680 = vtanh.f32 %v2120_v61 }
 0x78a   :  { %4682 = vtanh.f32 %v2121_v4 }
 0x78b   :  { %4684 = vtanh.f32 %v2122_v7 }
 0x794   :  { %v4679_v12 = vpop.eup %4678 }
 0x795   :  { %v2124_v20 = vmul.f32 0.5, %v4679_v12 }
 0x796   :  { %v4681_v21 = vpop.eup %4680 }
 0x797   :  { %v2125_v24 = vadd.f32 0.5, %v2124_v20  ;;  %v2127_v25 = vmul.f32 0.5, %v4681_v21  ;;  %v4683_v28 = vpop.eup %4682 }
 0x798   :  { %v4685_v32 = vpop.eup %4684 }
 0x799   :  { %v2128_v27 = vadd.f32 0.5, %v2127_v25  ;;  %v2134_v29 = vmul.f32 %v4683_v28, %v2125_v24  ;;  %v2131_v33 = vmul.f32 0.5, %v4685_v32 }
 0x79b   :  { %v2133_v59 = vmul.f32 %v2128_v27, %v5367_v58  ;;  %v2132_v35 = vadd.f32 0.5, %v2131_v33 }
 0x79d   :  { %v5405_v60 = vadd.f32 %v2134_v29, %v2133_v59 }
 0x79f   :  { %4686 = vtanh.f32 %v5405_v60 }
 0x7ac   :  { %v4687_v36 = vpop.eup %4686 }
 0x7ad   :  { %v5408_v43 = vmul.f32 %v4687_v36, %v2132_v35 }
 0x7af   :  { %v2143_v47 = vpack.c.bf16 %v5408_v43, %v5408_v43  ;;  %v2141_v58 = vsel %vm2140_vm6, %v5304_v62, %v5408_v43 }
 0x7b0   :  { %v2142_v44 = vpack.c.bf16 %v2141_v58, %v2141_v58 }
 0x7b1   :  { %4011 = vmatmul.mubr.msk.bf16.vlgmr.msra.gmra.mxu1 %vm1497_vm1, %v2143_v47  ;;  %4012 = vmatmul.mubr.msk.bf16.vlgmr.msra.gmra.mxu0 %vm1497_vm1, %v2143_v47 }
 0x7b2   :  { %2245 = vmatpush1.bf16.msra.mxu1 %v5247_v19  ;;  %2286 = vmatpush1.bf16.msra.mxu0 %v5258_v34 }
 0x7b3   :  { %2246 = vmatprep.subr.bf16.mxu1 %v5273_v39  ;;  %2287 = vmatprep.subr.bf16.mxu0 %v5275_v40 }
 0x7b4   :  { %2264 = vmatprep.mubr.bf16.mxu1 %v5002_v30  ;;  %2305 = vmatprep.mubr.bf16.mxu0 %v5002_v30 }
 0x7b6   :  { %2247 = vmatpush1.bf16.msra.mxu1 %v5277_v41  ;;  %2288 = vmatpush1.bf16.msra.mxu0 %v5279_v42 }
 0x7b7   :  { %2354 = vmatprep.subr.bf16.mxu1 %v5212_v8  ;;  %2395 = vmatprep.subr.bf16.mxu0 %v5228_v13 }
 0x7b9   :  { %4013 = vmatmul.mubr.msk.bf16.vlgmr.msra.gmra.mxu1 %vm1497_vm1, %v2142_v44  ;;  %4014 = vmatmul.mubr.msk.bf16.vlgmr.msra.gmra.mxu0 %vm1497_vm1, %v2142_v44 }
 0x7ba   :  { %2355 = vmatpush1.bf16.msra.mxu1 %v5214_v9  ;;  %2396 = vmatpush1.bf16.msra.mxu0 %v5234_v15 }
 0x7bb   :  { %2356 = vmatprep.subr.bf16.mxu1 %v5216_v10  ;;  %2397 = vmatprep.subr.bf16.mxu0 %v5236_v16 }
 0x7bc   :  { %2374 = vmatprep.mubr.bf16.mxu1 %v5002_v30  ;;  %2415 = vmatprep.mubr.bf16.mxu0 %v5002_v30 }
 0x7be   :  { %2357 = vmatpush1.bf16.msra.mxu1 %v5220_v11  ;;  %2398 = vmatpush1.bf16.msra.mxu0 %v5240_v17 }
 0x7bf   :  { %2439 = vmatprep.subr.bf16.mxu1 %v5245_v18  ;;  %2480 = vmatprep.subr.bf16.mxu0 %v5253_v31 }
 0x871   :  { %v2181_v62 = vpop.f32.mrf.mxu1  ;;  %v2222_v49 = vpop.f32.mrf.mxu0 }
 0x873   :  { %v2183_v50 = vpop.f32.mrf.mxu1  ;;  %v2224_v51 = vpop.f32.mrf.mxu0 }
 0x875   :  { %v2185_v52 = vpop.f32.mrf.mxu1  ;;  %v2226_v53 = vpop.f32.mrf.mxu0 }
 0x877   :  { %v2186_v54 = vpop.f32.mrf.mxu1  ;;  %v2227_v57 = vpop.f32.mrf.mxu0 }
 0x878   :  { %v2334_v54 = vstv %s4015_s9 }
 0x879   :  { %v2266_v37 = vpop.f32.mrf.mxu1  ;;  %v2307_v48 = vpop.f32.mrf.mxu0  ;;  %vm2335_vm7 = vcmp.ne.s32.totalorder %v2334_v54, 0  ;;  %v2529_v54 = vstv %s4020_s27 }
 0x87a   :  { %v2267_v61 = vadd.f32 %v2266_v37, %v2181_v62  ;;  %v2308_v6 = vadd.f32 %v2307_v48, %v2222_v49  ;;  %vm2530_vm8 = vcmp.ne.s32.totalorder %v2529_v54, 0  ;;  %v4513_v54 = vld [vmem:[%s5606_s1 + $0x20] ss:$8 sps:$4 sm:$0xff]  }
 0x87b   :  { %v2268_v63 = vpop.f32.mrf.mxu1  ;;  %v2309_v1 = vpop.f32.mrf.mxu0 }
 0x87c   :  { %v2314_v4 = vadd.f32 %v2267_v61, %v5311_v5  ;;  %v2269_v7 = vadd.f32 %v2268_v63, %v2183_v50  ;;  %v2316_v27 = vadd.f32 %v2308_v6, %v5317_v23  ;;  %v2310_v28 = vadd.f32 %v2309_v1, %v2224_v51 }
 0x87d   :  { %v2270_v12 = vpop.f32.mrf.mxu1  ;;  %v2311_v20 = vpop.f32.mrf.mxu0 }
 0x87e   :  { %4688 = vtanh.f32 %v2314_v4  ;;  %v2315_v21 = vadd.f32 %v2269_v7, %v5314_v14  ;;  %v2317_v59 = vadd.f32 %v2310_v28, %v5323_v45 }
 0x87f   :  { %v2271_v24 = vpop.f32.mrf.mxu1  ;;  %v2312_v25 = vpop.f32.mrf.mxu0 }
 0x880   :  { %4690 = vtanh.f32 %v2315_v21 }
 0x881   :  { %4692 = vtanh.f32 %v2316_v27 }
 0x882   :  { %4694 = vtanh.f32 %v2317_v59 }
 0x88b   :  { %v4689_v29 = vpop.eup %4688 }
 0x88c   :  { %v2319_v32 = vmul.f32 0.5, %v4689_v29 }
 0x88d   :  { %v4691_v33 = vpop.eup %4690 }
 0x88e   :  { %v2320_v35 = vadd.f32 0.5, %v2319_v32  ;;  %v2322_v36 = vmul.f32 0.5, %v4691_v33  ;;  %v4693_v47 = vpop.eup %4692 }
 0x88f   :  { %v4695_v49 = vpop.eup %4694 }
 0x890   :  { %v2323_v46 = vadd.f32 0.5, %v2322_v36  ;;  %v2329_v44 = vmul.f32 %v4693_v47, %v2320_v35  ;;  %v2326_v50 = vmul.f32 0.5, %v4695_v49 }
 0x892   :  { %v2328_v58 = vmul.f32 %v2323_v46, %v5405_v60  ;;  %v2327_v51 = vadd.f32 0.5, %v2326_v50 }
 0x894   :  { %v5443_v62 = vadd.f32 %v2329_v44, %v2328_v58 }
 0x896   :  { %4696 = vtanh.f32 %v5443_v62 }
 0x8a3   :  { %v4697_v52 = vpop.eup %4696 }
 0x8a4   :  { %v5446_v53 = vmul.f32 %v4697_v52, %v2327_v51 }
 0x8a6   :  { %v2338_v57 = vpack.c.bf16 %v5446_v53, %v5446_v53  ;;  %v2336_v60 = vsel %vm2335_vm7, %v5306_v0, %v5446_v53 }
 0x8a7   :  { %v2337_v37 = vpack.c.bf16 %v2336_v60, %v2336_v60 }
 0x8a8   :  { %4016 = vmatmul.mubr.msk.bf16.vlgmr.msra.gmra.mxu1 %vm1497_vm1, %v2338_v57  ;;  %4017 = vmatmul.mubr.msk.bf16.vlgmr.msra.gmra.mxu0 %vm1497_vm1, %v2338_v57 }
 0x8a9   :  { %2440 = vmatpush1.bf16.msra.mxu1 %v5247_v19  ;;  %2481 = vmatpush1.bf16.msra.mxu0 %v5258_v34 }
 0x8aa   :  { %2441 = vmatprep.subr.bf16.mxu1 %v5273_v39  ;;  %2482 = vmatprep.subr.bf16.mxu0 %v5275_v40 }
 0x8ab   :  { %2459 = vmatprep.mubr.bf16.mxu1 %v5002_v30  ;;  %2500 = vmatprep.mubr.bf16.mxu0 %v5002_v30 }
 0x8ad   :  { %2442 = vmatpush1.bf16.msra.mxu1 %v5277_v41  ;;  %2483 = vmatpush1.bf16.msra.mxu0 %v5279_v42 }
 0x8ae   :  { %2549 = vmatprep.subr.bf16.mxu1 %v5212_v8  ;;  %2590 = vmatprep.subr.bf16.mxu0 %v5228_v13 }
 0x8b0   :  { %4018 = vmatmul.mubr.msk.bf16.vlgmr.msra.gmra.mxu1 %vm1497_vm1, %v2337_v37  ;;  %4019 = vmatmul.mubr.msk.bf16.vlgmr.msra.gmra.mxu0 %vm1497_vm1, %v2337_v37 }
 0x8b1   :  { %2550 = vmatpush1.bf16.msra.mxu1 %v5214_v9  ;;  %2591 = vmatpush1.bf16.msra.mxu0 %v5234_v15 }
 0x8b2   :  { %2551 = vmatprep.subr.bf16.mxu1 %v5216_v10  ;;  %2592 = vmatprep.subr.bf16.mxu0 %v5236_v16 }
 0x8b3   :  { %2569 = vmatprep.mubr.bf16.mxu1 %v5002_v30  ;;  %2610 = vmatprep.mubr.bf16.mxu0 %v5002_v30 }
 0x8b5   :  { %2552 = vmatpush1.bf16.msra.mxu1 %v5220_v11  ;;  %2593 = vmatpush1.bf16.msra.mxu0 %v5240_v17 }
 0x8b6   :  { %2634 = vmatprep.subr.bf16.mxu1 %v5245_v18  ;;  %2675 = vmatprep.subr.bf16.mxu0 %v5253_v31 }
 0x968   :  { %v2376_v8 = vpop.f32.mrf.mxu1  ;;  %v2417_v9 = vpop.f32.mrf.mxu0 }
 0x96a   :  { %v2378_v13 = vpop.f32.mrf.mxu1  ;;  %v2419_v15 = vpop.f32.mrf.mxu0 }
 0x96c   :  { %v2380_v0 = vpop.f32.mrf.mxu1  ;;  %v2421_v10 = vpop.f32.mrf.mxu0 }
 0x96e   :  { %v2381_v48 = vpop.f32.mrf.mxu1  ;;  %v2422_v16 = vpop.f32.mrf.mxu0 }
 0x970   :  { %v2461_v61 = vpop.f32.mrf.mxu1  ;;  %v2502_v63 = vpop.f32.mrf.mxu0 }
 0x971   :  { %v2462_v1 = vadd.f32 %v2461_v61, %v2376_v8  ;;  %v2503_v17 = vadd.f32 %v2502_v63, %v2417_v9 }
 0x972   :  { %v2463_v4 = vpop.f32.mrf.mxu1  ;;  %v2504_v6 = vpop.f32.mrf.mxu0 }
 0x973   :  { %v2509_v11 = vadd.f32 %v2462_v1, %v5311_v5  ;;  %v2464_v7 = vadd.f32 %v2463_v4, %v2378_v13  ;;  %v2511_v24 = vadd.f32 %v2503_v17, %v5317_v23  ;;  %v2505_v25 = vadd.f32 %v2504_v6, %v2419_v15 }
 0x974   :  { %v2465_v18 = vpop.f32.mrf.mxu1  ;;  %v2506_v12 = vpop.f32.mrf.mxu0 }
 0x975   :  { %4698 = vtanh.f32 %v2509_v11  ;;  %v2510_v31 = vadd.f32 %v2464_v7, %v5314_v14  ;;  %v2512_v27 = vadd.f32 %v2505_v25, %v5323_v45 }
 0x976   :  { %v2466_v20 = vpop.f32.mrf.mxu1  ;;  %v2507_v21 = vpop.f32.mrf.mxu0 }
 0x977   :  { %4700 = vtanh.f32 %v2510_v31 }
 0x978   :  { %4702 = vtanh.f32 %v2511_v24 }
 0x979   :  { %4704 = vtanh.f32 %v2512_v27 }
 0x982   :  { %v4699_v28 = vpop.eup %4698 }
 0x983   :  { %v2514_v59 = vmul.f32 0.5, %v4699_v28 }
 0x984   :  { %v4701_v29 = vpop.eup %4700 }
 0x985   :  { %v2515_v32 = vadd.f32 0.5, %v2514_v59  ;;  %v2517_v33 = vmul.f32 0.5, %v4701_v29  ;;  %v4703_v36 = vpop.eup %4702 }
 0x986   :  { %v4705_v44 = vpop.eup %4704 }
 0x987   :  { %v2518_v35 = vadd.f32 0.5, %v2517_v33  ;;  %v2524_v47 = vmul.f32 %v4703_v36, %v2515_v32  ;;  %v2521_v49 = vmul.f32 0.5, %v4705_v44  ;;  %v2726_v33 = vpack.c.bf16 %v5446_v53, %v5408_v43  ;;  %v4495_v36 = vld [vmem:[#allocation19] sm:$0xff]   ;;  %v4497_v43 = vld [vmem:[#allocation15] sm:$0xff]  }
 0x988   :  { %v4498_v53 = vld [vmem:[%s5606_s1 + $0x70] ss:$8 sps:$4 sm:$0xff]   ;;  %v4509_v44 = vld [vmem:[%s5606_s1 + $0x44] ss:$8 sps:$4 sm:$0xff]  }
 0x989   :  { %v2523_v46 = vmul.f32 %v2518_v35, %v5443_v62  ;;  %v2522_v50 = vadd.f32 0.5, %v2521_v49  ;;  %v2725_v35 = vpack.c.bf16 %v5370_v26, %v5332_v3  ;;  %v4500_v3 = vld [vmem:[%s5606_s1 + $0x74] ss:$8 sps:$4 sm:$0xff]   ;;  %v4503_v26 = vld [vmem:[%s5606_s1 + $0x64] ss:$8 sps:$4 sm:$0xff]  }
 0x98a   :  { %v4507_v49 = vld [vmem:[%s5606_s1 + $0x40] ss:$8 sps:$4 sm:$0xff]  }
 0x98b   :  { %v5481_v58 = vadd.f32 %v2524_v47, %v2523_v46  ;;  %v4496_v46 = vld [vmem:[#allocation15 + $0x8] sm:$0xff]  }
 0x98c   :  { %v4506_v47 = vld [vmem:[%s5606_s1 + $0x54] ss:$8 sps:$4 sm:$0xff]  }
 0x98d   :  { %4706 = vtanh.f32 %v5481_v58 }
 0x99a   :  { %v4707_v51 = vpop.eup %4706 }
 0x99b   :  { %v5484_v52 = vmul.f32 %v4707_v51, %v2522_v50  ;;  %v4512_v50 = vld [vmem:[%s5606_s1 + $0x34] ss:$8 sps:$4 sm:$0xff]   ;;  %v4510_v51 = vld [vmem:[%s5606_s1 + $0x30] ss:$8 sps:$4 sm:$0xff]  }
 0x99d   :  { %v2533_v57 = vpack.c.bf16 %v5484_v52, %v5484_v52  ;;  %v2531_v62 = vsel %vm2530_vm8, %v5308_v2, %v5484_v52 }
 0x99e   :  { %v2532_v60 = vpack.c.bf16 %v2531_v62, %v2531_v62 }
 0x99f   :  { %4021 = vmatmul.mubr.msk.bf16.vlgmr.msra.gmra.mxu1 %vm1497_vm1, %v2533_v57  ;;  %4022 = vmatmul.mubr.msk.bf16.vlgmr.msra.gmra.mxu0 %vm1497_vm1, %v2533_v57 }
 0x9a0   :  { %2635 = vmatpush1.bf16.msra.mxu1 %v5247_v19  ;;  %2676 = vmatpush1.bf16.msra.mxu0 %v5258_v34 }
 0x9a1   :  { %2636 = vmatprep.subr.bf16.mxu1 %v5273_v39  ;;  %2677 = vmatprep.subr.bf16.mxu0 %v5275_v40 }
 0x9a2   :  { %2654 = vmatprep.mubr.bf16.mxu1 %v5002_v30  ;;  %2695 = vmatprep.mubr.bf16.mxu0 %v5002_v30 }
 0x9a4   :  { %2637 = vmatpush1.bf16.msra.mxu1 %v5277_v41  ;;  %2678 = vmatpush1.bf16.msra.mxu0 %v5279_v42 }
 0x9a5   :  { %4263 = vmatprep.subr.bf16.mxu0 %v5003_v22  ;;  %2955 = vmatprep.subr.bf16.mxu1 %v4500_v3  ;;  %v4559_v3 = vld [vmem:[#allocation16 + $0x140] ss:$12 sps:$4 sm:$0xff]  }
 0x9a7   :  { %4023 = vmatmul.mubr.msk.bf16.vlgmr.msra.gmra.mxu1 %vm1497_vm1, %v2532_v60  ;;  %4024 = vmatmul.mubr.msk.bf16.vlgmr.msra.gmra.mxu0 %vm1497_vm1, %v2532_v60 }
 0x9a8   :  { %4269 = vmatprep.mubr.msk.bf16.mxu0 %vm5004_vm0, %v5003_v22  ;;  %2987 = vmatprep.mubr.bf16.mxu1 %v5002_v30 }
 0x9a9   :  { %2956 = vmatpush1.bf16.msra.mxu1 %v4498_v53  ;;  %v4555_v53 = vld [vmem:[#allocation16 + $0x98] ss:$12 sps:$4 sm:$0xff]  }
 0x9aa   :  { %2957 = vmatprep.subr.bf16.mxu1 %v4503_v26  ;;  %v4560_v26 = vld [vmem:[#allocation16 + $0x80] ss:$12 sps:$4 sm:$0xff]  }
 0xa5f   :  { %v2571_v19 = vpop.f32.mrf.mxu1  ;;  %v2612_v34 = vpop.f32.mrf.mxu0 }
 0xa61   :  { %v2573_v39 = vpop.f32.mrf.mxu1  ;;  %v2614_v40 = vpop.f32.mrf.mxu0 }
 0xa63   :  { %v2575_v2 = vpop.f32.mrf.mxu1  ;;  %v2616_v41 = vpop.f32.mrf.mxu0 }
 0xa64   :  { %v4521_v2 = vld [vmem:[%s5606_s1 + $0x4] ss:$8 sps:$4 sm:$0xff]   ;;  %v4519_v41 = vld [vmem:[%s5606_s1] ss:$8 sps:$4 sm:$0xff]  }
 0xa65   :  { %v2576_v37 = vpop.f32.mrf.mxu1  ;;  %v2617_v42 = vpop.f32.mrf.mxu0 }
 0xa66   :  { %v4522_v37 = vld [vmem:[#allocation16 + $0xa8] ss:$12 sps:$4 sm:$0xff]   ;;  %v4524_v42 = vld [vmem:[#allocation16 + $0xac] ss:$12 sps:$4 sm:$0xff]  }
 0xa67   :  { %v2656_v8 = vpop.f32.mrf.mxu1  ;;  %v2697_v9 = vpop.f32.mrf.mxu0 }
 0xa68   :  { %v2657_v13 = vadd.f32 %v2656_v8, %v2571_v19  ;;  %v2698_v48 = vadd.f32 %v2697_v9, %v2612_v34  ;;  %v4527_v8 = vld [vmem:[#allocation16 + $0x94] ss:$12 sps:$4 sm:$0xff]   ;;  %v4525_v9 = vld [vmem:[#allocation16 + $0x90] ss:$12 sps:$4 sm:$0xff]  }
 0xa69   :  { %v2658_v15 = vpop.f32.mrf.mxu1  ;;  %v2699_v0 = vpop.f32.mrf.mxu0 }
 0xa6a   :  { %v2704_v10 = vadd.f32 %v2657_v13, %v5311_v5  ;;  %v2659_v16 = vadd.f32 %v2658_v15, %v2573_v39  ;;  %v2706_v11 = vadd.f32 %v2698_v48, %v5317_v23  ;;  %v2700_v17 = vadd.f32 %v2699_v0, %v2614_v40  ;;  %v4518_v39 = vld [vmem:[%s5606_s1 + $0x14] ss:$8 sps:$4 sm:$0xff]   ;;  %v4516_v40 = vld [vmem:[%s5606_s1 + $0x10] ss:$8 sps:$4 sm:$0xff]   ;;  %v4531_v48 = vld [vmem:[#allocation16 + $0x60] ss:$12 sps:$4 sm:$0xff]  }
 0xa6b   :  { %v2660_v61 = vpop.f32.mrf.mxu1  ;;  %v2701_v63 = vpop.f32.mrf.mxu0  ;;  %v4530_v13 = vld [vmem:[#allocation16 + $0x7c] ss:$12 sps:$4 sm:$0xff]   ;;  %v4528_v0 = vld [vmem:[#allocation16 + $0x78] ss:$12 sps:$4 sm:$0xff]  }
 0xa6c   :  { %4708 = vtanh.f32 %v2704_v10  ;;  %v2705_v1 = vadd.f32 %v2659_v16, %v5314_v14  ;;  %v2707_v7 = vadd.f32 %v2700_v17, %v5323_v45  ;;  %v4549_v15 = vld [vmem:[#allocation16 + $0x170] ss:$12 sps:$4 sm:$0xff]   ;;  %v4536_v16 = vld [vmem:[#allocation16 + $0x4c] ss:$12 sps:$4 sm:$0xff]   ;;  %v4534_v61 = vld [vmem:[#allocation16 + $0x48] ss:$12 sps:$4 sm:$0xff]  }
 0xa6d   :  { %v2661_v4 = vpop.f32.mrf.mxu1  ;;  %v2702_v6 = vpop.f32.mrf.mxu0  ;;  %v4533_v10 = vld [vmem:[#allocation16 + $0x64] ss:$12 sps:$4 sm:$0xff]   ;;  %v4539_v63 = vld [vmem:[#allocation16 + $0x34] ss:$12 sps:$4 sm:$0xff]  }
 0xa6e   :  { %4710 = vtanh.f32 %v2705_v1  ;;  %v4537_v1 = vld [vmem:[#allocation16 + $0x30] ss:$12 sps:$4 sm:$0xff]   ;;  %v4540_v6 = vld [vmem:[#allocation16 + $0x18] ss:$12 sps:$4 sm:$0xff]   ;;  %v4543_v17 = vld [vmem:[#allocation16] ss:$12 sps:$4 sm:$0xff]  }
 0xa6f   :  { %4712 = vtanh.f32 %v2706_v11  ;;  %v4542_v4 = vld [vmem:[#allocation16 + $0x1c] ss:$12 sps:$4 sm:$0xff]   ;;  %v4545_v11 = vld [vmem:[#allocation16 + $0x4] ss:$12 sps:$4 sm:$0xff]  }
 0xa70   :  { %4714 = vtanh.f32 %v2707_v7  ;;  %v4548_v7 = vld [vmem:[#allocation16 + $0x16c] ss:$12 sps:$4 sm:$0xff]  }
 0xa79   :  { %v4709_v18 = vpop.eup %4708 }
 0xa7a   :  { %v2709_v12 = vmul.f32 0.5, %v4709_v18  ;;  %v4546_v18 = vld [vmem:[#allocation16 + $0x168] ss:$12 sps:$4 sm:$0xff]  }
 0xa7b   :  { %v4711_v31 = vpop.eup %4710 }
 0xa7c   :  { %v2710_v5 = vadd.f32 0.5, %v2709_v12  ;;  %v2712_v20 = vmul.f32 0.5, %v4711_v31  ;;  %v4713_v24 = vpop.eup %4712  ;;  %v4553_v12 = vld [vmem:[#allocation16 + $0x154] ss:$12 sps:$4 sm:$0xff]   ;;  %v4551_v31 = vld [vmem:[#allocation16 + $0x150] ss:$12 sps:$4 sm:$0xff]  }
 0xa7d   :  { %v4715_v28 = vpop.eup %4714 }
 0xa7e   :  { %v2713_v21 = vadd.f32 0.5, %v2712_v20  ;;  %v2719_v14 = vmul.f32 %v4713_v24, %v2710_v5  ;;  %v2716_v23 = vmul.f32 0.5, %v4715_v28  ;;  %v4558_v5 = vld [vmem:[#allocation16 + $0x13c] ss:$12 sps:$4 sm:$0xff]   ;;  %v4556_v20 = vld [vmem:[#allocation16 + $0x138] ss:$12 sps:$4 sm:$0xff]  }
 0xa7f   :  { %v4561_v24 = vld [vmem:[#allocation16 + $0x120] ss:$12 sps:$4 sm:$0xff]  }
 0xa80   :  { %v2718_v25 = vmul.f32 %v2713_v21, %v5481_v58  ;;  %v2717_v59 = vadd.f32 0.5, %v2716_v23  ;;  %v4504_v58 = vld [vmem:[%s5606_s1 + $0x50] ss:$8 sps:$4 sm:$0xff]  }
 0xa81   :  { %v4563_v21 = vld [vmem:[#allocation16 + $0x124] ss:$12 sps:$4 sm:$0xff]  }
 0xa82   :  { %v2720_v27 = vadd.f32 %v2719_v14, %v2718_v25  ;;  %v4568_v25 = vld [vmem:[#allocation16 + $0x10c] ss:$12 sps:$4 sm:$0xff]   ;;  %v4566_v14 = vld [vmem:[#allocation16 + $0x108] ss:$12 sps:$4 sm:$0xff]  }
 0xa84   :  { %4716 = vtanh.f32 %v2720_v27  ;;  %v4027_v27 = vld [vmem:[#allocation21 + $0xb] ss:$0 sm:$0xff] }
 0xa91   :  { %v4717_v29 = vpop.eup %4716 }
 0xa92   :  { %v2722_v32 = vmul.f32 %v4717_v29, %v2717_v59 }
 0xa94   :  { %v2727_v45 = vpack.c.bf16 %v2722_v32, %v5484_v52  ;;  %v4515_v52 = vld [vmem:[%s5606_s1 + $0x24] ss:$8 sps:$4 sm:$0xff]  }
 0xa96   :  { %4264 = vmatpush3.bf16.msra.mxu0 %v2727_v45 }
 0xa97   :  { %4265 = vmatprep.subr.bf16.mxu0 %v5003_v22 }
 0xa9a   :  { %4266 = vmatpush3.bf16.msra.mxu0 %v2726_v33 }
 0xa9b   :  { %4267 = vmatprep.subr.bf16.mxu0 %v5003_v22 }
 0xa9e   :  { %4268 = vmatpush3.bf16.msra.mxu0 %v2725_v35 }
 0xa9f   :  { %4273 = vmatprep.subr.bf16.mxu0 %v5003_v22 }
 0xaa1   :  { %4270 = vmatmul.mubr.msk.bf16.vlgmr.msra.gmra.mxu0 %vm2733_vm9, %v4495_v36  ;;  %v4550_v36 = vld [vmem:[#allocation16 + $0xb0] ss:$12 sps:$4 sm:$0xff]  }
 0xaa2   :  { %4277 = vmatprep.mubr.msk.bf16.mxu0 %vm5004_vm0, %v5003_v22  ;;  %4274 = vmatpush3.bf16.msra.mxu0 %v4496_v46 }
 0xaa3   :  { %4275 = vmatprep.subr.bf16.mxu0 %v5003_v22  ;;  %v4501_v22 = vld [vmem:[%s5606_s1 + $0x60] ss:$8 sps:$4 sm:$0xff]   ;;  %s5005_s1 = smov [#allocation22]  }
 0xaa4   :  { %2958 = vmatpush1.bf16.msra.mxu1 %v4501_v22  ;;  %v4564_v22 = vld [vmem:[#allocation16 + $0x128] ss:$12 sps:$4 sm:$0xff]   ;;  %s3831_s22 = sshll.u32 %s5005_s1, 4  ;;  %s3832_s22 = int_to_ptr.vmem [resolvable:$true] %s3831_s22 }
 0xaa5   :  { %2959 = vmatprep.subr.bf16.mxu1 %v4506_v47  ;;  %v4565_v47 = vld [vmem:[#allocation16 + $0x68] ss:$12 sps:$4 sm:$0xff]   ;;  %s4946_s25 = scalar_lea.vmem %s3832_s22, 512  ;;  %p4951_p0 = scmp.lt.s32.totalorder %s3832_s22, %s3832_s22 }
 0xaa6   :  { %4276 = vmatpush3.bf16.msra.mxu0 %v4497_v43  ;;  %v4554_v43 = vld [vmem:[#allocation16 + $0x158] ss:$12 sps:$4 sm:$0xff]   ;;  %p4947_p13 = scmp.ne.s32.totalorder %s3832_s22, %s4946_s25  ;;  %p4952_p1 = scmp.lt.s32.totalorder %s4946_s25, %s4946_s25 }
 0xaa7   :  { %3340 = vmatprep.subr.bf16.mxu0 %v4524_v42 }
 0xaa8   :  { %2960 = vmatpush1.bf16.msra.mxu1 %v4504_v58  ;;  %v4569_v58 = vld [vmem:[#allocation16 + $0x110] ss:$12 sps:$4 sm:$0xff]   ;;  %p4953_p2 = por %p4952_p1, %p4951_p0 }
 0xaa9   :  { %2961 = vmatprep.subr.bf16.mxu1 %v4509_v44  ;;  %v4570_v44 = vld [vmem:[#allocation16 + $0x50] ss:$12 sps:$4 sm:$0xff]  }
 0xaaa   :  { %p4954_p3 = pnand %p4953_p2, %p4947_p13 }
 0xaac   :  { %2962 = vmatpush1.bf16.msra.mxu1 %v4507_v49  ;;  %v4573_v49 = vld [vmem:[#allocation16 + $0xf4] ss:$12 sps:$4 sm:$0xff]  }
 0xaad   :  { %2963 = vmatprep.subr.bf16.mxu1 %v4512_v50  ;;  %v4574_v50 = vld [vmem:[#allocation16 + $0xf8] ss:$12 sps:$4 sm:$0xff]  }
 0xab0   :  { %2964 = vmatpush1.bf16.msra.mxu1 %v4510_v51  ;;  %v4571_v51 = vld [vmem:[#allocation16 + $0xf0] ss:$12 sps:$4 sm:$0xff]  }
 0xab1   :  { %2965 = vmatprep.subr.bf16.mxu1 %v4515_v52  ;;  %v4575_v52 = vld [vmem:[#allocation16 + $0x38] ss:$12 sps:$4 sm:$0xff]  }
 0xab4   :  { %2966 = vmatpush1.bf16.msra.mxu1 %v4513_v54  ;;  %v4578_v54 = vld [vmem:[#allocation16 + $0xdc] ss:$12 sps:$4 sm:$0xff]  }
 0xab5   :  { %2967 = vmatprep.subr.bf16.mxu1 %v4518_v39  ;;  %v4581_v39 = vld [vmem:[#allocation16 + $0xc0] ss:$12 sps:$4 sm:$0xff]  }
 0xab8   :  { %2968 = vmatpush1.bf16.msra.mxu1 %v4516_v40  ;;  %v4585_v40 = vld [vmem:[#allocation16 + $0x8] ss:$12 sps:$4 sm:$0xff]  }
 0xab9   :  { %2969 = vmatprep.subr.bf16.mxu1 %v4521_v2  ;;  %v4588_v2 = vld [vmem:[#allocation18 + $0x74] ss:$8 sps:$4 sm:$0xff]  }
 0xabc   :  { %2970 = vmatpush1.bf16.msra.mxu1 %v4519_v41  ;;  %v4615_v41 = vld [vmem:[#allocation18 + $0x174] ss:$8 sps:$4 sm:$0xff]  }
 0xabd   :  { %4207 = vmatprep.subr.bf16.mxu1 %v4549_v15 }
 0xb61   :  { %v2771_v57 = vpop.f32.mrf.mxu0 }
 0xb63   :  { %v4271_v62 = vpop.f32.mrf.mxu0 }
 0xb64   :  { %v4576_v62 = vld [vmem:[#allocation16 + $0xd8] ss:$12 sps:$4 sm:$0xff]  }
 0xb65   :  { %v2774_v60 = vpop.f32.mrf.mxu0 }
 0xb66   :  { %v2778_v19 = vpack.c.bf16 %v2774_v60, %v2771_v57  ;;  %v4579_v57 = vld [vmem:[#allocation16 + $0xe0] ss:$12 sps:$4 sm:$0xff]  }
 0xb67   :  { %v4272_v34 = vpop.f32.mrf.mxu0  ;;  %v4580_v60 = vld [vmem:[#allocation16 + $0x20] ss:$12 sps:$4 sm:$0xff]  }
 0xb68   :  { %4278 = vmatmul.mubr.msk.bf16.vlgmr.msra.gmra.mxu0 %vm1497_vm1, %v2778_v19  ;;  %v4583_v19 = vld [vmem:[#allocation16 + $0xc4] ss:$12 sps:$4 sm:$0xff]   ;;  %v4584_v34 = vld [vmem:[#allocation16 + $0xc8] ss:$12 sps:$4 sm:$0xff]  }
 0xb69   :  { %3341 = vmatpush1.bf16.msra.mxu0 %v4522_v37  ;;  %v210_v37 = vld [vmem:[#allocation21 + $0xc] sm:$0x3] }
 0xb6a   :  { %3342 = vmatprep.subr.bf16.mxu0 %v4527_v8  ;;  %v2872_v8 = vrot.slane %v210_v37, %v5165_v55 }
 0xb6d   :  { %3343 = vmatpush1.bf16.msra.mxu0 %v4525_v9  ;;  %v2868_v9 = vrot.slane %v210_v37, %v5168_v56  ;;  %v4657_v37 = vld [vmem:[#allocation18 + $0x104] ss:$8 sps:$4 sm:$0xff]  }
 0xb6e   :  { %3344 = vmatprep.subr.bf16.mxu0 %v4530_v13 }
 0xb71   :  { %3345 = vmatpush1.bf16.msra.mxu0 %v4528_v0 }
 0xb72   :  { %3346 = vmatprep.subr.bf16.mxu0 %v4533_v10 }
 0xb75   :  { %3347 = vmatpush1.bf16.msra.mxu0 %v4531_v48 }
 0xb76   :  { %3348 = vmatprep.subr.bf16.mxu0 %v4536_v16 }
 0xb79   :  { %3349 = vmatpush1.bf16.msra.mxu0 %v4534_v61 }
 0xb7a   :  { %3350 = vmatprep.subr.bf16.mxu0 %v4539_v63 }
 0xb7d   :  { %3351 = vmatpush1.bf16.msra.mxu0 %v4537_v1 }
 0xb7e   :  { %3352 = vmatprep.subr.bf16.mxu0 %v4542_v4 }
 0xb81   :  { %3353 = vmatpush1.bf16.msra.mxu0 %v4540_v6 }
 0xb82   :  { %3354 = vmatprep.subr.bf16.mxu0 %v4545_v11 }
 0xb85   :  { %3355 = vmatpush1.bf16.msra.mxu0 %v4543_v17  ;;  %v4586_v17 = vld [vmem:[#allocation18 + $0x70] ss:$8 sps:$4 sm:$0xff]  }
 0xb86   :  { %3356 = vmatprep.subr.bf16.mxu0 %v4548_v7  ;;  %v4613_v7 = vld [vmem:[#allocation18 + $0x170] ss:$8 sps:$4 sm:$0xff]  }
 0xb89   :  { %3357 = vmatpush2.bf16.msra.mxu0 %v4546_v18 }
 0xb8a   :  { %3358 = vmatprep.subr.bf16.mxu0 %v4553_v12  ;;  %v4591_v12 = vld [vmem:[#allocation18 + $0x64] ss:$8 sps:$4 sm:$0xff]  }
 0xb8d   :  { %3359 = vmatpush2.bf16.msra.mxu0 %v4551_v31  ;;  %v4621_v31 = vld [vmem:[#allocation18 + $0x164] ss:$8 sps:$4 sm:$0xff]  }
 0xb8e   :  { %3360 = vmatprep.subr.bf16.mxu0 %v4558_v5  ;;  %v4589_v5 = vld [vmem:[#allocation18 + $0x60] ss:$8 sps:$4 sm:$0xff]  }
 0xb91   :  { %3361 = vmatpush2.bf16.msra.mxu0 %v4556_v20  ;;  %v4619_v20 = vld [vmem:[#allocation18 + $0x160] ss:$8 sps:$4 sm:$0xff]  }
 0xb92   :  { %3362 = vmatprep.subr.bf16.mxu0 %v4563_v21  ;;  %v4594_v21 = vld [vmem:[#allocation18 + $0x54] ss:$8 sps:$4 sm:$0xff]  }
 0xb95   :  { %3363 = vmatpush2.bf16.msra.mxu0 %v4561_v24  ;;  %v4627_v24 = vld [vmem:[#allocation18 + $0x154] ss:$8 sps:$4 sm:$0xff]  }
 0xb96   :  { %3364 = vmatprep.subr.bf16.mxu0 %v4568_v25  ;;  %v4592_v25 = vld [vmem:[#allocation18 + $0x50] ss:$8 sps:$4 sm:$0xff]  }
 0xb99   :  { %3365 = vmatpush2.bf16.msra.mxu0 %v4566_v14  ;;  %v4625_v14 = vld [vmem:[#allocation18 + $0x150] ss:$8 sps:$4 sm:$0xff]  }
 0xb9a   :  { %3366 = vmatprep.subr.bf16.mxu0 %v4573_v49  ;;  %v4630_v49 = vld [vmem:[#allocation18 + $0xc4] ss:$8 sps:$4 sm:$0xff]  }
 0xb9d   :  { %3367 = vmatpush2.bf16.msra.mxu0 %v4571_v51  ;;  %v4636_v51 = vld [vmem:[#allocation18 + $0xb4] ss:$8 sps:$4 sm:$0xff]  }
 0xb9e   :  { %3368 = vmatprep.subr.bf16.mxu0 %v4578_v54  ;;  %v4642_v54 = vld [vmem:[#allocation18 + $0xa4] ss:$8 sps:$4 sm:$0xff]  }
 0xba1   :  { %3369 = vmatpush2.bf16.msra.mxu0 %v4576_v62  ;;  %v4645_v62 = vld [vmem:[#allocation18 + $0x124] ss:$8 sps:$4 sm:$0xff]  }
 0xba2   :  { %3370 = vmatprep.subr.bf16.mxu0 %v4583_v19  ;;  %v4648_v19 = vld [vmem:[#allocation18 + $0x94] ss:$8 sps:$4 sm:$0xff]  }
 0xba5   :  { %3371 = vmatpush2.bf16.msra.mxu0 %v4581_v39  ;;  %v4651_v39 = vld [vmem:[#allocation18 + $0x114] ss:$8 sps:$4 sm:$0xff]  }
 0xba6   :  { %3775 = vmatprep.subr.bf16.mxu0 %v4615_v41  ;;  %v4652_v41 = vld [vmem:[#allocation18 + $0x80] ss:$8 sps:$4 sm:$0xff]  }
 0xc28   :  { %v2838_v28 = vpop.f32.mrf.mxu0 }
 0xc29   :  { %v2839_v59 = vadd.f32 %v4027_v27, %v2838_v28  ;;  %v4633_v28 = vld [vmem:[#allocation18 + $0x144] ss:$8 sps:$4 sm:$0xff]  }
 0xc2a   :  { %v4279_v23 = vpop.f32.mrf.mxu0 }
 0xc2b   :  { %v2845_v33 = vmax.f32 %v2839_v59, 0.0  ;;  %v4595_v23 = vld [vmem:[#allocation18 + $0x40] ss:$8 sps:$4 sm:$0xff]  }
 0xc2c   :  { %v2841_v29 = vpop.f32.mrf.mxu0  ;;  %v4631_v59 = vld [vmem:[#allocation18 + $0x140] ss:$8 sps:$4 sm:$0xff]  }
 0xc2d   :  { %v2842_v32 = vadd.f32 %v4027_v27, %v2841_v29  ;;  %v4597_v27 = vld [vmem:[#allocation18 + $0x44] ss:$8 sps:$4 sm:$0xff]   ;;  %v4600_v29 = vld [vmem:[#allocation18 + $0x34] ss:$8 sps:$4 sm:$0xff]  }
 0xc2e   :  { %v4280_v45 = vpop.f32.mrf.mxu0 }
 0xc2f   :  { %v2846_v35 = vmax.f32 %v2842_v32, 0.0  ;;  %v4639_v32 = vld [vmem:[#allocation18 + $0x134] ss:$8 sps:$4 sm:$0xff]   ;;  %v4598_v45 = vld [vmem:[#allocation18 + $0x30] ss:$8 sps:$4 sm:$0xff]  }
 0xc31   :  { %v2847_v46 = vpack.c.bf16 %v2846_v35, %v2845_v33  ;;  %v4603_v33 = vld [vmem:[#allocation18 + $0x24] ss:$8 sps:$4 sm:$0xff]   ;;  %v4601_v35 = vld [vmem:[#allocation18 + $0x20] ss:$8 sps:$4 sm:$0xff]  }
 0xc33   :  { %2988 = vmatmul.mubr.bf16.vlgmr.msra.gmra.mxu1 %v2847_v46  ;;  %v4604_v46 = vld [vmem:[#allocation18 + $0x10] ss:$8 sps:$4 sm:$0xff]  }
 0xc34   :  { %4208 = vmatpush3.bf16.msra.mxu1 %v4550_v36  ;;  %v4606_v36 = vld [vmem:[#allocation18 + $0x14] ss:$8 sps:$4 sm:$0xff]  }
 0xc35   :  { %4209 = vmatprep.subr.bf16.mxu1 %v4554_v43  ;;  %v4609_v43 = vld [vmem:[#allocation18 + $0x4] ss:$8 sps:$4 sm:$0xff]  }
 0xc38   :  { %4210 = vmatpush3.bf16.msra.mxu1 %v4555_v53  ;;  %v4607_v53 = vld [vmem:[#allocation18] ss:$8 sps:$4 sm:$0xff]  }
 0xc39   :  { %4211 = vmatprep.subr.bf16.mxu1 %v4559_v3  ;;  %v4612_v3 = vld [vmem:[#allocation18 + $0xf4] ss:$8 sps:$4 sm:$0xff]  }
 0xc3c   :  { %4212 = vmatpush3.bf16.msra.mxu1 %v4560_v26  ;;  %v4610_v26 = vld [vmem:[#allocation18 + $0xf0] ss:$8 sps:$4 sm:$0xff]  }
 0xc3d   :  { %4213 = vmatprep.subr.bf16.mxu1 %v4564_v22  ;;  %v4618_v22 = vld [vmem:[#allocation18 + $0xe4] ss:$8 sps:$4 sm:$0xff]  }
 0xc40   :  { %4214 = vmatpush3.bf16.msra.mxu1 %v4565_v47  ;;  %v4616_v47 = vld [vmem:[#allocation18 + $0xe0] ss:$8 sps:$4 sm:$0xff]  }
 0xc41   :  { %4215 = vmatprep.subr.bf16.mxu1 %v4569_v58  ;;  %v4624_v58 = vld [vmem:[#allocation18 + $0xd4] ss:$8 sps:$4 sm:$0xff]  }
 0xc44   :  { %4216 = vmatpush3.bf16.msra.mxu1 %v4570_v44  ;;  %v4622_v44 = vld [vmem:[#allocation18 + $0xd0] ss:$8 sps:$4 sm:$0xff]  }
 0xc45   :  { %4217 = vmatprep.subr.bf16.mxu1 %v4574_v50  ;;  %v4628_v50 = vld [vmem:[#allocation18 + $0xc0] ss:$8 sps:$4 sm:$0xff]  }
 0xc48   :  { %4218 = vmatpush3.bf16.msra.mxu1 %v4575_v52  ;;  %v4634_v52 = vld [vmem:[#allocation18 + $0xb0] ss:$8 sps:$4 sm:$0xff]  }
 0xc49   :  { %4219 = vmatprep.subr.bf16.mxu1 %v4579_v57  ;;  %v4640_v57 = vld [vmem:[#allocation18 + $0xa0] ss:$8 sps:$4 sm:$0xff]  }
 0xc4c   :  { %4220 = vmatpush3.bf16.msra.mxu1 %v4580_v60  ;;  %v4643_v60 = vld [vmem:[#allocation18 + $0x120] ss:$8 sps:$4 sm:$0xff]  }
 0xc4d   :  { %4221 = vmatprep.subr.bf16.mxu1 %v4584_v34  ;;  %v4646_v34 = vld [vmem:[#allocation18 + $0x90] ss:$8 sps:$4 sm:$0xff]  }
 0xc50   :  { %4222 = vmatpush3.bf16.msra.mxu1 %v4585_v40  ;;  %v4649_v40 = vld [vmem:[#allocation18 + $0x110] ss:$8 sps:$4 sm:$0xff]  }
 0xc51   :  { %3732 = vmatprep.subr.bf16.mxu1 %v4588_v2  ;;  %v4654_v2 = vld [vmem:[#allocation18 + $0x84] ss:$8 sps:$4 sm:$0xff]  }
 0xcf3   :  { %v2989_v42 = vpop.f32.mrf.mxu1 }
 0xcf4   :  { %v2990_v48 = vadd.f32 %v2989_v42, %v2868_v9  ;;  %v4655_v42 = vld [vmem:[#allocation18 + $0x100] ss:$8 sps:$4 sm:$0xff]  }
 0xcf5   :  { %v2991_v13 = vpop.f32.mrf.mxu1 }
 0xcf6   :  { %v2992_v0 = vadd.f32 %v2991_v13, %v2872_v8  ;;  %v2998_v6 = vmax.f32 %v2990_v48, 0.0 }
 0xcf7   :  { %v2993_v15 = vpop.f32.mrf.mxu1 }
 0xcf8   :  { %v2994_v10 = vadd.f32 %v2993_v15, %v2868_v9  ;;  %v2999_v1 = vmax.f32 %v2992_v0, 0.0 }
 0xcf9   :  { %v2995_v16 = vpop.f32.mrf.mxu1 }
 0xcfa   :  { %v2996_v61 = vadd.f32 %v2995_v16, %v2872_v8  ;;  %v3000_v63 = vmax.f32 %v2994_v10, 0.0  ;;  %v211_v8 = vld [vmem:[#allocation21 + $0xe] sm:$0x7] }
 0xcfb   :  { %v3076_v15 = vrot.slane %v211_v8, %v5165_v55  ;;  %v3072_v0 = vrot.slane %v211_v8, %v5168_v56  ;;  %v3080_v16 = vrot.slane %v211_v8, %v5161_v38 }
 0xcfc   :  { %v3001_v4 = vmax.f32 %v2996_v61, 0.0  ;;  %v3002_v18 = vpack.c.bf16 %v3000_v63, %v2998_v6 }
 0xcfe   :  { %v3003_v11 = vpack.c.bf16 %v3001_v4, %v2999_v1 }
 0xd00   :  { %3372 = vmatprep.mubr.bf16.mxu0 %v3003_v11  ;;  %3415 = vmatprep.mubr.bf16.mxu1 %v3003_v11 }
 0xd01   :  { %3373 = vmatmul.mubr.bf16.vlgmr.msra.gmra.mxu0 %v3002_v18  ;;  %3416 = vmatmul.mubr.bf16.vlgmr.msra.gmra.mxu1 %v3002_v18 }
 0xd02   :  { %3733 = vmatpush1.bf16.msra.mxu1 %v4586_v17  ;;  %3776 = vmatpush1.bf16.msra.mxu0 %v4613_v7 }
 0xd03   :  { %3734 = vmatprep.subr.bf16.mxu1 %v4591_v12  ;;  %3777 = vmatprep.subr.bf16.mxu0 %v4621_v31 }
 0xd04   :  { %3807 = vmatprep.mubr.bf16.mxu0 %v5002_v30  ;;  %v4637_v30 = vld [vmem:[#allocation18 + $0x130] ss:$8 sps:$4 sm:$0xff]  }
 0xd06   :  { %3735 = vmatpush1.bf16.msra.mxu1 %v4589_v5  ;;  %3778 = vmatpush1.bf16.msra.mxu0 %v4619_v20 }
 0xd07   :  { %3736 = vmatprep.subr.bf16.mxu1 %v4594_v21  ;;  %3779 = vmatprep.subr.bf16.mxu0 %v4627_v24 }
 0xd0a   :  { %3737 = vmatpush1.bf16.msra.mxu1 %v4592_v25  ;;  %3780 = vmatpush1.bf16.msra.mxu0 %v4625_v14 }
 0xd0b   :  { %3738 = vmatprep.subr.bf16.mxu1 %v4597_v27  ;;  %3781 = vmatprep.subr.bf16.mxu0 %v4633_v28 }
 0xd0e   :  { %3739 = vmatpush1.bf16.msra.mxu1 %v4595_v23  ;;  %3782 = vmatpush1.bf16.msra.mxu0 %v4631_v59  ;;  %v212_v59 = vld [vmem:[#allocation21 + $0x11] sm:$0x3] }
 0xd0f   :  { %3740 = vmatprep.subr.bf16.mxu1 %v4600_v29  ;;  %3783 = vmatprep.subr.bf16.mxu0 %v4639_v32  ;;  %v3485_v29 = vrot.slane %v212_v59, %v5168_v56  ;;  %v3489_v32 = vrot.slane %v212_v59, %v5165_v55 }
 0xd12   :  { %3741 = vmatpush1.bf16.msra.mxu1 %v4598_v45  ;;  %3784 = vmatpush1.bf16.msra.mxu0 %v4637_v30 }
 0xd13   :  { %3742 = vmatprep.subr.bf16.mxu1 %v4603_v33  ;;  %3785 = vmatprep.subr.bf16.mxu0 %v4645_v62 }
 0xd16   :  { %3743 = vmatpush1.bf16.msra.mxu1 %v4601_v35  ;;  %3786 = vmatpush1.bf16.msra.mxu0 %v4643_v60 }
 0xd17   :  { %3744 = vmatprep.subr.bf16.mxu1 %v4606_v36  ;;  %3787 = vmatprep.subr.bf16.mxu0 %v4651_v39 }
 0xd1a   :  { %3745 = vmatpush1.bf16.msra.mxu1 %v4604_v46  ;;  %3788 = vmatpush1.bf16.msra.mxu0 %v4649_v40 }
 0xd1b   :  { %3746 = vmatprep.subr.bf16.mxu1 %v4609_v43  ;;  %3789 = vmatprep.subr.bf16.mxu0 %v4657_v37 }
 0xd1e   :  { %3747 = vmatpush1.bf16.msra.mxu1 %v4607_v53  ;;  %3790 = vmatpush1.bf16.msra.mxu0 %v4655_v42 }
 0xd1f   :  { %3748 = vmatprep.subr.bf16.mxu1 %v4612_v3 }
 0xd22   :  { %3749 = vmatpush2.bf16.msra.mxu1 %v4610_v26 }
 0xd23   :  { %3750 = vmatprep.subr.bf16.mxu1 %v4618_v22 }
 0xd26   :  { %3751 = vmatpush2.bf16.msra.mxu1 %v4616_v47 }
 0xd27   :  { %3752 = vmatprep.subr.bf16.mxu1 %v4624_v58 }
 0xd2a   :  { %3753 = vmatpush2.bf16.msra.mxu1 %v4622_v44 }
 0xd2b   :  { %3754 = vmatprep.subr.bf16.mxu1 %v4630_v49 }
 0xd2e   :  { %3755 = vmatpush2.bf16.msra.mxu1 %v4628_v50 }
 0xd2f   :  { %3756 = vmatprep.subr.bf16.mxu1 %v4636_v51 }
 0xd32   :  { %3757 = vmatpush2.bf16.msra.mxu1 %v4634_v52 }
 0xd33   :  { %3758 = vmatprep.subr.bf16.mxu1 %v4642_v54 }
 0xd36   :  { %3759 = vmatpush2.bf16.msra.mxu1 %v4640_v57 }
 0xd37   :  { %3760 = vmatprep.subr.bf16.mxu1 %v4648_v19 }
 0xd3a   :  { %3761 = vmatpush2.bf16.msra.mxu1 %v4646_v34 }
 0xd3b   :  { %3762 = vmatprep.subr.bf16.mxu1 %v4654_v2 }
 0xd3e   :  { %3763 = vmatpush2.bf16.msra.mxu1 %v4652_v41 }
 0xdc1   :  { %v3374_v9 = vpop.f32.mrf.mxu0  ;;  %v4223_v13 = vpop.f32.mrf.mxu1 }
 0xdc2   :  { %v3375_v11 = vadd.f32 %v3374_v9, %v3072_v0 }
 0xdc3   :  { %v3376_v10 = vpop.f32.mrf.mxu0  ;;  %v4224_v48 = vpop.f32.mrf.mxu1 }
 0xdc4   :  { %v4225_v61 = vadd.f32 %v4224_v48, %v4223_v13  ;;  %v3377_v4 = vadd.f32 %v3376_v10, %v3076_v15  ;;  %v3424_v25 = vmax.f32 %v3375_v11, 0.0 }
 0xdc5   :  { %v3378_v63 = vpop.f32.mrf.mxu0  ;;  %v4226_v1 = vpop.f32.mrf.mxu1 }
 0xdc6   :  { %v3379_v6 = vadd.f32 %v3378_v63, %v3072_v0  ;;  %v3418_v18 = vadd.f32 %v4225_v61, %v3080_v16  ;;  %v3425_v20 = vmax.f32 %v3377_v4, 0.0 }
 0xdc7   :  { %v3380_v17 = vpop.f32.mrf.mxu0  ;;  %v4227_v7 = vpop.f32.mrf.mxu1 }
 0xdc8   :  { %v3381_v12 = vadd.f32 %v3380_v17, %v3076_v15  ;;  %v4228_v31 = vadd.f32 %v4227_v7, %v4226_v1  ;;  %v3427_v5 = vmax.f32 %v3379_v6, 0.0  ;;  %v3426_v14 = vmax.f32 %v3418_v18, 0.0 }
 0xdca   :  { %v3428_v21 = vmax.f32 %v3381_v12, 0.0  ;;  %v3421_v24 = vadd.f32 %v4228_v31, %v3080_v16  ;;  %v3430_v38 = vpack.c.bf16 %v3427_v5, %v3424_v25 }
 0xdcc   :  { %v3431_v27 = vpack.c.bf16 %v3428_v21, %v3425_v20  ;;  %v3429_v28 = vmax.f32 %v3421_v24, 0.0 }
 0xdce   :  { %v3432_v23 = vpack.c.bf16 %v3429_v28, %v3426_v14  ;;  %3764 = vmatprep.mubr.bf16.mxu1 %v3431_v27 }
 0xdcf   :  { %3765 = vmatmul.mubr.bf16.vlgmr.msra.gmra.mxu1 %v3430_v38 }
 0xdd0   :  { %3808 = vmatmul.mubr.bf16.vlgmr.msra.gmra.mxu0 %v3432_v23 }
 0xe8f   :  { %v3766_v45 = vpop.f32.mrf.mxu1 }
 0xe90   :  { %v3767_v30 = vadd.f32 %v3766_v45, %v3485_v29  ;;  %v3809_v33 = vpop.f32.mrf.mxu0 }
 0xe91   :  { %v3768_v35 = vpop.f32.mrf.mxu1 }
 0xe92   :  { %v3810_v36 = vadd.f32 %v3809_v33, %v3767_v30  ;;  %v3769_v46 = vadd.f32 %v3768_v35, %v3489_v32  ;;  %v3811_v43 = vpop.f32.mrf.mxu0 }
 0xe93   :  { %v3770_v53 = vpop.f32.mrf.mxu1 }
 0xe94   :  { %v3818_v3 = vmax.f32 %v3810_v36, 0.0  ;;  %v3812_v26 = vadd.f32 %v3811_v43, %v3769_v46  ;;  %v3771_v22 = vadd.f32 %v3770_v53, %v3485_v29  ;;  %v3813_v47 = vpop.f32.mrf.mxu0 }
 0xe95   :  { %v3772_v58 = vpop.f32.mrf.mxu1 }
 0xe96   :  { %3822 = vst [vmem:[#allocation22] sm:$0xff] %v3818_v3  ;;  %v3819_v44 = vmax.f32 %v3812_v26, 0.0  ;;  %v3814_v49 = vadd.f32 %v3813_v47, %v3771_v22  ;;  %v3773_v50 = vadd.f32 %v3772_v58, %v3489_v32  ;;  %v3815_v56 = vpop.f32.mrf.mxu0 }
 0xe98   :  { %3823 = vst [vmem:[#allocation22 + $0x8] sm:$0xff] %v3819_v44  ;;  %v3820_v55 = vmax.f32 %v3814_v49, 0.0  ;;  %v3816_v51 = vadd.f32 %v3815_v56, %v3773_v50 }
 0xe9a   :  { %3824 = vst [vmem:[#allocation22 + $0x10] sm:$0xff] %v3820_v55  ;;  %v3821_v52 = vmax.f32 %v3816_v51, 0.0 }
 0xe9c   :  { %3825 = vst [vmem:[#allocation22 + $0x18] sm:$0xff] %v3821_v52 }
 0xe9d   :  { %4957 = shalt.err (!%p4954_p3)
}
 0xe9e   :  { %3837 = dma.vmem_to_hbm [thread:$0]  %s3832_s22, 512, %s5601_s16, [#allocation6], %s4991_s26, %s4991_s26, %s4992_s28  }
 0xe9f   :  { %4980 = dma.done.wait [#allocation6], 512  }
 0xea0   :  { %4981 = vsyncadd [#allocation6], 4294966784 }
 0xea1   :  { %3841 = vsyncpa [#allocation5], 1 }
 0xea2   :  { %3842 = vsyncpa [#allocation8], 1 }
 0xea3   :  { %3843 = vsyncpa [#allocation11], 1 }
 0xea4   :  { %3844 = vsyncpa [#allocation14], 1 }
 0xea5   :  { %3845 = vsyncpa [#allocation17], 1 }
 0xea6   :  { %3846 = vsyncpa [#allocation20], 1 }
 0xea7   :  { %3847 = vsyncpa [#allocation6], 1 }

</bundles_post_ra>
